<compile_context>
chip_gen: v7x
topology: tpu7x:2x2x1
jax: 0.10.0
libtpu: 0.0.40
codegen_flags: <defaults>
</compile_context>

<pallas_src>
import jax
import jax.numpy as jnp
from jax.experimental import pallas as pl
from jax.experimental.pallas import tpu as pltpu

RES_A = 2.0      # make_res_block_enc_feat_ext defaults
RES_B = 0.3
KSIZE = 4
STRIDE = 2
N_PAD = 128      # lane-dense padding of the classifier head (sliced back to n_labels outside)


# ----------------------------------------------------------------------------
# In-kernel helpers (operate on values; the whole network is traced into one kernel body)
# ----------------------------------------------------------------------------
def _conv_taps_s2(x, l_out, padding):
    """Strided (k=4, s=2) im2col, done in-kernel.

    Returns a list of 4 [l_out, C] blocks; block t holds x[2*o + t - padding].
    Rows outside [0, L) come out as zero (== the conv's zero padding). Row gathering is
    expressed as a 0/1 selection matmul so it lowers to plain iota / compare / dot.
    """
    L, _ = x.shape
    o = jax.lax.broadcasted_iota(jnp.int32, (l_out, L), 0)   # output position
    j = jax.lax.broadcasted_iota(jnp.int32, (l_out, L), 1)   # input position
    taps = []
    for t in range(KSIZE):
        gather = (j == STRIDE * o + (t - padding)).astype(x.dtype)
        taps.append(jnp.dot(gather, x, preferred_element_type=jnp.float32))
    return taps


def _matmul_bf16(lhs_f32, w_ref, b_ref):
    """bf16 MXU operands, f32 accumulation, f32 bias add (epilogue stays f32)."""
    y = jnp.dot(lhs_f32.astype(jnp.bfloat16), w_ref[...],
                preferred_element_type=jnp.float32)
    return y + b_ref[...]


def _make_kernel(block_paddings):
    n_blocks = len(block_paddings)

    def kernel(*refs):
        it = iter(refs)
        x_ref = next(it)
        c1_w, c1_b = next(it), next(it)
        blocks = [tuple(next(it) for _ in range(6)) for _ in range(n_blocks)]
        lin_w, lin_b = next(it), next(it)
        o_ref = next(it)

        x = x_ref[0]                                           # [len_sequence, num_features] f32

        # conv1: k=4, s=2, p=1 (no activation; the first resblock starts with bn+relu)
        l_out = (x.shape[0] + 2 - KSIZE) // STRIDE + 1
        patches = jnp.concatenate(_conv_taps_s2(x, l_out, 1), axis=-1)
        x = _matmul_bf16(patches, c1_w, c1_b)

        # residual blocks (eval mode: both dropouts are identity)
        for (bn1_s, bn1_b, w1f, b1f, w_comb, b_comb), pad in zip(blocks, block_paddings):
            # h1 = relu( bn2( conv1x1( relu( bn1(x) ) ) ) )   -- bn2 folded into w1f / b1f
            xa = jnp.maximum(x * bn1_s[...] + bn1_b[...], 0.0)
            h1 = jnp.maximum(_matmul_bf16(xa, w1f, b1f), 0.0)
            # a*bn_ds(conv_ds(x)) + b*conv2(h1) fused into ONE MXU call:
            #   lhs = [patches(x) | patches(h1)],  rhs = [a*Wds_folded ; b*W2]
            l_out = (x.shape[0] + 2 * pad - KSIZE) // STRIDE + 1
            patches = jnp.concatenate(
                _conv_taps_s2(x, l_out, pad) + _conv_taps_s2(h1, l_out, pad), axis=-1)
            x = _matmul_bf16(patches, w_comb, b_comb)

        # self.dropout (p=0.5) is identity in eval mode; flatten is a no-op (final length == 1)
        logits = _matmul_bf16(x, lin_w, lin_b)                 # [1, N_PAD]
        o_ref[0] = jax.nn.sigmoid(logits)

    return kernel


# ----------------------------------------------------------------------------
# Wrapper: one pallas_call for the whole forward pass
# ----------------------------------------------------------------------------
def clf_text_forward(x_text, params):
    """x_text: [B, len_sentence, num_features] (char one-hot-like floats) -> [B, n_labels]."""
    B, L, C = x_text.shape
    paddings = params["paddings"]

    # The PyTorch head (Linear(5*DIM_text)) requires the final spatial length to be exactly 1.
    l = (L + 2 - KSIZE) // STRIDE + 1
    for p in paddings:
        l = (l + 2 * p - KSIZE) // STRIDE + 1
    assert l == 1, f"final spatial length {l} != 1"

    flat = [x_text, params["c1_w"], params["c1_b"]]
    for blk in params["blocks"]:
        flat += [blk["bn1_s"], blk["bn1_b"], blk["w1f"], blk["b1f"],
                 blk["w_comb"], blk["b_comb"]]
    flat += [params["lin_w"], params["lin_b"]]

    # weights: full-array blocks with constant index maps -> DMA'd once, resident in VMEM
    in_specs = [pl.BlockSpec((1, L, C), lambda i: (i, 0, 0))]
    in_specs += [pl.BlockSpec(a.shape, lambda i: (0, 0)) for a in flat[1:]]

    out = pl.pallas_call(
        _make_kernel(paddings),
        out_shape=jax.ShapeDtypeStruct((B, 1, N_PAD), jnp.float32),
        grid=(B,),
        in_specs=in_specs,
        out_specs=pl.BlockSpec((1, 1, N_PAD), lambda i: (i, 0, 0)),
        compiler_params=pltpu.CompilerParams(
            dimension_semantics=("parallel",)),   # v7x: one batch element per TensorCore
    )(*flat)
    return out.reshape(B, N_PAD)[:, :params["n_labels"]]


# ----------------------------------------------------------------------------
# Deterministic synthetic parameters (PyTorch-default-style init), with BN folding + branch fusion
# ----------------------------------------------------------------------------
def conv1d_params(key, c_in, c_out, k, bias=True):
    """weight: [C_out, C_in, k] like PyTorch Conv1d."""
    kw, kb = jax.random.split(key)
    bound = 1.0 / (c_in * k) ** 0.5
    w = jax.random.uniform(kw, (c_out, c_in, k), jnp.float32, -bound, bound)
    b = jax.random.uniform(kb, (c_out,), jnp.float32, -bound, bound) if bias else None
    return w, b


def bn_fold(c, eps=1e-5):
    """BatchNorm1d at PyTorch default init, eval mode -> per-channel (scale, shift)."""
    gamma = jnp.ones((c,), jnp.float32)
    beta = jnp.zeros((c,), jnp.float32)
    mean = jnp.zeros((c,), jnp.float32)
    var = jnp.ones((c,), jnp.float32)
    scale = gamma / jnp.sqrt(var + eps)
    shift = beta - mean * scale
    return scale, shift


def _stack_taps(w):
    """[C_out, C_in, k] -> [k*C_in, C_out] (tap-major rows, matching the in-kernel patch order)."""
    c_out, c_in, k = w.shape
    return jnp.transpose(w, (2, 1, 0)).reshape(k * c_in, c_out)


def resblock_params(key, c_in, c_out):
    k1, k2, k3 = jax.random.split(key, 3)
    w1, _ = conv1d_params(k1, c_in, c_in, 1, bias=False)       # 1x1 conv, bias=False
    w2, b2 = conv1d_params(k2, c_in, c_out, KSIZE)             # main k=4 conv
    wds, bds = conv1d_params(k3, c_in, c_out, KSIZE)           # downsample conv
    bn1_s, bn1_b = bn_fold(c_in)
    bn2_s, bn2_b = bn_fold(c_in)
    bnds_s, bnds_b = bn_fold(c_out)

    # fold bn2 into the 1x1 conv (conv1x1 -> bn2 -> relu)
    w1f = (w1[:, :, 0].T * bn2_s[None, :]).astype(jnp.bfloat16)
    b1f = bn2_b.reshape(1, c_in)

    # fold bn_ds into conv_ds and fuse conv_ds / conv2 into one matmul:
    #   y = a*(P_x @ Wds_f + bds_f) + b*(P_h @ W2 + b2) = [P_x | P_h] @ [a*Wds_f ; b*W2] + b_comb
    wds_f = _stack_taps(wds) * bnds_s[None, :]
    bds_f = bds * bnds_s + bnds_b
    w_comb = jnp.concatenate([RES_A * wds_f, RES_B * _stack_taps(w2)],
                             axis=0).astype(jnp.bfloat16)
    b_comb = (RES_A * bds_f + RES_B * b2).reshape(1, c_out)

    return dict(bn1_s=bn1_s.reshape(1, c_in), bn1_b=bn1_b.reshape(1, c_in),
                w1f=w1f, b1f=b1f, w_comb=w_comb, b_comb=b_comb)


def build_params(key, num_features, dim_text, n_labels, len_sequence):
    # resblock_7/8 are only used when len_sequence > 500 (same gate as the PyTorch forward).
    paddings = (1, 1, 1, 1, 1, 1) if len_sequence <= 500 else (1, 1, 1, 1, 1, 1, 1, 0)
    n_blocks = len(paddings)

    keys = jax.random.split(key, 11)
    conv1_w, conv1_b = conv1d_params(keys[0], num_features, dim_text, KSIZE)
    chans = [(dim_text, 2 * dim_text), (2 * dim_text, 3 * dim_text),
             (3 * dim_text, 4 * dim_text), (4 * dim_text, 4 * dim_text),
             (4 * dim_text, 4 * dim_text), (4 * dim_text, 5 * dim_text),
             (5 * dim_text, 5 * dim_text), (5 * dim_text, 5 * dim_text)]
    blocks = [resblock_params(keys[1 + i], ci, co)
              for i, (ci, co) in enumerate(chans[:n_blocks])]

    lin_in = 5 * dim_text
    lb = 1.0 / lin_in ** 0.5
    lin_w = jax.random.uniform(keys[9], (lin_in, n_labels), jnp.float32, -lb, lb)
    lin_b = jax.random.uniform(keys[10], (n_labels,), jnp.float32, -lb, lb)
    # lane-dense classifier head: zero-pad N = n_labels -> 128, slice outside the kernel
    lin_w_pad = jnp.zeros((lin_in, N_PAD), jnp.float32).at[:, :n_labels].set(lin_w)
    lin_b_pad = jnp.zeros((1, N_PAD), jnp.float32).at[0, :n_labels].set(lin_b)

    return dict(c1_w=_stack_taps(conv1_w).astype(jnp.bfloat16),
                c1_b=conv1_b.reshape(1, dim_text),
                blocks=blocks,
                lin_w=lin_w_pad.astype(jnp.bfloat16), lin_b=lin_b_pad,
                paddings=paddings, n_labels=n_labels)


if __name__ == "__main__":
    # flags: text_encoding='char', num_features=71, DIM_text=32, len_sequence=128; 3 labels
    B, LEN_SEQ, NUM_FEATURES, DIM_TEXT, N_LABELS = 2, 128, 71, 32, 3

    key = jax.random.PRNGKey(0)
    k_params, k_data = jax.random.split(key)
    params = build_params(k_params, NUM_FEATURES, DIM_TEXT, N_LABELS, LEN_SEQ)
    x_text = jax.random.uniform(k_data, (B, LEN_SEQ, NUM_FEATURES), jnp.float32)

    out = clf_text_forward(x_text, params)
    out = jax.block_until_ready(out)

    assert out.shape == (B, N_LABELS), out.shape
    assert bool(jnp.all(jnp.isfinite(out))) and bool(jnp.all((out >= 0) & (out <= 1)))
    print("KERNEL_OK")
</pallas_src>

<mosaic_0001>
module attributes {stable_mosaic.version = 11 : i64} {
  func.func @kernel(%arg0: i32, %arg1: memref<1x128x71xf32, #tpu.memory_space<vmem>>, %arg2: memref<284x32xbf16, #tpu.memory_space<vmem>>, %arg3: memref<1x32xf32, #tpu.memory_space<vmem>>, %arg4: memref<1x32xf32, #tpu.memory_space<vmem>>, %arg5: memref<1x32xf32, #tpu.memory_space<vmem>>, %arg6: memref<32x32xbf16, #tpu.memory_space<vmem>>, %arg7: memref<1x32xf32, #tpu.memory_space<vmem>>, %arg8: memref<256x64xbf16, #tpu.memory_space<vmem>>, %arg9: memref<1x64xf32, #tpu.memory_space<vmem>>, %arg10: memref<1x64xf32, #tpu.memory_space<vmem>>, %arg11: memref<1x64xf32, #tpu.memory_space<vmem>>, %arg12: memref<64x64xbf16, #tpu.memory_space<vmem>>, %arg13: memref<1x64xf32, #tpu.memory_space<vmem>>, %arg14: memref<512x96xbf16, #tpu.memory_space<vmem>>, %arg15: memref<1x96xf32, #tpu.memory_space<vmem>>, %arg16: memref<1x96xf32, #tpu.memory_space<vmem>>, %arg17: memref<1x96xf32, #tpu.memory_space<vmem>>, %arg18: memref<96x96xbf16, #tpu.memory_space<vmem>>, %arg19: memref<1x96xf32, #tpu.memory_space<vmem>>, %arg20: memref<768x128xbf16, #tpu.memory_space<vmem>>, %arg21: memref<1x128xf32, #tpu.memory_space<vmem>>, %arg22: memref<1x128xf32, #tpu.memory_space<vmem>>, %arg23: memref<1x128xf32, #tpu.memory_space<vmem>>, %arg24: memref<128x128xbf16, #tpu.memory_space<vmem>>, %arg25: memref<1x128xf32, #tpu.memory_space<vmem>>, %arg26: memref<1024x128xbf16, #tpu.memory_space<vmem>>, %arg27: memref<1x128xf32, #tpu.memory_space<vmem>>, %arg28: memref<1x128xf32, #tpu.memory_space<vmem>>, %arg29: memref<1x128xf32, #tpu.memory_space<vmem>>, %arg30: memref<128x128xbf16, #tpu.memory_space<vmem>>, %arg31: memref<1x128xf32, #tpu.memory_space<vmem>>, %arg32: memref<1024x128xbf16, #tpu.memory_space<vmem>>, %arg33: memref<1x128xf32, #tpu.memory_space<vmem>>, %arg34: memref<1x128xf32, #tpu.memory_space<vmem>>, %arg35: memref<1x128xf32, #tpu.memory_space<vmem>>, %arg36: memref<128x128xbf16, #tpu.memory_space<vmem>>, %arg37: memref<1x128xf32, #tpu.memory_space<vmem>>, %arg38: memref<1024x160xbf16, #tpu.memory_space<vmem>>, %arg39: memref<1x160xf32, #tpu.memory_space<vmem>>, %arg40: memref<160x128xbf16, #tpu.memory_space<vmem>>, %arg41: memref<1x128xf32, #tpu.memory_space<vmem>>, %arg42: memref<1x1x128xf32, #tpu.memory_space<vmem>>) attributes {dimension_semantics = [#tpu.dimension_semantics<parallel>], iteration_bounds = array<i64: 2>, scalar_prefetch = 0 : i64, scratch_operands = 0 : i64, tpu.core_type = #tpu.core_type<tc>, window_params = [{transform_indices = @transform_0, window_bounds = array<i64: 1, 128, 71>}, {pipeline_mode = #tpu.pipeline_mode<synchronous>, transform_indices = @transform_1, window_bounds = array<i64: 284, 32>}, {pipeline_mode = #tpu.pipeline_mode<synchronous>, transform_indices = @transform_2, window_bounds = array<i64: 1, 32>}, {pipeline_mode = #tpu.pipeline_mode<synchronous>, transform_indices = @transform_3, window_bounds = array<i64: 1, 32>}, {pipeline_mode = #tpu.pipeline_mode<synchronous>, transform_indices = @transform_4, window_bounds = array<i64: 1, 32>}, {pipeline_mode = #tpu.pipeline_mode<synchronous>, transform_indices = @transform_5, window_bounds = array<i64: 32, 32>}, {pipeline_mode = #tpu.pipeline_mode<synchronous>, transform_indices = @transform_6, window_bounds = array<i64: 1, 32>}, {pipeline_mode = #tpu.pipeline_mode<synchronous>, transform_indices = @transform_7, window_bounds = array<i64: 256, 64>}, {pipeline_mode = #tpu.pipeline_mode<synchronous>, transform_indices = @transform_8, window_bounds = array<i64: 1, 64>}, {pipeline_mode = #tpu.pipeline_mode<synchronous>, transform_indices = @transform_9, window_bounds = array<i64: 1, 64>}, {pipeline_mode = #tpu.pipeline_mode<synchronous>, transform_indices = @transform_10, window_bounds = array<i64: 1, 64>}, {pipeline_mode = #tpu.pipeline_mode<synchronous>, transform_indices = @transform_11, window_bounds = array<i64: 64, 64>}, {pipeline_mode = #tpu.pipeline_mode<synchronous>, transform_indices = @transform_12, window_bounds = array<i64: 1, 64>}, {pipeline_mode = #tpu.pipeline_mode<synchronous>, transform_indices = @transform_13, window_bounds = array<i64: 512, 96>}, {pipeline_mode = #tpu.pipeline_mode<synchronous>, transform_indices = @transform_14, window_bounds = array<i64: 1, 96>}, {pipeline_mode = #tpu.pipeline_mode<synchronous>, transform_indices = @transform_15, window_bounds = array<i64: 1, 96>}, {pipeline_mode = #tpu.pipeline_mode<synchronous>, transform_indices = @transform_16, window_bounds = array<i64: 1, 96>}, {pipeline_mode = #tpu.pipeline_mode<synchronous>, transform_indices = @transform_17, window_bounds = array<i64: 96, 96>}, {pipeline_mode = #tpu.pipeline_mode<synchronous>, transform_indices = @transform_18, window_bounds = array<i64: 1, 96>}, {pipeline_mode = #tpu.pipeline_mode<synchronous>, transform_indices = @transform_19, window_bounds = array<i64: 768, 128>}, {pipeline_mode = #tpu.pipeline_mode<synchronous>, transform_indices = @transform_20, window_bounds = array<i64: 1, 128>}, {pipeline_mode = #tpu.pipeline_mode<synchronous>, transform_indices = @transform_21, window_bounds = array<i64: 1, 128>}, {pipeline_mode = #tpu.pipeline_mode<synchronous>, transform_indices = @transform_22, window_bounds = array<i64: 1, 128>}, {pipeline_mode = #tpu.pipeline_mode<synchronous>, transform_indices = @transform_23, window_bounds = array<i64: 128, 128>}, {pipeline_mode = #tpu.pipeline_mode<synchronous>, transform_indices = @transform_24, window_bounds = array<i64: 1, 128>}, {pipeline_mode = #tpu.pipeline_mode<synchronous>, transform_indices = @transform_25, window_bounds = array<i64: 1024, 128>}, {pipeline_mode = #tpu.pipeline_mode<synchronous>, transform_indices = @transform_26, window_bounds = array<i64: 1, 128>}, {pipeline_mode = #tpu.pipeline_mode<synchronous>, transform_indices = @transform_27, window_bounds = array<i64: 1, 128>}, {pipeline_mode = #tpu.pipeline_mode<synchronous>, transform_indices = @transform_28, window_bounds = array<i64: 1, 128>}, {pipeline_mode = #tpu.pipeline_mode<synchronous>, transform_indices = @transform_29, window_bounds = array<i64: 128, 128>}, {pipeline_mode = #tpu.pipeline_mode<synchronous>, transform_indices = @transform_30, window_bounds = array<i64: 1, 128>}, {pipeline_mode = #tpu.pipeline_mode<synchronous>, transform_indices = @transform_31, window_bounds = array<i64: 1024, 128>}, {pipeline_mode = #tpu.pipeline_mode<synchronous>, transform_indices = @transform_32, window_bounds = array<i64: 1, 128>}, {pipeline_mode = #tpu.pipeline_mode<synchronous>, transform_indices = @transform_33, window_bounds = array<i64: 1, 128>}, {pipeline_mode = #tpu.pipeline_mode<synchronous>, transform_indices = @transform_34, window_bounds = array<i64: 1, 128>}, {pipeline_mode = #tpu.pipeline_mode<synchronous>, transform_indices = @transform_35, window_bounds = array<i64: 128, 128>}, {pipeline_mode = #tpu.pipeline_mode<synchronous>, transform_indices = @transform_36, window_bounds = array<i64: 1, 128>}, {pipeline_mode = #tpu.pipeline_mode<synchronous>, transform_indices = @transform_37, window_bounds = array<i64: 1024, 160>}, {pipeline_mode = #tpu.pipeline_mode<synchronous>, transform_indices = @transform_38, window_bounds = array<i64: 1, 160>}, {pipeline_mode = #tpu.pipeline_mode<synchronous>, transform_indices = @transform_39, window_bounds = array<i64: 160, 128>}, {pipeline_mode = #tpu.pipeline_mode<synchronous>, transform_indices = @transform_40, window_bounds = array<i64: 1, 128>}, {transform_indices = @transform_41, window_bounds = array<i64: 1, 1, 128>}]} {
    %c0 = arith.constant 0 : index
    %c0_0 = arith.constant 0 : index
    %c0_1 = arith.constant 0 : index
    %0 = vector.load %arg1[%c0, %c0_0, %c0_1] : memref<1x128x71xf32, #tpu.memory_space<vmem>>, vector<1x128x71xf32>
    %1 = vector.shape_cast %0 : vector<1x128x71xf32> to vector<128x71xf32>
    %2 = tpu.iota {dimensions = array<i32: 0>} : vector<64x128xi32>
    %3 = tpu.iota {dimensions = array<i32: 1>} : vector<64x128xi32>
    %c2_i32 = arith.constant 2 : i32
    %4 = vector.broadcast %c2_i32 : i32 to vector<64x128xi32>
    %5 = arith.muli %4, %2 : vector<64x128xi32>
    %c-1_i32 = arith.constant -1 : i32
    %6 = vector.broadcast %c-1_i32 : i32 to vector<64x128xi32>
    %7 = arith.addi %5, %6 : vector<64x128xi32>
    %8 = arith.cmpi eq, %3, %7 : vector<64x128xi32>
    %9 = arith.extui %8 : vector<64x128xi1> to vector<64x128xi32>
    %10 = arith.sitofp %9 : vector<64x128xi32> to vector<64x128xf32>
    %cst = arith.constant dense<0.000000e+00> : vector<64x71xf32>
    %11 = tpu.matmul %10, %1, %cst {dimension_numbers = #tpu.dot_dimension_numbers<[1], [0], [0], [1], [0, 0, 1, 1], [], []>} : vector<64x128xf32>, vector<128x71xf32>, vector<64x71xf32> -> vector<64x71xf32>
    %c2_i32_2 = arith.constant 2 : i32
    %12 = vector.broadcast %c2_i32_2 : i32 to vector<64x128xi32>
    %13 = arith.muli %12, %2 : vector<64x128xi32>
    %c0_i32 = arith.constant 0 : i32
    %14 = vector.broadcast %c0_i32 : i32 to vector<64x128xi32>
    %15 = arith.addi %13, %14 : vector<64x128xi32>
    %16 = arith.cmpi eq, %3, %15 : vector<64x128xi32>
    %17 = arith.extui %16 : vector<64x128xi1> to vector<64x128xi32>
    %18 = arith.sitofp %17 : vector<64x128xi32> to vector<64x128xf32>
    %cst_3 = arith.constant dense<0.000000e+00> : vector<64x71xf32>
    %19 = tpu.matmul %18, %1, %cst_3 {dimension_numbers = #tpu.dot_dimension_numbers<[1], [0], [0], [1], [0, 0, 1, 1], [], []>} : vector<64x128xf32>, vector<128x71xf32>, vector<64x71xf32> -> vector<64x71xf32>
    %c2_i32_4 = arith.constant 2 : i32
    %20 = vector.broadcast %c2_i32_4 : i32 to vector<64x128xi32>
    %21 = arith.muli %20, %2 : vector<64x128xi32>
    %c1_i32 = arith.constant 1 : i32
    %22 = vector.broadcast %c1_i32 : i32 to vector<64x128xi32>
    %23 = arith.addi %21, %22 : vector<64x128xi32>
    %24 = arith.cmpi eq, %3, %23 : vector<64x128xi32>
    %25 = arith.extui %24 : vector<64x128xi1> to vector<64x128xi32>
    %26 = arith.sitofp %25 : vector<64x128xi32> to vector<64x128xf32>
    %cst_5 = arith.constant dense<0.000000e+00> : vector<64x71xf32>
    %27 = tpu.matmul %26, %1, %cst_5 {dimension_numbers = #tpu.dot_dimension_numbers<[1], [0], [0], [1], [0, 0, 1, 1], [], []>} : vector<64x128xf32>, vector<128x71xf32>, vector<64x71xf32> -> vector<64x71xf32>
    %c2_i32_6 = arith.constant 2 : i32
    %28 = vector.broadcast %c2_i32_6 : i32 to vector<64x128xi32>
    %29 = arith.muli %28, %2 : vector<64x128xi32>
    %c2_i32_7 = arith.constant 2 : i32
    %30 = vector.broadcast %c2_i32_7 : i32 to vector<64x128xi32>
    %31 = arith.addi %29, %30 : vector<64x128xi32>
    %32 = arith.cmpi eq, %3, %31 : vector<64x128xi32>
    %33 = arith.extui %32 : vector<64x128xi1> to vector<64x128xi32>
    %34 = arith.sitofp %33 : vector<64x128xi32> to vector<64x128xf32>
    %cst_8 = arith.constant dense<0.000000e+00> : vector<64x71xf32>
    %35 = tpu.matmul %34, %1, %cst_8 {dimension_numbers = #tpu.dot_dimension_numbers<[1], [0], [0], [1], [0, 0, 1, 1], [], []>} : vector<64x128xf32>, vector<128x71xf32>, vector<64x71xf32> -> vector<64x71xf32>
    %36 = tpu.concatenate %11, %19, %27, %35 in 1 : vector<64x71xf32>, vector<64x71xf32>, vector<64x71xf32>, vector<64x71xf32> -> vector<64x284xf32>
    %37 = arith.truncf %36 : vector<64x284xf32> to vector<64x284xbf16>
    %c0_9 = arith.constant 0 : index
    %c0_10 = arith.constant 0 : index
    %38 = vector.load %arg2[%c0_9, %c0_10] : memref<284x32xbf16, #tpu.memory_space<vmem>>, vector<284x32xbf16>
    %cst_11 = arith.constant dense<0.000000e+00> : vector<64x32xf32>
    %39 = tpu.matmul %37, %38, %cst_11 {dimension_numbers = #tpu.dot_dimension_numbers<[1], [0], [0], [1], [0, 0, 1, 1], [], []>} : vector<64x284xbf16>, vector<284x32xbf16>, vector<64x32xf32> -> vector<64x32xf32>
    %c0_12 = arith.constant 0 : index
    %c0_13 = arith.constant 0 : index
    %40 = vector.load %arg3[%c0_12, %c0_13] : memref<1x32xf32, #tpu.memory_space<vmem>>, vector<1x32xf32>
    %41 = vector.broadcast %40 : vector<1x32xf32> to vector<64x32xf32>
    %42 = arith.addf %39, %41 : vector<64x32xf32>
    %c0_14 = arith.constant 0 : index
    %c0_15 = arith.constant 0 : index
    %43 = vector.load %arg4[%c0_14, %c0_15] : memref<1x32xf32, #tpu.memory_space<vmem>>, vector<1x32xf32>
    %44 = vector.broadcast %43 : vector<1x32xf32> to vector<64x32xf32>
    %45 = arith.mulf %42, %44 : vector<64x32xf32>
    %c0_16 = arith.constant 0 : index
    %c0_17 = arith.constant 0 : index
    %46 = vector.load %arg5[%c0_16, %c0_17] : memref<1x32xf32, #tpu.memory_space<vmem>>, vector<1x32xf32>
    %47 = vector.broadcast %46 : vector<1x32xf32> to vector<64x32xf32>
    %48 = arith.addf %45, %47 : vector<64x32xf32>
    %cst_18 = arith.constant 0.000000e+00 : f32
    %49 = vector.broadcast %cst_18 : f32 to vector<64x32xf32>
    %50 = arith.maximumf %48, %49 : vector<64x32xf32>
    %51 = arith.truncf %50 : vector<64x32xf32> to vector<64x32xbf16>
    %c0_19 = arith.constant 0 : index
    %c0_20 = arith.constant 0 : index
    %52 = vector.load %arg6[%c0_19, %c0_20] : memref<32x32xbf16, #tpu.memory_space<vmem>>, vector<32x32xbf16>
    %cst_21 = arith.constant dense<0.000000e+00> : vector<64x32xf32>
    %53 = tpu.matmul %51, %52, %cst_21 {dimension_numbers = #tpu.dot_dimension_numbers<[1], [0], [0], [1], [0, 0, 1, 1], [], []>} : vector<64x32xbf16>, vector<32x32xbf16>, vector<64x32xf32> -> vector<64x32xf32>
    %c0_22 = arith.constant 0 : index
    %c0_23 = arith.constant 0 : index
    %54 = vector.load %arg7[%c0_22, %c0_23] : memref<1x32xf32, #tpu.memory_space<vmem>>, vector<1x32xf32>
    %55 = vector.broadcast %54 : vector<1x32xf32> to vector<64x32xf32>
    %56 = arith.addf %53, %55 : vector<64x32xf32>
    %cst_24 = arith.constant 0.000000e+00 : f32
    %57 = vector.broadcast %cst_24 : f32 to vector<64x32xf32>
    %58 = arith.maximumf %56, %57 : vector<64x32xf32>
    %59 = tpu.iota {dimensions = array<i32: 0>} : vector<32x64xi32>
    %60 = tpu.iota {dimensions = array<i32: 1>} : vector<32x64xi32>
    %c2_i32_25 = arith.constant 2 : i32
    %61 = vector.broadcast %c2_i32_25 : i32 to vector<32x64xi32>
    %62 = arith.muli %61, %59 : vector<32x64xi32>
    %c-1_i32_26 = arith.constant -1 : i32
    %63 = vector.broadcast %c-1_i32_26 : i32 to vector<32x64xi32>
    %64 = arith.addi %62, %63 : vector<32x64xi32>
    %65 = arith.cmpi eq, %60, %64 : vector<32x64xi32>
    %66 = arith.extui %65 : vector<32x64xi1> to vector<32x64xi32>
    %67 = arith.sitofp %66 : vector<32x64xi32> to vector<32x64xf32>
    %cst_27 = arith.constant dense<0.000000e+00> : vector<32x32xf32>
    %68 = tpu.matmul %67, %42, %cst_27 {dimension_numbers = #tpu.dot_dimension_numbers<[1], [0], [0], [1], [0, 0, 1, 1], [], []>} : vector<32x64xf32>, vector<64x32xf32>, vector<32x32xf32> -> vector<32x32xf32>
    %c2_i32_28 = arith.constant 2 : i32
    %69 = vector.broadcast %c2_i32_28 : i32 to vector<32x64xi32>
    %70 = arith.muli %69, %59 : vector<32x64xi32>
    %c0_i32_29 = arith.constant 0 : i32
    %71 = vector.broadcast %c0_i32_29 : i32 to vector<32x64xi32>
    %72 = arith.addi %70, %71 : vector<32x64xi32>
    %73 = arith.cmpi eq, %60, %72 : vector<32x64xi32>
    %74 = arith.extui %73 : vector<32x64xi1> to vector<32x64xi32>
    %75 = arith.sitofp %74 : vector<32x64xi32> to vector<32x64xf32>
    %cst_30 = arith.constant dense<0.000000e+00> : vector<32x32xf32>
    %76 = tpu.matmul %75, %42, %cst_30 {dimension_numbers = #tpu.dot_dimension_numbers<[1], [0], [0], [1], [0, 0, 1, 1], [], []>} : vector<32x64xf32>, vector<64x32xf32>, vector<32x32xf32> -> vector<32x32xf32>
    %c2_i32_31 = arith.constant 2 : i32
    %77 = vector.broadcast %c2_i32_31 : i32 to vector<32x64xi32>
    %78 = arith.muli %77, %59 : vector<32x64xi32>
    %c1_i32_32 = arith.constant 1 : i32
    %79 = vector.broadcast %c1_i32_32 : i32 to vector<32x64xi32>
    %80 = arith.addi %78, %79 : vector<32x64xi32>
    %81 = arith.cmpi eq, %60, %80 : vector<32x64xi32>
    %82 = arith.extui %81 : vector<32x64xi1> to vector<32x64xi32>
    %83 = arith.sitofp %82 : vector<32x64xi32> to vector<32x64xf32>
    %cst_33 = arith.constant dense<0.000000e+00> : vector<32x32xf32>
    %84 = tpu.matmul %83, %42, %cst_33 {dimension_numbers = #tpu.dot_dimension_numbers<[1], [0], [0], [1], [0, 0, 1, 1], [], []>} : vector<32x64xf32>, vector<64x32xf32>, vector<32x32xf32> -> vector<32x32xf32>
    %c2_i32_34 = arith.constant 2 : i32
    %85 = vector.broadcast %c2_i32_34 : i32 to vector<32x64xi32>
    %86 = arith.muli %85, %59 : vector<32x64xi32>
    %c2_i32_35 = arith.constant 2 : i32
    %87 = vector.broadcast %c2_i32_35 : i32 to vector<32x64xi32>
    %88 = arith.addi %86, %87 : vector<32x64xi32>
    %89 = arith.cmpi eq, %60, %88 : vector<32x64xi32>
    %90 = arith.extui %89 : vector<32x64xi1> to vector<32x64xi32>
    %91 = arith.sitofp %90 : vector<32x64xi32> to vector<32x64xf32>
    %cst_36 = arith.constant dense<0.000000e+00> : vector<32x32xf32>
    %92 = tpu.matmul %91, %42, %cst_36 {dimension_numbers = #tpu.dot_dimension_numbers<[1], [0], [0], [1], [0, 0, 1, 1], [], []>} : vector<32x64xf32>, vector<64x32xf32>, vector<32x32xf32> -> vector<32x32xf32>
    %93 = tpu.iota {dimensions = array<i32: 0>} : vector<32x64xi32>
    %94 = tpu.iota {dimensions = array<i32: 1>} : vector<32x64xi32>
    %c2_i32_37 = arith.constant 2 : i32
    %95 = vector.broadcast %c2_i32_37 : i32 to vector<32x64xi32>
    %96 = arith.muli %95, %93 : vector<32x64xi32>
    %c-1_i32_38 = arith.constant -1 : i32
    %97 = vector.broadcast %c-1_i32_38 : i32 to vector<32x64xi32>
    %98 = arith.addi %96, %97 : vector<32x64xi32>
    %99 = arith.cmpi eq, %94, %98 : vector<32x64xi32>
    %100 = arith.extui %99 : vector<32x64xi1> to vector<32x64xi32>
    %101 = arith.sitofp %100 : vector<32x64xi32> to vector<32x64xf32>
    %cst_39 = arith.constant dense<0.000000e+00> : vector<32x32xf32>
    %102 = tpu.matmul %101, %58, %cst_39 {dimension_numbers = #tpu.dot_dimension_numbers<[1], [0], [0], [1], [0, 0, 1, 1], [], []>} : vector<32x64xf32>, vector<64x32xf32>, vector<32x32xf32> -> vector<32x32xf32>
    %c2_i32_40 = arith.constant 2 : i32
    %103 = vector.broadcast %c2_i32_40 : i32 to vector<32x64xi32>
    %104 = arith.muli %103, %93 : vector<32x64xi32>
    %c0_i32_41 = arith.constant 0 : i32
    %105 = vector.broadcast %c0_i32_41 : i32 to vector<32x64xi32>
    %106 = arith.addi %104, %105 : vector<32x64xi32>
    %107 = arith.cmpi eq, %94, %106 : vector<32x64xi32>
    %108 = arith.extui %107 : vector<32x64xi1> to vector<32x64xi32>
    %109 = arith.sitofp %108 : vector<32x64xi32> to vector<32x64xf32>
    %cst_42 = arith.constant dense<0.000000e+00> : vector<32x32xf32>
    %110 = tpu.matmul %109, %58, %cst_42 {dimension_numbers = #tpu.dot_dimension_numbers<[1], [0], [0], [1], [0, 0, 1, 1], [], []>} : vector<32x64xf32>, vector<64x32xf32>, vector<32x32xf32> -> vector<32x32xf32>
    %c2_i32_43 = arith.constant 2 : i32
    %111 = vector.broadcast %c2_i32_43 : i32 to vector<32x64xi32>
    %112 = arith.muli %111, %93 : vector<32x64xi32>
    %c1_i32_44 = arith.constant 1 : i32
    %113 = vector.broadcast %c1_i32_44 : i32 to vector<32x64xi32>
    %114 = arith.addi %112, %113 : vector<32x64xi32>
    %115 = arith.cmpi eq, %94, %114 : vector<32x64xi32>
    %116 = arith.extui %115 : vector<32x64xi1> to vector<32x64xi32>
    %117 = arith.sitofp %116 : vector<32x64xi32> to vector<32x64xf32>
    %cst_45 = arith.constant dense<0.000000e+00> : vector<32x32xf32>
    %118 = tpu.matmul %117, %58, %cst_45 {dimension_numbers = #tpu.dot_dimension_numbers<[1], [0], [0], [1], [0, 0, 1, 1], [], []>} : vector<32x64xf32>, vector<64x32xf32>, vector<32x32xf32> -> vector<32x32xf32>
    %c2_i32_46 = arith.constant 2 : i32
    %119 = vector.broadcast %c2_i32_46 : i32 to vector<32x64xi32>
    %120 = arith.muli %119, %93 : vector<32x64xi32>
    %c2_i32_47 = arith.constant 2 : i32
    %121 = vector.broadcast %c2_i32_47 : i32 to vector<32x64xi32>
    %122 = arith.addi %120, %121 : vector<32x64xi32>
    %123 = arith.cmpi eq, %94, %122 : vector<32x64xi32>
    %124 = arith.extui %123 : vector<32x64xi1> to vector<32x64xi32>
    %125 = arith.sitofp %124 : vector<32x64xi32> to vector<32x64xf32>
    %cst_48 = arith.constant dense<0.000000e+00> : vector<32x32xf32>
    %126 = tpu.matmul %125, %58, %cst_48 {dimension_numbers = #tpu.dot_dimension_numbers<[1], [0], [0], [1], [0, 0, 1, 1], [], []>} : vector<32x64xf32>, vector<64x32xf32>, vector<32x32xf32> -> vector<32x32xf32>
    %127 = tpu.concatenate %68, %76, %84, %92, %102, %110, %118, %126 in 1 : vector<32x32xf32>, vector<32x32xf32>, vector<32x32xf32>, vector<32x32xf32>, vector<32x32xf32>, vector<32x32xf32>, vector<32x32xf32>, vector<32x32xf32> -> vector<32x256xf32>
    %128 = arith.truncf %127 : vector<32x256xf32> to vector<32x256xbf16>
    %c0_49 = arith.constant 0 : index
    %c0_50 = arith.constant 0 : index
    %129 = vector.load %arg8[%c0_49, %c0_50] : memref<256x64xbf16, #tpu.memory_space<vmem>>, vector<256x64xbf16>
    %cst_51 = arith.constant dense<0.000000e+00> : vector<32x64xf32>
    %130 = tpu.matmul %128, %129, %cst_51 {dimension_numbers = #tpu.dot_dimension_numbers<[1], [0], [0], [1], [0, 0, 1, 1], [], []>} : vector<32x256xbf16>, vector<256x64xbf16>, vector<32x64xf32> -> vector<32x64xf32>
    %c0_52 = arith.constant 0 : index
    %c0_53 = arith.constant 0 : index
    %131 = vector.load %arg9[%c0_52, %c0_53] : memref<1x64xf32, #tpu.memory_space<vmem>>, vector<1x64xf32>
    %132 = vector.broadcast %131 : vector<1x64xf32> to vector<32x64xf32>
    %133 = arith.addf %130, %132 : vector<32x64xf32>
    %c0_54 = arith.constant 0 : index
    %c0_55 = arith.constant 0 : index
    %134 = vector.load %arg10[%c0_54, %c0_55] : memref<1x64xf32, #tpu.memory_space<vmem>>, vector<1x64xf32>
    %135 = vector.broadcast %134 : vector<1x64xf32> to vector<32x64xf32>
    %136 = arith.mulf %133, %135 : vector<32x64xf32>
    %c0_56 = arith.constant 0 : index
    %c0_57 = arith.constant 0 : index
    %137 = vector.load %arg11[%c0_56, %c0_57] : memref<1x64xf32, #tpu.memory_space<vmem>>, vector<1x64xf32>
    %138 = vector.broadcast %137 : vector<1x64xf32> to vector<32x64xf32>
    %139 = arith.addf %136, %138 : vector<32x64xf32>
    %cst_58 = arith.constant 0.000000e+00 : f32
    %140 = vector.broadcast %cst_58 : f32 to vector<32x64xf32>
    %141 = arith.maximumf %139, %140 : vector<32x64xf32>
    %142 = arith.truncf %141 : vector<32x64xf32> to vector<32x64xbf16>
    %c0_59 = arith.constant 0 : index
    %c0_60 = arith.constant 0 : index
    %143 = vector.load %arg12[%c0_59, %c0_60] : memref<64x64xbf16, #tpu.memory_space<vmem>>, vector<64x64xbf16>
    %cst_61 = arith.constant dense<0.000000e+00> : vector<32x64xf32>
    %144 = tpu.matmul %142, %143, %cst_61 {dimension_numbers = #tpu.dot_dimension_numbers<[1], [0], [0], [1], [0, 0, 1, 1], [], []>} : vector<32x64xbf16>, vector<64x64xbf16>, vector<32x64xf32> -> vector<32x64xf32>
    %c0_62 = arith.constant 0 : index
    %c0_63 = arith.constant 0 : index
    %145 = vector.load %arg13[%c0_62, %c0_63] : memref<1x64xf32, #tpu.memory_space<vmem>>, vector<1x64xf32>
    %146 = vector.broadcast %145 : vector<1x64xf32> to vector<32x64xf32>
    %147 = arith.addf %144, %146 : vector<32x64xf32>
    %cst_64 = arith.constant 0.000000e+00 : f32
    %148 = vector.broadcast %cst_64 : f32 to vector<32x64xf32>
    %149 = arith.maximumf %147, %148 : vector<32x64xf32>
    %150 = tpu.iota {dimensions = array<i32: 0>} : vector<16x32xi32>
    %151 = tpu.iota {dimensions = array<i32: 1>} : vector<16x32xi32>
    %c2_i32_65 = arith.constant 2 : i32
    %152 = vector.broadcast %c2_i32_65 : i32 to vector<16x32xi32>
    %153 = arith.muli %152, %150 : vector<16x32xi32>
    %c-1_i32_66 = arith.constant -1 : i32
    %154 = vector.broadcast %c-1_i32_66 : i32 to vector<16x32xi32>
    %155 = arith.addi %153, %154 : vector<16x32xi32>
    %156 = arith.cmpi eq, %151, %155 : vector<16x32xi32>
    %157 = arith.extui %156 : vector<16x32xi1> to vector<16x32xi32>
    %158 = arith.sitofp %157 : vector<16x32xi32> to vector<16x32xf32>
    %cst_67 = arith.constant dense<0.000000e+00> : vector<16x64xf32>
    %159 = tpu.matmul %158, %133, %cst_67 {dimension_numbers = #tpu.dot_dimension_numbers<[1], [0], [0], [1], [0, 0, 1, 1], [], []>} : vector<16x32xf32>, vector<32x64xf32>, vector<16x64xf32> -> vector<16x64xf32>
    %c2_i32_68 = arith.constant 2 : i32
    %160 = vector.broadcast %c2_i32_68 : i32 to vector<16x32xi32>
    %161 = arith.muli %160, %150 : vector<16x32xi32>
    %c0_i32_69 = arith.constant 0 : i32
    %162 = vector.broadcast %c0_i32_69 : i32 to vector<16x32xi32>
    %163 = arith.addi %161, %162 : vector<16x32xi32>
    %164 = arith.cmpi eq, %151, %163 : vector<16x32xi32>
    %165 = arith.extui %164 : vector<16x32xi1> to vector<16x32xi32>
    %166 = arith.sitofp %165 : vector<16x32xi32> to vector<16x32xf32>
    %cst_70 = arith.constant dense<0.000000e+00> : vector<16x64xf32>
    %167 = tpu.matmul %166, %133, %cst_70 {dimension_numbers = #tpu.dot_dimension_numbers<[1], [0], [0], [1], [0, 0, 1, 1], [], []>} : vector<16x32xf32>, vector<32x64xf32>, vector<16x64xf32> -> vector<16x64xf32>
    %c2_i32_71 = arith.constant 2 : i32
    %168 = vector.broadcast %c2_i32_71 : i32 to vector<16x32xi32>
    %169 = arith.muli %168, %150 : vector<16x32xi32>
    %c1_i32_72 = arith.constant 1 : i32
    %170 = vector.broadcast %c1_i32_72 : i32 to vector<16x32xi32>
    %171 = arith.addi %169, %170 : vector<16x32xi32>
    %172 = arith.cmpi eq, %151, %171 : vector<16x32xi32>
    %173 = arith.extui %172 : vector<16x32xi1> to vector<16x32xi32>
    %174 = arith.sitofp %173 : vector<16x32xi32> to vector<16x32xf32>
    %cst_73 = arith.constant dense<0.000000e+00> : vector<16x64xf32>
    %175 = tpu.matmul %174, %133, %cst_73 {dimension_numbers = #tpu.dot_dimension_numbers<[1], [0], [0], [1], [0, 0, 1, 1], [], []>} : vector<16x32xf32>, vector<32x64xf32>, vector<16x64xf32> -> vector<16x64xf32>
    %c2_i32_74 = arith.constant 2 : i32
    %176 = vector.broadcast %c2_i32_74 : i32 to vector<16x32xi32>
    %177 = arith.muli %176, %150 : vector<16x32xi32>
    %c2_i32_75 = arith.constant 2 : i32
    %178 = vector.broadcast %c2_i32_75 : i32 to vector<16x32xi32>
    %179 = arith.addi %177, %178 : vector<16x32xi32>
    %180 = arith.cmpi eq, %151, %179 : vector<16x32xi32>
    %181 = arith.extui %180 : vector<16x32xi1> to vector<16x32xi32>
    %182 = arith.sitofp %181 : vector<16x32xi32> to vector<16x32xf32>
    %cst_76 = arith.constant dense<0.000000e+00> : vector<16x64xf32>
    %183 = tpu.matmul %182, %133, %cst_76 {dimension_numbers = #tpu.dot_dimension_numbers<[1], [0], [0], [1], [0, 0, 1, 1], [], []>} : vector<16x32xf32>, vector<32x64xf32>, vector<16x64xf32> -> vector<16x64xf32>
    %184 = tpu.iota {dimensions = array<i32: 0>} : vector<16x32xi32>
    %185 = tpu.iota {dimensions = array<i32: 1>} : vector<16x32xi32>
    %c2_i32_77 = arith.constant 2 : i32
    %186 = vector.broadcast %c2_i32_77 : i32 to vector<16x32xi32>
    %187 = arith.muli %186, %184 : vector<16x32xi32>
    %c-1_i32_78 = arith.constant -1 : i32
    %188 = vector.broadcast %c-1_i32_78 : i32 to vector<16x32xi32>
    %189 = arith.addi %187, %188 : vector<16x32xi32>
    %190 = arith.cmpi eq, %185, %189 : vector<16x32xi32>
    %191 = arith.extui %190 : vector<16x32xi1> to vector<16x32xi32>
    %192 = arith.sitofp %191 : vector<16x32xi32> to vector<16x32xf32>
    %cst_79 = arith.constant dense<0.000000e+00> : vector<16x64xf32>
    %193 = tpu.matmul %192, %149, %cst_79 {dimension_numbers = #tpu.dot_dimension_numbers<[1], [0], [0], [1], [0, 0, 1, 1], [], []>} : vector<16x32xf32>, vector<32x64xf32>, vector<16x64xf32> -> vector<16x64xf32>
    %c2_i32_80 = arith.constant 2 : i32
    %194 = vector.broadcast %c2_i32_80 : i32 to vector<16x32xi32>
    %195 = arith.muli %194, %184 : vector<16x32xi32>
    %c0_i32_81 = arith.constant 0 : i32
    %196 = vector.broadcast %c0_i32_81 : i32 to vector<16x32xi32>
    %197 = arith.addi %195, %196 : vector<16x32xi32>
    %198 = arith.cmpi eq, %185, %197 : vector<16x32xi32>
    %199 = arith.extui %198 : vector<16x32xi1> to vector<16x32xi32>
    %200 = arith.sitofp %199 : vector<16x32xi32> to vector<16x32xf32>
    %cst_82 = arith.constant dense<0.000000e+00> : vector<16x64xf32>
    %201 = tpu.matmul %200, %149, %cst_82 {dimension_numbers = #tpu.dot_dimension_numbers<[1], [0], [0], [1], [0, 0, 1, 1], [], []>} : vector<16x32xf32>, vector<32x64xf32>, vector<16x64xf32> -> vector<16x64xf32>
    %c2_i32_83 = arith.constant 2 : i32
    %202 = vector.broadcast %c2_i32_83 : i32 to vector<16x32xi32>
    %203 = arith.muli %202, %184 : vector<16x32xi32>
    %c1_i32_84 = arith.constant 1 : i32
    %204 = vector.broadcast %c1_i32_84 : i32 to vector<16x32xi32>
    %205 = arith.addi %203, %204 : vector<16x32xi32>
    %206 = arith.cmpi eq, %185, %205 : vector<16x32xi32>
    %207 = arith.extui %206 : vector<16x32xi1> to vector<16x32xi32>
    %208 = arith.sitofp %207 : vector<16x32xi32> to vector<16x32xf32>
    %cst_85 = arith.constant dense<0.000000e+00> : vector<16x64xf32>
    %209 = tpu.matmul %208, %149, %cst_85 {dimension_numbers = #tpu.dot_dimension_numbers<[1], [0], [0], [1], [0, 0, 1, 1], [], []>} : vector<16x32xf32>, vector<32x64xf32>, vector<16x64xf32> -> vector<16x64xf32>
    %c2_i32_86 = arith.constant 2 : i32
    %210 = vector.broadcast %c2_i32_86 : i32 to vector<16x32xi32>
    %211 = arith.muli %210, %184 : vector<16x32xi32>
    %c2_i32_87 = arith.constant 2 : i32
    %212 = vector.broadcast %c2_i32_87 : i32 to vector<16x32xi32>
    %213 = arith.addi %211, %212 : vector<16x32xi32>
    %214 = arith.cmpi eq, %185, %213 : vector<16x32xi32>
    %215 = arith.extui %214 : vector<16x32xi1> to vector<16x32xi32>
    %216 = arith.sitofp %215 : vector<16x32xi32> to vector<16x32xf32>
    %cst_88 = arith.constant dense<0.000000e+00> : vector<16x64xf32>
    %217 = tpu.matmul %216, %149, %cst_88 {dimension_numbers = #tpu.dot_dimension_numbers<[1], [0], [0], [1], [0, 0, 1, 1], [], []>} : vector<16x32xf32>, vector<32x64xf32>, vector<16x64xf32> -> vector<16x64xf32>
    %218 = tpu.concatenate %159, %167, %175, %183, %193, %201, %209, %217 in 1 : vector<16x64xf32>, vector<16x64xf32>, vector<16x64xf32>, vector<16x64xf32>, vector<16x64xf32>, vector<16x64xf32>, vector<16x64xf32>, vector<16x64xf32> -> vector<16x512xf32>
    %219 = arith.truncf %218 : vector<16x512xf32> to vector<16x512xbf16>
    %c0_89 = arith.constant 0 : index
    %c0_90 = arith.constant 0 : index
    %220 = vector.load %arg14[%c0_89, %c0_90] : memref<512x96xbf16, #tpu.memory_space<vmem>>, vector<512x96xbf16>
    %cst_91 = arith.constant dense<0.000000e+00> : vector<16x96xf32>
    %221 = tpu.matmul %219, %220, %cst_91 {dimension_numbers = #tpu.dot_dimension_numbers<[1], [0], [0], [1], [0, 0, 1, 1], [], []>} : vector<16x512xbf16>, vector<512x96xbf16>, vector<16x96xf32> -> vector<16x96xf32>
    %c0_92 = arith.constant 0 : index
    %c0_93 = arith.constant 0 : index
    %222 = vector.load %arg15[%c0_92, %c0_93] : memref<1x96xf32, #tpu.memory_space<vmem>>, vector<1x96xf32>
    %223 = vector.broadcast %222 : vector<1x96xf32> to vector<16x96xf32>
    %224 = arith.addf %221, %223 : vector<16x96xf32>
    %c0_94 = arith.constant 0 : index
    %c0_95 = arith.constant 0 : index
    %225 = vector.load %arg16[%c0_94, %c0_95] : memref<1x96xf32, #tpu.memory_space<vmem>>, vector<1x96xf32>
    %226 = vector.broadcast %225 : vector<1x96xf32> to vector<16x96xf32>
    %227 = arith.mulf %224, %226 : vector<16x96xf32>
    %c0_96 = arith.constant 0 : index
    %c0_97 = arith.constant 0 : index
    %228 = vector.load %arg17[%c0_96, %c0_97] : memref<1x96xf32, #tpu.memory_space<vmem>>, vector<1x96xf32>
    %229 = vector.broadcast %228 : vector<1x96xf32> to vector<16x96xf32>
    %230 = arith.addf %227, %229 : vector<16x96xf32>
    %cst_98 = arith.constant 0.000000e+00 : f32
    %231 = vector.broadcast %cst_98 : f32 to vector<16x96xf32>
    %232 = arith.maximumf %230, %231 : vector<16x96xf32>
    %233 = arith.truncf %232 : vector<16x96xf32> to vector<16x96xbf16>
    %c0_99 = arith.constant 0 : index
    %c0_100 = arith.constant 0 : index
    %234 = vector.load %arg18[%c0_99, %c0_100] : memref<96x96xbf16, #tpu.memory_space<vmem>>, vector<96x96xbf16>
    %cst_101 = arith.constant dense<0.000000e+00> : vector<16x96xf32>
    %235 = tpu.matmul %233, %234, %cst_101 {dimension_numbers = #tpu.dot_dimension_numbers<[1], [0], [0], [1], [0, 0, 1, 1], [], []>} : vector<16x96xbf16>, vector<96x96xbf16>, vector<16x96xf32> -> vector<16x96xf32>
    %c0_102 = arith.constant 0 : index
    %c0_103 = arith.constant 0 : index
    %236 = vector.load %arg19[%c0_102, %c0_103] : memref<1x96xf32, #tpu.memory_space<vmem>>, vector<1x96xf32>
    %237 = vector.broadcast %236 : vector<1x96xf32> to vector<16x96xf32>
    %238 = arith.addf %235, %237 : vector<16x96xf32>
    %cst_104 = arith.constant 0.000000e+00 : f32
    %239 = vector.broadcast %cst_104 : f32 to vector<16x96xf32>
    %240 = arith.maximumf %238, %239 : vector<16x96xf32>
    %241 = tpu.iota {dimensions = array<i32: 0>} : vector<8x16xi32>
    %242 = tpu.iota {dimensions = array<i32: 1>} : vector<8x16xi32>
    %c2_i32_105 = arith.constant 2 : i32
    %243 = vector.broadcast %c2_i32_105 : i32 to vector<8x16xi32>
    %244 = arith.muli %243, %241 : vector<8x16xi32>
    %c-1_i32_106 = arith.constant -1 : i32
    %245 = vector.broadcast %c-1_i32_106 : i32 to vector<8x16xi32>
    %246 = arith.addi %244, %245 : vector<8x16xi32>
    %247 = arith.cmpi eq, %242, %246 : vector<8x16xi32>
    %248 = arith.extui %247 : vector<8x16xi1> to vector<8x16xi32>
    %249 = arith.sitofp %248 : vector<8x16xi32> to vector<8x16xf32>
    %cst_107 = arith.constant dense<0.000000e+00> : vector<8x96xf32>
    %250 = tpu.matmul %249, %224, %cst_107 {dimension_numbers = #tpu.dot_dimension_numbers<[1], [0], [0], [1], [0, 0, 1, 1], [], []>} : vector<8x16xf32>, vector<16x96xf32>, vector<8x96xf32> -> vector<8x96xf32>
    %c2_i32_108 = arith.constant 2 : i32
    %251 = vector.broadcast %c2_i32_108 : i32 to vector<8x16xi32>
    %252 = arith.muli %251, %241 : vector<8x16xi32>
    %c0_i32_109 = arith.constant 0 : i32
    %253 = vector.broadcast %c0_i32_109 : i32 to vector<8x16xi32>
    %254 = arith.addi %252, %253 : vector<8x16xi32>
    %255 = arith.cmpi eq, %242, %254 : vector<8x16xi32>
    %256 = arith.extui %255 : vector<8x16xi1> to vector<8x16xi32>
    %257 = arith.sitofp %256 : vector<8x16xi32> to vector<8x16xf32>
    %cst_110 = arith.constant dense<0.000000e+00> : vector<8x96xf32>
    %258 = tpu.matmul %257, %224, %cst_110 {dimension_numbers = #tpu.dot_dimension_numbers<[1], [0], [0], [1], [0, 0, 1, 1], [], []>} : vector<8x16xf32>, vector<16x96xf32>, vector<8x96xf32> -> vector<8x96xf32>
    %c2_i32_111 = arith.constant 2 : i32
    %259 = vector.broadcast %c2_i32_111 : i32 to vector<8x16xi32>
    %260 = arith.muli %259, %241 : vector<8x16xi32>
    %c1_i32_112 = arith.constant 1 : i32
    %261 = vector.broadcast %c1_i32_112 : i32 to vector<8x16xi32>
    %262 = arith.addi %260, %261 : vector<8x16xi32>
    %263 = arith.cmpi eq, %242, %262 : vector<8x16xi32>
    %264 = arith.extui %263 : vector<8x16xi1> to vector<8x16xi32>
    %265 = arith.sitofp %264 : vector<8x16xi32> to vector<8x16xf32>
    %cst_113 = arith.constant dense<0.000000e+00> : vector<8x96xf32>
    %266 = tpu.matmul %265, %224, %cst_113 {dimension_numbers = #tpu.dot_dimension_numbers<[1], [0], [0], [1], [0, 0, 1, 1], [], []>} : vector<8x16xf32>, vector<16x96xf32>, vector<8x96xf32> -> vector<8x96xf32>
    %c2_i32_114 = arith.constant 2 : i32
    %267 = vector.broadcast %c2_i32_114 : i32 to vector<8x16xi32>
    %268 = arith.muli %267, %241 : vector<8x16xi32>
    %c2_i32_115 = arith.constant 2 : i32
    %269 = vector.broadcast %c2_i32_115 : i32 to vector<8x16xi32>
    %270 = arith.addi %268, %269 : vector<8x16xi32>
    %271 = arith.cmpi eq, %242, %270 : vector<8x16xi32>
    %272 = arith.extui %271 : vector<8x16xi1> to vector<8x16xi32>
    %273 = arith.sitofp %272 : vector<8x16xi32> to vector<8x16xf32>
    %cst_116 = arith.constant dense<0.000000e+00> : vector<8x96xf32>
    %274 = tpu.matmul %273, %224, %cst_116 {dimension_numbers = #tpu.dot_dimension_numbers<[1], [0], [0], [1], [0, 0, 1, 1], [], []>} : vector<8x16xf32>, vector<16x96xf32>, vector<8x96xf32> -> vector<8x96xf32>
    %275 = tpu.iota {dimensions = array<i32: 0>} : vector<8x16xi32>
    %276 = tpu.iota {dimensions = array<i32: 1>} : vector<8x16xi32>
    %c2_i32_117 = arith.constant 2 : i32
    %277 = vector.broadcast %c2_i32_117 : i32 to vector<8x16xi32>
    %278 = arith.muli %277, %275 : vector<8x16xi32>
    %c-1_i32_118 = arith.constant -1 : i32
    %279 = vector.broadcast %c-1_i32_118 : i32 to vector<8x16xi32>
    %280 = arith.addi %278, %279 : vector<8x16xi32>
    %281 = arith.cmpi eq, %276, %280 : vector<8x16xi32>
    %282 = arith.extui %281 : vector<8x16xi1> to vector<8x16xi32>
    %283 = arith.sitofp %282 : vector<8x16xi32> to vector<8x16xf32>
    %cst_119 = arith.constant dense<0.000000e+00> : vector<8x96xf32>
    %284 = tpu.matmul %283, %240, %cst_119 {dimension_numbers = #tpu.dot_dimension_numbers<[1], [0], [0], [1], [0, 0, 1, 1], [], []>} : vector<8x16xf32>, vector<16x96xf32>, vector<8x96xf32> -> vector<8x96xf32>
    %c2_i32_120 = arith.constant 2 : i32
    %285 = vector.broadcast %c2_i32_120 : i32 to vector<8x16xi32>
    %286 = arith.muli %285, %275 : vector<8x16xi32>
    %c0_i32_121 = arith.constant 0 : i32
    %287 = vector.broadcast %c0_i32_121 : i32 to vector<8x16xi32>
    %288 = arith.addi %286, %287 : vector<8x16xi32>
    %289 = arith.cmpi eq, %276, %288 : vector<8x16xi32>
    %290 = arith.extui %289 : vector<8x16xi1> to vector<8x16xi32>
    %291 = arith.sitofp %290 : vector<8x16xi32> to vector<8x16xf32>
    %cst_122 = arith.constant dense<0.000000e+00> : vector<8x96xf32>
    %292 = tpu.matmul %291, %240, %cst_122 {dimension_numbers = #tpu.dot_dimension_numbers<[1], [0], [0], [1], [0, 0, 1, 1], [], []>} : vector<8x16xf32>, vector<16x96xf32>, vector<8x96xf32> -> vector<8x96xf32>
    %c2_i32_123 = arith.constant 2 : i32
    %293 = vector.broadcast %c2_i32_123 : i32 to vector<8x16xi32>
    %294 = arith.muli %293, %275 : vector<8x16xi32>
    %c1_i32_124 = arith.constant 1 : i32
    %295 = vector.broadcast %c1_i32_124 : i32 to vector<8x16xi32>
    %296 = arith.addi %294, %295 : vector<8x16xi32>
    %297 = arith.cmpi eq, %276, %296 : vector<8x16xi32>
    %298 = arith.extui %297 : vector<8x16xi1> to vector<8x16xi32>
    %299 = arith.sitofp %298 : vector<8x16xi32> to vector<8x16xf32>
    %cst_125 = arith.constant dense<0.000000e+00> : vector<8x96xf32>
    %300 = tpu.matmul %299, %240, %cst_125 {dimension_numbers = #tpu.dot_dimension_numbers<[1], [0], [0], [1], [0, 0, 1, 1], [], []>} : vector<8x16xf32>, vector<16x96xf32>, vector<8x96xf32> -> vector<8x96xf32>
    %c2_i32_126 = arith.constant 2 : i32
    %301 = vector.broadcast %c2_i32_126 : i32 to vector<8x16xi32>
    %302 = arith.muli %301, %275 : vector<8x16xi32>
    %c2_i32_127 = arith.constant 2 : i32
    %303 = vector.broadcast %c2_i32_127 : i32 to vector<8x16xi32>
    %304 = arith.addi %302, %303 : vector<8x16xi32>
    %305 = arith.cmpi eq, %276, %304 : vector<8x16xi32>
    %306 = arith.extui %305 : vector<8x16xi1> to vector<8x16xi32>
    %307 = arith.sitofp %306 : vector<8x16xi32> to vector<8x16xf32>
    %cst_128 = arith.constant dense<0.000000e+00> : vector<8x96xf32>
    %308 = tpu.matmul %307, %240, %cst_128 {dimension_numbers = #tpu.dot_dimension_numbers<[1], [0], [0], [1], [0, 0, 1, 1], [], []>} : vector<8x16xf32>, vector<16x96xf32>, vector<8x96xf32> -> vector<8x96xf32>
    %309 = tpu.concatenate %250, %258, %266, %274, %284, %292, %300, %308 in 1 : vector<8x96xf32>, vector<8x96xf32>, vector<8x96xf32>, vector<8x96xf32>, vector<8x96xf32>, vector<8x96xf32>, vector<8x96xf32>, vector<8x96xf32> -> vector<8x768xf32>
    %310 = arith.truncf %309 : vector<8x768xf32> to vector<8x768xbf16>
    %c0_129 = arith.constant 0 : index
    %c0_130 = arith.constant 0 : index
    %311 = vector.load %arg20[%c0_129, %c0_130] : memref<768x128xbf16, #tpu.memory_space<vmem>>, vector<768x128xbf16>
    %cst_131 = arith.constant dense<0.000000e+00> : vector<8x128xf32>
    %312 = tpu.matmul %310, %311, %cst_131 {dimension_numbers = #tpu.dot_dimension_numbers<[1], [0], [0], [1], [0, 0, 1, 1], [], []>} : vector<8x768xbf16>, vector<768x128xbf16>, vector<8x128xf32> -> vector<8x128xf32>
    %c0_132 = arith.constant 0 : index
    %c0_133 = arith.constant 0 : index
    %313 = vector.load %arg21[%c0_132, %c0_133] : memref<1x128xf32, #tpu.memory_space<vmem>>, vector<1x128xf32>
    %314 = vector.broadcast %313 : vector<1x128xf32> to vector<8x128xf32>
    %315 = arith.addf %312, %314 : vector<8x128xf32>
    %c0_134 = arith.constant 0 : index
    %c0_135 = arith.constant 0 : index
    %316 = vector.load %arg22[%c0_134, %c0_135] : memref<1x128xf32, #tpu.memory_space<vmem>>, vector<1x128xf32>
    %317 = vector.broadcast %316 : vector<1x128xf32> to vector<8x128xf32>
    %318 = arith.mulf %315, %317 : vector<8x128xf32>
    %c0_136 = arith.constant 0 : index
    %c0_137 = arith.constant 0 : index
    %319 = vector.load %arg23[%c0_136, %c0_137] : memref<1x128xf32, #tpu.memory_space<vmem>>, vector<1x128xf32>
    %320 = vector.broadcast %319 : vector<1x128xf32> to vector<8x128xf32>
    %321 = arith.addf %318, %320 : vector<8x128xf32>
    %cst_138 = arith.constant 0.000000e+00 : f32
    %322 = vector.broadcast %cst_138 : f32 to vector<8x128xf32>
    %323 = arith.maximumf %321, %322 : vector<8x128xf32>
    %324 = arith.truncf %323 : vector<8x128xf32> to vector<8x128xbf16>
    %c0_139 = arith.constant 0 : index
    %c0_140 = arith.constant 0 : index
    %325 = vector.load %arg24[%c0_139, %c0_140] : memref<128x128xbf16, #tpu.memory_space<vmem>>, vector<128x128xbf16>
    %cst_141 = arith.constant dense<0.000000e+00> : vector<8x128xf32>
    %326 = tpu.matmul %324, %325, %cst_141 {dimension_numbers = #tpu.dot_dimension_numbers<[1], [0], [0], [1], [0, 0, 1, 1], [], []>} : vector<8x128xbf16>, vector<128x128xbf16>, vector<8x128xf32> -> vector<8x128xf32>
    %c0_142 = arith.constant 0 : index
    %c0_143 = arith.constant 0 : index
    %327 = vector.load %arg25[%c0_142, %c0_143] : memref<1x128xf32, #tpu.memory_space<vmem>>, vector<1x128xf32>
    %328 = vector.broadcast %327 : vector<1x128xf32> to vector<8x128xf32>
    %329 = arith.addf %326, %328 : vector<8x128xf32>
    %cst_144 = arith.constant 0.000000e+00 : f32
    %330 = vector.broadcast %cst_144 : f32 to vector<8x128xf32>
    %331 = arith.maximumf %329, %330 : vector<8x128xf32>
    %332 = tpu.iota {dimensions = array<i32: 0>} : vector<4x8xi32>
    %333 = tpu.iota {dimensions = array<i32: 1>} : vector<4x8xi32>
    %c2_i32_145 = arith.constant 2 : i32
    %334 = vector.broadcast %c2_i32_145 : i32 to vector<4x8xi32>
    %335 = arith.muli %334, %332 : vector<4x8xi32>
    %c-1_i32_146 = arith.constant -1 : i32
    %336 = vector.broadcast %c-1_i32_146 : i32 to vector<4x8xi32>
    %337 = arith.addi %335, %336 : vector<4x8xi32>
    %338 = arith.cmpi eq, %333, %337 : vector<4x8xi32>
    %339 = arith.extui %338 : vector<4x8xi1> to vector<4x8xi32>
    %340 = arith.sitofp %339 : vector<4x8xi32> to vector<4x8xf32>
    %cst_147 = arith.constant dense<0.000000e+00> : vector<4x128xf32>
    %341 = tpu.matmul %340, %315, %cst_147 {dimension_numbers = #tpu.dot_dimension_numbers<[1], [0], [0], [1], [0, 0, 1, 1], [], []>} : vector<4x8xf32>, vector<8x128xf32>, vector<4x128xf32> -> vector<4x128xf32>
    %c2_i32_148 = arith.constant 2 : i32
    %342 = vector.broadcast %c2_i32_148 : i32 to vector<4x8xi32>
    %343 = arith.muli %342, %332 : vector<4x8xi32>
    %c0_i32_149 = arith.constant 0 : i32
    %344 = vector.broadcast %c0_i32_149 : i32 to vector<4x8xi32>
    %345 = arith.addi %343, %344 : vector<4x8xi32>
    %346 = arith.cmpi eq, %333, %345 : vector<4x8xi32>
    %347 = arith.extui %346 : vector<4x8xi1> to vector<4x8xi32>
    %348 = arith.sitofp %347 : vector<4x8xi32> to vector<4x8xf32>
    %cst_150 = arith.constant dense<0.000000e+00> : vector<4x128xf32>
    %349 = tpu.matmul %348, %315, %cst_150 {dimension_numbers = #tpu.dot_dimension_numbers<[1], [0], [0], [1], [0, 0, 1, 1], [], []>} : vector<4x8xf32>, vector<8x128xf32>, vector<4x128xf32> -> vector<4x128xf32>
    %c2_i32_151 = arith.constant 2 : i32
    %350 = vector.broadcast %c2_i32_151 : i32 to vector<4x8xi32>
    %351 = arith.muli %350, %332 : vector<4x8xi32>
    %c1_i32_152 = arith.constant 1 : i32
    %352 = vector.broadcast %c1_i32_152 : i32 to vector<4x8xi32>
    %353 = arith.addi %351, %352 : vector<4x8xi32>
    %354 = arith.cmpi eq, %333, %353 : vector<4x8xi32>
    %355 = arith.extui %354 : vector<4x8xi1> to vector<4x8xi32>
    %356 = arith.sitofp %355 : vector<4x8xi32> to vector<4x8xf32>
    %cst_153 = arith.constant dense<0.000000e+00> : vector<4x128xf32>
    %357 = tpu.matmul %356, %315, %cst_153 {dimension_numbers = #tpu.dot_dimension_numbers<[1], [0], [0], [1], [0, 0, 1, 1], [], []>} : vector<4x8xf32>, vector<8x128xf32>, vector<4x128xf32> -> vector<4x128xf32>
    %c2_i32_154 = arith.constant 2 : i32
    %358 = vector.broadcast %c2_i32_154 : i32 to vector<4x8xi32>
    %359 = arith.muli %358, %332 : vector<4x8xi32>
    %c2_i32_155 = arith.constant 2 : i32
    %360 = vector.broadcast %c2_i32_155 : i32 to vector<4x8xi32>
    %361 = arith.addi %359, %360 : vector<4x8xi32>
    %362 = arith.cmpi eq, %333, %361 : vector<4x8xi32>
    %363 = arith.extui %362 : vector<4x8xi1> to vector<4x8xi32>
    %364 = arith.sitofp %363 : vector<4x8xi32> to vector<4x8xf32>
    %cst_156 = arith.constant dense<0.000000e+00> : vector<4x128xf32>
    %365 = tpu.matmul %364, %315, %cst_156 {dimension_numbers = #tpu.dot_dimension_numbers<[1], [0], [0], [1], [0, 0, 1, 1], [], []>} : vector<4x8xf32>, vector<8x128xf32>, vector<4x128xf32> -> vector<4x128xf32>
    %366 = tpu.iota {dimensions = array<i32: 0>} : vector<4x8xi32>
    %367 = tpu.iota {dimensions = array<i32: 1>} : vector<4x8xi32>
    %c2_i32_157 = arith.constant 2 : i32
    %368 = vector.broadcast %c2_i32_157 : i32 to vector<4x8xi32>
    %369 = arith.muli %368, %366 : vector<4x8xi32>
    %c-1_i32_158 = arith.constant -1 : i32
    %370 = vector.broadcast %c-1_i32_158 : i32 to vector<4x8xi32>
    %371 = arith.addi %369, %370 : vector<4x8xi32>
    %372 = arith.cmpi eq, %367, %371 : vector<4x8xi32>
    %373 = arith.extui %372 : vector<4x8xi1> to vector<4x8xi32>
    %374 = arith.sitofp %373 : vector<4x8xi32> to vector<4x8xf32>
    %cst_159 = arith.constant dense<0.000000e+00> : vector<4x128xf32>
    %375 = tpu.matmul %374, %331, %cst_159 {dimension_numbers = #tpu.dot_dimension_numbers<[1], [0], [0], [1], [0, 0, 1, 1], [], []>} : vector<4x8xf32>, vector<8x128xf32>, vector<4x128xf32> -> vector<4x128xf32>
    %c2_i32_160 = arith.constant 2 : i32
    %376 = vector.broadcast %c2_i32_160 : i32 to vector<4x8xi32>
    %377 = arith.muli %376, %366 : vector<4x8xi32>
    %c0_i32_161 = arith.constant 0 : i32
    %378 = vector.broadcast %c0_i32_161 : i32 to vector<4x8xi32>
    %379 = arith.addi %377, %378 : vector<4x8xi32>
    %380 = arith.cmpi eq, %367, %379 : vector<4x8xi32>
    %381 = arith.extui %380 : vector<4x8xi1> to vector<4x8xi32>
    %382 = arith.sitofp %381 : vector<4x8xi32> to vector<4x8xf32>
    %cst_162 = arith.constant dense<0.000000e+00> : vector<4x128xf32>
    %383 = tpu.matmul %382, %331, %cst_162 {dimension_numbers = #tpu.dot_dimension_numbers<[1], [0], [0], [1], [0, 0, 1, 1], [], []>} : vector<4x8xf32>, vector<8x128xf32>, vector<4x128xf32> -> vector<4x128xf32>
    %c2_i32_163 = arith.constant 2 : i32
    %384 = vector.broadcast %c2_i32_163 : i32 to vector<4x8xi32>
    %385 = arith.muli %384, %366 : vector<4x8xi32>
    %c1_i32_164 = arith.constant 1 : i32
    %386 = vector.broadcast %c1_i32_164 : i32 to vector<4x8xi32>
    %387 = arith.addi %385, %386 : vector<4x8xi32>
    %388 = arith.cmpi eq, %367, %387 : vector<4x8xi32>
    %389 = arith.extui %388 : vector<4x8xi1> to vector<4x8xi32>
    %390 = arith.sitofp %389 : vector<4x8xi32> to vector<4x8xf32>
    %cst_165 = arith.constant dense<0.000000e+00> : vector<4x128xf32>
    %391 = tpu.matmul %390, %331, %cst_165 {dimension_numbers = #tpu.dot_dimension_numbers<[1], [0], [0], [1], [0, 0, 1, 1], [], []>} : vector<4x8xf32>, vector<8x128xf32>, vector<4x128xf32> -> vector<4x128xf32>
    %c2_i32_166 = arith.constant 2 : i32
    %392 = vector.broadcast %c2_i32_166 : i32 to vector<4x8xi32>
    %393 = arith.muli %392, %366 : vector<4x8xi32>
    %c2_i32_167 = arith.constant 2 : i32
    %394 = vector.broadcast %c2_i32_167 : i32 to vector<4x8xi32>
    %395 = arith.addi %393, %394 : vector<4x8xi32>
    %396 = arith.cmpi eq, %367, %395 : vector<4x8xi32>
    %397 = arith.extui %396 : vector<4x8xi1> to vector<4x8xi32>
    %398 = arith.sitofp %397 : vector<4x8xi32> to vector<4x8xf32>
    %cst_168 = arith.constant dense<0.000000e+00> : vector<4x128xf32>
    %399 = tpu.matmul %398, %331, %cst_168 {dimension_numbers = #tpu.dot_dimension_numbers<[1], [0], [0], [1], [0, 0, 1, 1], [], []>} : vector<4x8xf32>, vector<8x128xf32>, vector<4x128xf32> -> vector<4x128xf32>
    %400 = tpu.concatenate %341, %349, %357, %365, %375, %383, %391, %399 in 1 : vector<4x128xf32>, vector<4x128xf32>, vector<4x128xf32>, vector<4x128xf32>, vector<4x128xf32>, vector<4x128xf32>, vector<4x128xf32>, vector<4x128xf32> -> vector<4x1024xf32>
    %401 = arith.truncf %400 : vector<4x1024xf32> to vector<4x1024xbf16>
    %c0_169 = arith.constant 0 : index
    %c0_170 = arith.constant 0 : index
    %402 = vector.load %arg26[%c0_169, %c0_170] : memref<1024x128xbf16, #tpu.memory_space<vmem>>, vector<1024x128xbf16>
    %cst_171 = arith.constant dense<0.000000e+00> : vector<4x128xf32>
    %403 = tpu.matmul %401, %402, %cst_171 {dimension_numbers = #tpu.dot_dimension_numbers<[1], [0], [0], [1], [0, 0, 1, 1], [], []>} : vector<4x1024xbf16>, vector<1024x128xbf16>, vector<4x128xf32> -> vector<4x128xf32>
    %c0_172 = arith.constant 0 : index
    %c0_173 = arith.constant 0 : index
    %404 = vector.load %arg27[%c0_172, %c0_173] : memref<1x128xf32, #tpu.memory_space<vmem>>, vector<1x128xf32>
    %405 = vector.broadcast %404 : vector<1x128xf32> to vector<4x128xf32>
    %406 = arith.addf %403, %405 : vector<4x128xf32>
    %c0_174 = arith.constant 0 : index
    %c0_175 = arith.constant 0 : index
    %407 = vector.load %arg28[%c0_174, %c0_175] : memref<1x128xf32, #tpu.memory_space<vmem>>, vector<1x128xf32>
    %408 = vector.broadcast %407 : vector<1x128xf32> to vector<4x128xf32>
    %409 = arith.mulf %406, %408 : vector<4x128xf32>
    %c0_176 = arith.constant 0 : index
    %c0_177 = arith.constant 0 : index
    %410 = vector.load %arg29[%c0_176, %c0_177] : memref<1x128xf32, #tpu.memory_space<vmem>>, vector<1x128xf32>
    %411 = vector.broadcast %410 : vector<1x128xf32> to vector<4x128xf32>
    %412 = arith.addf %409, %411 : vector<4x128xf32>
    %cst_178 = arith.constant 0.000000e+00 : f32
    %413 = vector.broadcast %cst_178 : f32 to vector<4x128xf32>
    %414 = arith.maximumf %412, %413 : vector<4x128xf32>
    %415 = arith.truncf %414 : vector<4x128xf32> to vector<4x128xbf16>
    %c0_179 = arith.constant 0 : index
    %c0_180 = arith.constant 0 : index
    %416 = vector.load %arg30[%c0_179, %c0_180] : memref<128x128xbf16, #tpu.memory_space<vmem>>, vector<128x128xbf16>
    %cst_181 = arith.constant dense<0.000000e+00> : vector<4x128xf32>
    %417 = tpu.matmul %415, %416, %cst_181 {dimension_numbers = #tpu.dot_dimension_numbers<[1], [0], [0], [1], [0, 0, 1, 1], [], []>} : vector<4x128xbf16>, vector<128x128xbf16>, vector<4x128xf32> -> vector<4x128xf32>
    %c0_182 = arith.constant 0 : index
    %c0_183 = arith.constant 0 : index
    %418 = vector.load %arg31[%c0_182, %c0_183] : memref<1x128xf32, #tpu.memory_space<vmem>>, vector<1x128xf32>
    %419 = vector.broadcast %418 : vector<1x128xf32> to vector<4x128xf32>
    %420 = arith.addf %417, %419 : vector<4x128xf32>
    %cst_184 = arith.constant 0.000000e+00 : f32
    %421 = vector.broadcast %cst_184 : f32 to vector<4x128xf32>
    %422 = arith.maximumf %420, %421 : vector<4x128xf32>
    %423 = tpu.iota {dimensions = array<i32: 0>} : vector<2x4xi32>
    %424 = tpu.iota {dimensions = array<i32: 1>} : vector<2x4xi32>
    %c2_i32_185 = arith.constant 2 : i32
    %425 = vector.broadcast %c2_i32_185 : i32 to vector<2x4xi32>
    %426 = arith.muli %425, %423 : vector<2x4xi32>
    %c-1_i32_186 = arith.constant -1 : i32
    %427 = vector.broadcast %c-1_i32_186 : i32 to vector<2x4xi32>
    %428 = arith.addi %426, %427 : vector<2x4xi32>
    %429 = arith.cmpi eq, %424, %428 : vector<2x4xi32>
    %430 = arith.extui %429 : vector<2x4xi1> to vector<2x4xi32>
    %431 = arith.sitofp %430 : vector<2x4xi32> to vector<2x4xf32>
    %cst_187 = arith.constant dense<0.000000e+00> : vector<2x128xf32>
    %432 = tpu.matmul %431, %406, %cst_187 {dimension_numbers = #tpu.dot_dimension_numbers<[1], [0], [0], [1], [0, 0, 1, 1], [], []>} : vector<2x4xf32>, vector<4x128xf32>, vector<2x128xf32> -> vector<2x128xf32>
    %c2_i32_188 = arith.constant 2 : i32
    %433 = vector.broadcast %c2_i32_188 : i32 to vector<2x4xi32>
    %434 = arith.muli %433, %423 : vector<2x4xi32>
    %c0_i32_189 = arith.constant 0 : i32
    %435 = vector.broadcast %c0_i32_189 : i32 to vector<2x4xi32>
    %436 = arith.addi %434, %435 : vector<2x4xi32>
    %437 = arith.cmpi eq, %424, %436 : vector<2x4xi32>
    %438 = arith.extui %437 : vector<2x4xi1> to vector<2x4xi32>
    %439 = arith.sitofp %438 : vector<2x4xi32> to vector<2x4xf32>
    %cst_190 = arith.constant dense<0.000000e+00> : vector<2x128xf32>
    %440 = tpu.matmul %439, %406, %cst_190 {dimension_numbers = #tpu.dot_dimension_numbers<[1], [0], [0], [1], [0, 0, 1, 1], [], []>} : vector<2x4xf32>, vector<4x128xf32>, vector<2x128xf32> -> vector<2x128xf32>
    %c2_i32_191 = arith.constant 2 : i32
    %441 = vector.broadcast %c2_i32_191 : i32 to vector<2x4xi32>
    %442 = arith.muli %441, %423 : vector<2x4xi32>
    %c1_i32_192 = arith.constant 1 : i32
    %443 = vector.broadcast %c1_i32_192 : i32 to vector<2x4xi32>
    %444 = arith.addi %442, %443 : vector<2x4xi32>
    %445 = arith.cmpi eq, %424, %444 : vector<2x4xi32>
    %446 = arith.extui %445 : vector<2x4xi1> to vector<2x4xi32>
    %447 = arith.sitofp %446 : vector<2x4xi32> to vector<2x4xf32>
    %cst_193 = arith.constant dense<0.000000e+00> : vector<2x128xf32>
    %448 = tpu.matmul %447, %406, %cst_193 {dimension_numbers = #tpu.dot_dimension_numbers<[1], [0], [0], [1], [0, 0, 1, 1], [], []>} : vector<2x4xf32>, vector<4x128xf32>, vector<2x128xf32> -> vector<2x128xf32>
    %c2_i32_194 = arith.constant 2 : i32
    %449 = vector.broadcast %c2_i32_194 : i32 to vector<2x4xi32>
    %450 = arith.muli %449, %423 : vector<2x4xi32>
    %c2_i32_195 = arith.constant 2 : i32
    %451 = vector.broadcast %c2_i32_195 : i32 to vector<2x4xi32>
    %452 = arith.addi %450, %451 : vector<2x4xi32>
    %453 = arith.cmpi eq, %424, %452 : vector<2x4xi32>
    %454 = arith.extui %453 : vector<2x4xi1> to vector<2x4xi32>
    %455 = arith.sitofp %454 : vector<2x4xi32> to vector<2x4xf32>
    %cst_196 = arith.constant dense<0.000000e+00> : vector<2x128xf32>
    %456 = tpu.matmul %455, %406, %cst_196 {dimension_numbers = #tpu.dot_dimension_numbers<[1], [0], [0], [1], [0, 0, 1, 1], [], []>} : vector<2x4xf32>, vector<4x128xf32>, vector<2x128xf32> -> vector<2x128xf32>
    %457 = tpu.iota {dimensions = array<i32: 0>} : vector<2x4xi32>
    %458 = tpu.iota {dimensions = array<i32: 1>} : vector<2x4xi32>
    %c2_i32_197 = arith.constant 2 : i32
    %459 = vector.broadcast %c2_i32_197 : i32 to vector<2x4xi32>
    %460 = arith.muli %459, %457 : vector<2x4xi32>
    %c-1_i32_198 = arith.constant -1 : i32
    %461 = vector.broadcast %c-1_i32_198 : i32 to vector<2x4xi32>
    %462 = arith.addi %460, %461 : vector<2x4xi32>
    %463 = arith.cmpi eq, %458, %462 : vector<2x4xi32>
    %464 = arith.extui %463 : vector<2x4xi1> to vector<2x4xi32>
    %465 = arith.sitofp %464 : vector<2x4xi32> to vector<2x4xf32>
    %cst_199 = arith.constant dense<0.000000e+00> : vector<2x128xf32>
    %466 = tpu.matmul %465, %422, %cst_199 {dimension_numbers = #tpu.dot_dimension_numbers<[1], [0], [0], [1], [0, 0, 1, 1], [], []>} : vector<2x4xf32>, vector<4x128xf32>, vector<2x128xf32> -> vector<2x128xf32>
    %c2_i32_200 = arith.constant 2 : i32
    %467 = vector.broadcast %c2_i32_200 : i32 to vector<2x4xi32>
    %468 = arith.muli %467, %457 : vector<2x4xi32>
    %c0_i32_201 = arith.constant 0 : i32
    %469 = vector.broadcast %c0_i32_201 : i32 to vector<2x4xi32>
    %470 = arith.addi %468, %469 : vector<2x4xi32>
    %471 = arith.cmpi eq, %458, %470 : vector<2x4xi32>
    %472 = arith.extui %471 : vector<2x4xi1> to vector<2x4xi32>
    %473 = arith.sitofp %472 : vector<2x4xi32> to vector<2x4xf32>
    %cst_202 = arith.constant dense<0.000000e+00> : vector<2x128xf32>
    %474 = tpu.matmul %473, %422, %cst_202 {dimension_numbers = #tpu.dot_dimension_numbers<[1], [0], [0], [1], [0, 0, 1, 1], [], []>} : vector<2x4xf32>, vector<4x128xf32>, vector<2x128xf32> -> vector<2x128xf32>
    %c2_i32_203 = arith.constant 2 : i32
    %475 = vector.broadcast %c2_i32_203 : i32 to vector<2x4xi32>
    %476 = arith.muli %475, %457 : vector<2x4xi32>
    %c1_i32_204 = arith.constant 1 : i32
    %477 = vector.broadcast %c1_i32_204 : i32 to vector<2x4xi32>
    %478 = arith.addi %476, %477 : vector<2x4xi32>
    %479 = arith.cmpi eq, %458, %478 : vector<2x4xi32>
    %480 = arith.extui %479 : vector<2x4xi1> to vector<2x4xi32>
    %481 = arith.sitofp %480 : vector<2x4xi32> to vector<2x4xf32>
    %cst_205 = arith.constant dense<0.000000e+00> : vector<2x128xf32>
    %482 = tpu.matmul %481, %422, %cst_205 {dimension_numbers = #tpu.dot_dimension_numbers<[1], [0], [0], [1], [0, 0, 1, 1], [], []>} : vector<2x4xf32>, vector<4x128xf32>, vector<2x128xf32> -> vector<2x128xf32>
    %c2_i32_206 = arith.constant 2 : i32
    %483 = vector.broadcast %c2_i32_206 : i32 to vector<2x4xi32>
    %484 = arith.muli %483, %457 : vector<2x4xi32>
    %c2_i32_207 = arith.constant 2 : i32
    %485 = vector.broadcast %c2_i32_207 : i32 to vector<2x4xi32>
    %486 = arith.addi %484, %485 : vector<2x4xi32>
    %487 = arith.cmpi eq, %458, %486 : vector<2x4xi32>
    %488 = arith.extui %487 : vector<2x4xi1> to vector<2x4xi32>
    %489 = arith.sitofp %488 : vector<2x4xi32> to vector<2x4xf32>
    %cst_208 = arith.constant dense<0.000000e+00> : vector<2x128xf32>
    %490 = tpu.matmul %489, %422, %cst_208 {dimension_numbers = #tpu.dot_dimension_numbers<[1], [0], [0], [1], [0, 0, 1, 1], [], []>} : vector<2x4xf32>, vector<4x128xf32>, vector<2x128xf32> -> vector<2x128xf32>
    %491 = tpu.concatenate %432, %440, %448, %456, %466, %474, %482, %490 in 1 : vector<2x128xf32>, vector<2x128xf32>, vector<2x128xf32>, vector<2x128xf32>, vector<2x128xf32>, vector<2x128xf32>, vector<2x128xf32>, vector<2x128xf32> -> vector<2x1024xf32>
    %492 = arith.truncf %491 : vector<2x1024xf32> to vector<2x1024xbf16>
    %c0_209 = arith.constant 0 : index
    %c0_210 = arith.constant 0 : index
    %493 = vector.load %arg32[%c0_209, %c0_210] : memref<1024x128xbf16, #tpu.memory_space<vmem>>, vector<1024x128xbf16>
    %cst_211 = arith.constant dense<0.000000e+00> : vector<2x128xf32>
    %494 = tpu.matmul %492, %493, %cst_211 {dimension_numbers = #tpu.dot_dimension_numbers<[1], [0], [0], [1], [0, 0, 1, 1], [], []>} : vector<2x1024xbf16>, vector<1024x128xbf16>, vector<2x128xf32> -> vector<2x128xf32>
    %c0_212 = arith.constant 0 : index
    %c0_213 = arith.constant 0 : index
    %495 = vector.load %arg33[%c0_212, %c0_213] : memref<1x128xf32, #tpu.memory_space<vmem>>, vector<1x128xf32>
    %496 = vector.broadcast %495 : vector<1x128xf32> to vector<2x128xf32>
    %497 = arith.addf %494, %496 : vector<2x128xf32>
    %c0_214 = arith.constant 0 : index
    %c0_215 = arith.constant 0 : index
    %498 = vector.load %arg34[%c0_214, %c0_215] : memref<1x128xf32, #tpu.memory_space<vmem>>, vector<1x128xf32>
    %499 = vector.broadcast %498 : vector<1x128xf32> to vector<2x128xf32>
    %500 = arith.mulf %497, %499 : vector<2x128xf32>
    %c0_216 = arith.constant 0 : index
    %c0_217 = arith.constant 0 : index
    %501 = vector.load %arg35[%c0_216, %c0_217] : memref<1x128xf32, #tpu.memory_space<vmem>>, vector<1x128xf32>
    %502 = vector.broadcast %501 : vector<1x128xf32> to vector<2x128xf32>
    %503 = arith.addf %500, %502 : vector<2x128xf32>
    %cst_218 = arith.constant 0.000000e+00 : f32
    %504 = vector.broadcast %cst_218 : f32 to vector<2x128xf32>
    %505 = arith.maximumf %503, %504 : vector<2x128xf32>
    %506 = arith.truncf %505 : vector<2x128xf32> to vector<2x128xbf16>
    %c0_219 = arith.constant 0 : index
    %c0_220 = arith.constant 0 : index
    %507 = vector.load %arg36[%c0_219, %c0_220] : memref<128x128xbf16, #tpu.memory_space<vmem>>, vector<128x128xbf16>
    %cst_221 = arith.constant dense<0.000000e+00> : vector<2x128xf32>
    %508 = tpu.matmul %506, %507, %cst_221 {dimension_numbers = #tpu.dot_dimension_numbers<[1], [0], [0], [1], [0, 0, 1, 1], [], []>} : vector<2x128xbf16>, vector<128x128xbf16>, vector<2x128xf32> -> vector<2x128xf32>
    %c0_222 = arith.constant 0 : index
    %c0_223 = arith.constant 0 : index
    %509 = vector.load %arg37[%c0_222, %c0_223] : memref<1x128xf32, #tpu.memory_space<vmem>>, vector<1x128xf32>
    %510 = vector.broadcast %509 : vector<1x128xf32> to vector<2x128xf32>
    %511 = arith.addf %508, %510 : vector<2x128xf32>
    %cst_224 = arith.constant 0.000000e+00 : f32
    %512 = vector.broadcast %cst_224 : f32 to vector<2x128xf32>
    %513 = arith.maximumf %511, %512 : vector<2x128xf32>
    %514 = tpu.iota {dimensions = array<i32: 0>} : vector<1x2xi32>
    %515 = tpu.iota {dimensions = array<i32: 1>} : vector<1x2xi32>
    %c2_i32_225 = arith.constant 2 : i32
    %516 = vector.broadcast %c2_i32_225 : i32 to vector<1x2xi32>
    %517 = arith.muli %516, %514 : vector<1x2xi32>
    %c-1_i32_226 = arith.constant -1 : i32
    %518 = vector.broadcast %c-1_i32_226 : i32 to vector<1x2xi32>
    %519 = arith.addi %517, %518 : vector<1x2xi32>
    %520 = arith.cmpi eq, %515, %519 : vector<1x2xi32>
    %521 = arith.extui %520 : vector<1x2xi1> to vector<1x2xi32>
    %522 = arith.sitofp %521 : vector<1x2xi32> to vector<1x2xf32>
    %cst_227 = arith.constant dense<0.000000e+00> : vector<1x128xf32>
    %523 = tpu.matmul %522, %497, %cst_227 {dimension_numbers = #tpu.dot_dimension_numbers<[1], [0], [0], [1], [0, 0, 1, 1], [], []>} : vector<1x2xf32>, vector<2x128xf32>, vector<1x128xf32> -> vector<1x128xf32>
    %c2_i32_228 = arith.constant 2 : i32
    %524 = vector.broadcast %c2_i32_228 : i32 to vector<1x2xi32>
    %525 = arith.muli %524, %514 : vector<1x2xi32>
    %c0_i32_229 = arith.constant 0 : i32
    %526 = vector.broadcast %c0_i32_229 : i32 to vector<1x2xi32>
    %527 = arith.addi %525, %526 : vector<1x2xi32>
    %528 = arith.cmpi eq, %515, %527 : vector<1x2xi32>
    %529 = arith.extui %528 : vector<1x2xi1> to vector<1x2xi32>
    %530 = arith.sitofp %529 : vector<1x2xi32> to vector<1x2xf32>
    %cst_230 = arith.constant dense<0.000000e+00> : vector<1x128xf32>
    %531 = tpu.matmul %530, %497, %cst_230 {dimension_numbers = #tpu.dot_dimension_numbers<[1], [0], [0], [1], [0, 0, 1, 1], [], []>} : vector<1x2xf32>, vector<2x128xf32>, vector<1x128xf32> -> vector<1x128xf32>
    %c2_i32_231 = arith.constant 2 : i32
    %532 = vector.broadcast %c2_i32_231 : i32 to vector<1x2xi32>
    %533 = arith.muli %532, %514 : vector<1x2xi32>
    %c1_i32_232 = arith.constant 1 : i32
    %534 = vector.broadcast %c1_i32_232 : i32 to vector<1x2xi32>
    %535 = arith.addi %533, %534 : vector<1x2xi32>
    %536 = arith.cmpi eq, %515, %535 : vector<1x2xi32>
    %537 = arith.extui %536 : vector<1x2xi1> to vector<1x2xi32>
    %538 = arith.sitofp %537 : vector<1x2xi32> to vector<1x2xf32>
    %cst_233 = arith.constant dense<0.000000e+00> : vector<1x128xf32>
    %539 = tpu.matmul %538, %497, %cst_233 {dimension_numbers = #tpu.dot_dimension_numbers<[1], [0], [0], [1], [0, 0, 1, 1], [], []>} : vector<1x2xf32>, vector<2x128xf32>, vector<1x128xf32> -> vector<1x128xf32>
    %c2_i32_234 = arith.constant 2 : i32
    %540 = vector.broadcast %c2_i32_234 : i32 to vector<1x2xi32>
    %541 = arith.muli %540, %514 : vector<1x2xi32>
    %c2_i32_235 = arith.constant 2 : i32
    %542 = vector.broadcast %c2_i32_235 : i32 to vector<1x2xi32>
    %543 = arith.addi %541, %542 : vector<1x2xi32>
    %544 = arith.cmpi eq, %515, %543 : vector<1x2xi32>
    %545 = arith.extui %544 : vector<1x2xi1> to vector<1x2xi32>
    %546 = arith.sitofp %545 : vector<1x2xi32> to vector<1x2xf32>
    %cst_236 = arith.constant dense<0.000000e+00> : vector<1x128xf32>
    %547 = tpu.matmul %546, %497, %cst_236 {dimension_numbers = #tpu.dot_dimension_numbers<[1], [0], [0], [1], [0, 0, 1, 1], [], []>} : vector<1x2xf32>, vector<2x128xf32>, vector<1x128xf32> -> vector<1x128xf32>
    %548 = tpu.iota {dimensions = array<i32: 0>} : vector<1x2xi32>
    %549 = tpu.iota {dimensions = array<i32: 1>} : vector<1x2xi32>
    %c2_i32_237 = arith.constant 2 : i32
    %550 = vector.broadcast %c2_i32_237 : i32 to vector<1x2xi32>
    %551 = arith.muli %550, %548 : vector<1x2xi32>
    %c-1_i32_238 = arith.constant -1 : i32
    %552 = vector.broadcast %c-1_i32_238 : i32 to vector<1x2xi32>
    %553 = arith.addi %551, %552 : vector<1x2xi32>
    %554 = arith.cmpi eq, %549, %553 : vector<1x2xi32>
    %555 = arith.extui %554 : vector<1x2xi1> to vector<1x2xi32>
    %556 = arith.sitofp %555 : vector<1x2xi32> to vector<1x2xf32>
    %cst_239 = arith.constant dense<0.000000e+00> : vector<1x128xf32>
    %557 = tpu.matmul %556, %513, %cst_239 {dimension_numbers = #tpu.dot_dimension_numbers<[1], [0], [0], [1], [0, 0, 1, 1], [], []>} : vector<1x2xf32>, vector<2x128xf32>, vector<1x128xf32> -> vector<1x128xf32>
    %c2_i32_240 = arith.constant 2 : i32
    %558 = vector.broadcast %c2_i32_240 : i32 to vector<1x2xi32>
    %559 = arith.muli %558, %548 : vector<1x2xi32>
    %c0_i32_241 = arith.constant 0 : i32
    %560 = vector.broadcast %c0_i32_241 : i32 to vector<1x2xi32>
    %561 = arith.addi %559, %560 : vector<1x2xi32>
    %562 = arith.cmpi eq, %549, %561 : vector<1x2xi32>
    %563 = arith.extui %562 : vector<1x2xi1> to vector<1x2xi32>
    %564 = arith.sitofp %563 : vector<1x2xi32> to vector<1x2xf32>
    %cst_242 = arith.constant dense<0.000000e+00> : vector<1x128xf32>
    %565 = tpu.matmul %564, %513, %cst_242 {dimension_numbers = #tpu.dot_dimension_numbers<[1], [0], [0], [1], [0, 0, 1, 1], [], []>} : vector<1x2xf32>, vector<2x128xf32>, vector<1x128xf32> -> vector<1x128xf32>
    %c2_i32_243 = arith.constant 2 : i32
    %566 = vector.broadcast %c2_i32_243 : i32 to vector<1x2xi32>
    %567 = arith.muli %566, %548 : vector<1x2xi32>
    %c1_i32_244 = arith.constant 1 : i32
    %568 = vector.broadcast %c1_i32_244 : i32 to vector<1x2xi32>
    %569 = arith.addi %567, %568 : vector<1x2xi32>
    %570 = arith.cmpi eq, %549, %569 : vector<1x2xi32>
    %571 = arith.extui %570 : vector<1x2xi1> to vector<1x2xi32>
    %572 = arith.sitofp %571 : vector<1x2xi32> to vector<1x2xf32>
    %cst_245 = arith.constant dense<0.000000e+00> : vector<1x128xf32>
    %573 = tpu.matmul %572, %513, %cst_245 {dimension_numbers = #tpu.dot_dimension_numbers<[1], [0], [0], [1], [0, 0, 1, 1], [], []>} : vector<1x2xf32>, vector<2x128xf32>, vector<1x128xf32> -> vector<1x128xf32>
    %c2_i32_246 = arith.constant 2 : i32
    %574 = vector.broadcast %c2_i32_246 : i32 to vector<1x2xi32>
    %575 = arith.muli %574, %548 : vector<1x2xi32>
    %c2_i32_247 = arith.constant 2 : i32
    %576 = vector.broadcast %c2_i32_247 : i32 to vector<1x2xi32>
    %577 = arith.addi %575, %576 : vector<1x2xi32>
    %578 = arith.cmpi eq, %549, %577 : vector<1x2xi32>
    %579 = arith.extui %578 : vector<1x2xi1> to vector<1x2xi32>
    %580 = arith.sitofp %579 : vector<1x2xi32> to vector<1x2xf32>
    %cst_248 = arith.constant dense<0.000000e+00> : vector<1x128xf32>
    %581 = tpu.matmul %580, %513, %cst_248 {dimension_numbers = #tpu.dot_dimension_numbers<[1], [0], [0], [1], [0, 0, 1, 1], [], []>} : vector<1x2xf32>, vector<2x128xf32>, vector<1x128xf32> -> vector<1x128xf32>
    %582 = tpu.concatenate %523, %531, %539, %547, %557, %565, %573, %581 in 1 : vector<1x128xf32>, vector<1x128xf32>, vector<1x128xf32>, vector<1x128xf32>, vector<1x128xf32>, vector<1x128xf32>, vector<1x128xf32>, vector<1x128xf32> -> vector<1x1024xf32>
    %583 = arith.truncf %582 : vector<1x1024xf32> to vector<1x1024xbf16>
    %c0_249 = arith.constant 0 : index
    %c0_250 = arith.constant 0 : index
    %584 = vector.load %arg38[%c0_249, %c0_250] : memref<1024x160xbf16, #tpu.memory_space<vmem>>, vector<1024x160xbf16>
    %cst_251 = arith.constant dense<0.000000e+00> : vector<1x160xf32>
    %585 = tpu.matmul %583, %584, %cst_251 {dimension_numbers = #tpu.dot_dimension_numbers<[1], [0], [0], [1], [0, 0, 1, 1], [], []>} : vector<1x1024xbf16>, vector<1024x160xbf16>, vector<1x160xf32> -> vector<1x160xf32>
    %c0_252 = arith.constant 0 : index
    %c0_253 = arith.constant 0 : index
    %586 = vector.load %arg39[%c0_252, %c0_253] : memref<1x160xf32, #tpu.memory_space<vmem>>, vector<1x160xf32>
    %587 = arith.addf %585, %586 : vector<1x160xf32>
    %588 = arith.truncf %587 : vector<1x160xf32> to vector<1x160xbf16>
    %c0_254 = arith.constant 0 : index
    %c0_255 = arith.constant 0 : index
    %589 = vector.load %arg40[%c0_254, %c0_255] : memref<160x128xbf16, #tpu.memory_space<vmem>>, vector<160x128xbf16>
    %cst_256 = arith.constant dense<0.000000e+00> : vector<1x128xf32>
    %590 = tpu.matmul %588, %589, %cst_256 {dimension_numbers = #tpu.dot_dimension_numbers<[1], [0], [0], [1], [0, 0, 1, 1], [], []>} : vector<1x160xbf16>, vector<160x128xbf16>, vector<1x128xf32> -> vector<1x128xf32>
    %c0_257 = arith.constant 0 : index
    %c0_258 = arith.constant 0 : index
    %591 = vector.load %arg41[%c0_257, %c0_258] : memref<1x128xf32, #tpu.memory_space<vmem>>, vector<1x128xf32>
    %592 = arith.addf %590, %591 : vector<1x128xf32>
    %593 = arith.negf %592 : vector<1x128xf32>
    %594 = math.exp %593 : vector<1x128xf32>
    %cst_259 = arith.constant 1.000000e+00 : f32
    %595 = vector.broadcast %cst_259 : f32 to vector<1x128xf32>
    %596 = arith.addf %595, %594 : vector<1x128xf32>
    %597 = arith.divf %595, %596 : vector<1x128xf32>
    %c0_260 = arith.constant 0 : index
    %c0_261 = arith.constant 0 : index
    %c0_262 = arith.constant 0 : index
    %598 = vector.load %arg42[%c0_260, %c0_261, %c0_262] : memref<1x1x128xf32, #tpu.memory_space<vmem>>, vector<1x1x128xf32>
    %599 = vector.shape_cast %598 : vector<1x1x128xf32> to vector<1x128xf32>
    %600 = vector.shape_cast %597 : vector<1x128xf32> to vector<1x1x128xf32>
    tpu.vector_store %arg42[%c0_260, %c0_261, %c0_262], %600 {strides = array<i32>} : memref<1x1x128xf32, #tpu.memory_space<vmem>>, vector<1x1x128xf32>,
    return
  }
  func.func @transform_0(%arg0: i32) -> (i32, i32, i32) {
    %c0_i32 = arith.constant 0 : i32
    %c0_i32_0 = arith.constant 0 : i32
    %c0_i32_1 = arith.constant 0 : i32
    return %arg0, %c0_i32, %c0_i32_0 : i32, i32, i32
  }
  func.func @transform_1(%arg0: i32) -> (i32, i32) {
    %c0_i32 = arith.constant 0 : i32
    %c0_i32_0 = arith.constant 0 : i32
    %c0_i32_1 = arith.constant 0 : i32
    return %c0_i32, %c0_i32_0 : i32, i32
  }
  func.func @transform_2(%arg0: i32) -> (i32, i32) {
    %c0_i32 = arith.constant 0 : i32
    %c0_i32_0 = arith.constant 0 : i32
    %c0_i32_1 = arith.constant 0 : i32
    return %c0_i32, %c0_i32_0 : i32, i32
  }
  func.func @transform_3(%arg0: i32) -> (i32, i32) {
    %c0_i32 = arith.constant 0 : i32
    %c0_i32_0 = arith.constant 0 : i32
    %c0_i32_1 = arith.constant 0 : i32
    return %c0_i32, %c0_i32_0 : i32, i32
  }
  func.func @transform_4(%arg0: i32) -> (i32, i32) {
    %c0_i32 = arith.constant 0 : i32
    %c0_i32_0 = arith.constant 0 : i32
    %c0_i32_1 = arith.constant 0 : i32
    return %c0_i32, %c0_i32_0 : i32, i32
  }
  func.func @transform_5(%arg0: i32) -> (i32, i32) {
    %c0_i32 = arith.constant 0 : i32
    %c0_i32_0 = arith.constant 0 : i32
    %c0_i32_1 = arith.constant 0 : i32
    return %c0_i32, %c0_i32_0 : i32, i32
  }
  func.func @transform_6(%arg0: i32) -> (i32, i32) {
    %c0_i32 = arith.constant 0 : i32
    %c0_i32_0 = arith.constant 0 : i32
    %c0_i32_1 = arith.constant 0 : i32
    return %c0_i32, %c0_i32_0 : i32, i32
  }
  func.func @transform_7(%arg0: i32) -> (i32, i32) {
    %c0_i32 = arith.constant 0 : i32
    %c0_i32_0 = arith.constant 0 : i32
    %c0_i32_1 = arith.constant 0 : i32
    return %c0_i32, %c0_i32_0 : i32, i32
  }
  func.func @transform_8(%arg0: i32) -> (i32, i32) {
    %c0_i32 = arith.constant 0 : i32
    %c0_i32_0 = arith.constant 0 : i32
    %c0_i32_1 = arith.constant 0 : i32
    return %c0_i32, %c0_i32_0 : i32, i32
  }
  func.func @transform_9(%arg0: i32) -> (i32, i32) {
    %c0_i32 = arith.constant 0 : i32
    %c0_i32_0 = arith.constant 0 : i32
    %c0_i32_1 = arith.constant 0 : i32
    return %c0_i32, %c0_i32_0 : i32, i32
  }
  func.func @transform_10(%arg0: i32) -> (i32, i32) {
    %c0_i32 = arith.constant 0 : i32
    %c0_i32_0 = arith.constant 0 : i32
    %c0_i32_1 = arith.constant 0 : i32
    return %c0_i32, %c0_i32_0 : i32, i32
  }
  func.func @transform_11(%arg0: i32) -> (i32, i32) {
    %c0_i32 = arith.constant 0 : i32
    %c0_i32_0 = arith.constant 0 : i32
    %c0_i32_1 = arith.constant 0 : i32
    return %c0_i32, %c0_i32_0 : i32, i32
  }
  func.func @transform_12(%arg0: i32) -> (i32, i32) {
    %c0_i32 = arith.constant 0 : i32
    %c0_i32_0 = arith.constant 0 : i32
    %c0_i32_1 = arith.constant 0 : i32
    return %c0_i32, %c0_i32_0 : i32, i32
  }
  func.func @transform_13(%arg0: i32) -> (i32, i32) {
    %c0_i32 = arith.constant 0 : i32
    %c0_i32_0 = arith.constant 0 : i32
    %c0_i32_1 = arith.constant 0 : i32
    return %c0_i32, %c0_i32_0 : i32, i32
  }
  func.func @transform_14(%arg0: i32) -> (i32, i32) {
    %c0_i32 = arith.constant 0 : i32
    %c0_i32_0 = arith.constant 0 : i32
    %c0_i32_1 = arith.constant 0 : i32
    return %c0_i32, %c0_i32_0 : i32, i32
  }
  func.func @transform_15(%arg0: i32) -> (i32, i32) {
    %c0_i32 = arith.constant 0 : i32
    %c0_i32_0 = arith.constant 0 : i32
    %c0_i32_1 = arith.constant 0 : i32
    return %c0_i32, %c0_i32_0 : i32, i32
  }
  func.func @transform_16(%arg0: i32) -> (i32, i32) {
    %c0_i32 = arith.constant 0 : i32
    %c0_i32_0 = arith.constant 0 : i32
    %c0_i32_1 = arith.constant 0 : i32
    return %c0_i32, %c0_i32_0 : i32, i32
  }
  func.func @transform_17(%arg0: i32) -> (i32, i32) {
    %c0_i32 = arith.constant 0 : i32
    %c0_i32_0 = arith.constant 0 : i32
    %c0_i32_1 = arith.constant 0 : i32
    return %c0_i32, %c0_i32_0 : i32, i32
  }
  func.func @transform_18(%arg0: i32) -> (i32, i32) {
    %c0_i32 = arith.constant 0 : i32
    %c0_i32_0 = arith.constant 0 : i32
    %c0_i32_1 = arith.constant 0 : i32
    return %c0_i32, %c0_i32_0 : i32, i32
  }
  func.func @transform_19(%arg0: i32) -> (i32, i32) {
    %c0_i32 = arith.constant 0 : i32
    %c0_i32_0 = arith.constant 0 : i32
    %c0_i32_1 = arith.constant 0 : i32
    return %c0_i32, %c0_i32_0 : i32, i32
  }
  func.func @transform_20(%arg0: i32) -> (i32, i32) {
    %c0_i32 = arith.constant 0 : i32
    %c0_i32_0 = arith.constant 0 : i32
    %c0_i32_1 = arith.constant 0 : i32
    return %c0_i32, %c0_i32_0 : i32, i32
  }
  func.func @transform_21(%arg0: i32) -> (i32, i32) {
    %c0_i32 = arith.constant 0 : i32
    %c0_i32_0 = arith.constant 0 : i32
    %c0_i32_1 = arith.constant 0 : i32
    return %c0_i32, %c0_i32_0 : i32, i32
  }
  func.func @transform_22(%arg0: i32) -> (i32, i32) {
    %c0_i32 = arith.constant 0 : i32
    %c0_i32_0 = arith.constant 0 : i32
    %c0_i32_1 = arith.constant 0 : i32
    return %c0_i32, %c0_i32_0 : i32, i32
  }
  func.func @transform_23(%arg0: i32) -> (i32, i32) {
    %c0_i32 = arith.constant 0 : i32
    %c0_i32_0 = arith.constant 0 : i32
    %c0_i32_1 = arith.constant 0 : i32
    return %c0_i32, %c0_i32_0 : i32, i32
  }
  func.func @transform_24(%arg0: i32) -> (i32, i32) {
    %c0_i32 = arith.constant 0 : i32
    %c0_i32_0 = arith.constant 0 : i32
    %c0_i32_1 = arith.constant 0 : i32
    return %c0_i32, %c0_i32_0 : i32, i32
  }
  func.func @transform_25(%arg0: i32) -> (i32, i32) {
    %c0_i32 = arith.constant 0 : i32
    %c0_i32_0 = arith.constant 0 : i32
    %c0_i32_1 = arith.constant 0 : i32
    return %c0_i32, %c0_i32_0 : i32, i32
  }
  func.func @transform_26(%arg0: i32) -> (i32, i32) {
    %c0_i32 = arith.constant 0 : i32
    %c0_i32_0 = arith.constant 0 : i32
    %c0_i32_1 = arith.constant 0 : i32
    return %c0_i32, %c0_i32_0 : i32, i32
  }
  func.func @transform_27(%arg0: i32) -> (i32, i32) {
    %c0_i32 = arith.constant 0 : i32
    %c0_i32_0 = arith.constant 0 : i32
    %c0_i32_1 = arith.constant 0 : i32
    return %c0_i32, %c0_i32_0 : i32, i32
  }
  func.func @transform_28(%arg0: i32) -> (i32, i32) {
    %c0_i32 = arith.constant 0 : i32
    %c0_i32_0 = arith.constant 0 : i32
    %c0_i32_1 = arith.constant 0 : i32
    return %c0_i32, %c0_i32_0 : i32, i32
  }
  func.func @transform_29(%arg0: i32) -> (i32, i32) {
    %c0_i32 = arith.constant 0 : i32
    %c0_i32_0 = arith.constant 0 : i32
    %c0_i32_1 = arith.constant 0 : i32
    return %c0_i32, %c0_i32_0 : i32, i32
  }
  func.func @transform_30(%arg0: i32) -> (i32, i32) {
    %c0_i32 = arith.constant 0 : i32
    %c0_i32_0 = arith.constant 0 : i32
    %c0_i32_1 = arith.constant 0 : i32
    return %c0_i32, %c0_i32_0 : i32, i32
  }
  func.func @transform_31(%arg0: i32) -> (i32, i32) {
    %c0_i32 = arith.constant 0 : i32
    %c0_i32_0 = arith.constant 0 : i32
    %c0_i32_1 = arith.constant 0 : i32
    return %c0_i32, %c0_i32_0 : i32, i32
  }
  func.func @transform_32(%arg0: i32) -> (i32, i32) {
    %c0_i32 = arith.constant 0 : i32
    %c0_i32_0 = arith.constant 0 : i32
    %c0_i32_1 = arith.constant 0 : i32
    return %c0_i32, %c0_i32_0 : i32, i32
  }
  func.func @transform_33(%arg0: i32) -> (i32, i32) {
    %c0_i32 = arith.constant 0 : i32
    %c0_i32_0 = arith.constant 0 : i32
    %c0_i32_1 = arith.constant 0 : i32
    return %c0_i32, %c0_i32_0 : i32, i32
  }
  func.func @transform_34(%arg0: i32) -> (i32, i32) {
    %c0_i32 = arith.constant 0 : i32
    %c0_i32_0 = arith.constant 0 : i32
    %c0_i32_1 = arith.constant 0 : i32
    return %c0_i32, %c0_i32_0 : i32, i32
  }
  func.func @transform_35(%arg0: i32) -> (i32, i32) {
    %c0_i32 = arith.constant 0 : i32
    %c0_i32_0 = arith.constant 0 : i32
    %c0_i32_1 = arith.constant 0 : i32
    return %c0_i32, %c0_i32_0 : i32, i32
  }
  func.func @transform_36(%arg0: i32) -> (i32, i32) {
    %c0_i32 = arith.constant 0 : i32
    %c0_i32_0 = arith.constant 0 : i32
    %c0_i32_1 = arith.constant 0 : i32
    return %c0_i32, %c0_i32_0 : i32, i32
  }
  func.func @transform_37(%arg0: i32) -> (i32, i32) {
    %c0_i32 = arith.constant 0 : i32
    %c0_i32_0 = arith.constant 0 : i32
    %c0_i32_1 = arith.constant 0 : i32
    return %c0_i32, %c0_i32_0 : i32, i32
  }
  func.func @transform_38(%arg0: i32) -> (i32, i32) {
    %c0_i32 = arith.constant 0 : i32
    %c0_i32_0 = arith.constant 0 : i32
    %c0_i32_1 = arith.constant 0 : i32
    return %c0_i32, %c0_i32_0 : i32, i32
  }
  func.func @transform_39(%arg0: i32) -> (i32, i32) {
    %c0_i32 = arith.constant 0 : i32
    %c0_i32_0 = arith.constant 0 : i32
    %c0_i32_1 = arith.constant 0 : i32
    return %c0_i32, %c0_i32_0 : i32, i32
  }
  func.func @transform_40(%arg0: i32) -> (i32, i32) {
    %c0_i32 = arith.constant 0 : i32
    %c0_i32_0 = arith.constant 0 : i32
    %c0_i32_1 = arith.constant 0 : i32
    return %c0_i32, %c0_i32_0 : i32, i32
  }
  func.func @transform_41(%arg0: i32) -> (i32, i32, i32) {
    %c0_i32 = arith.constant 0 : i32
    %c0_i32_0 = arith.constant 0 : i32
    %c0_i32_1 = arith.constant 0 : i32
    return %arg0, %c0_i32, %c0_i32_0 : i32, i32, i32
  }
}

</mosaic_0001>

<bundles_post_ra>
// kernel: tpu_custom_call.1
= control target key start
LH: loop header
LB: loop body
LE: loop exit
PB: predicated region body
PF: predicated region fallthrough
CT: control target
= control target key end

     0   :  { %s13691_s6 = smov 1   ;;  %s13692_s10 = smov 2   ;;  %s15525_s0 = inlined_call_operand.smem [shape: u32[42], index: -1, kind: input, shape index: {}] }
   0x1   :  { %s13752_s5 = sld [smem:[%s15525_s0]]   ;;  %s13693_s14 = smov 3  }
   0x2   :  { %s13757_s9 = sld [smem:[%s15525_s0 + %s13691_s6]]   ;;  %s13694_s18 = smov 4  }
   0x3   :  { %s13762_s13 = sld [smem:[%s15525_s0 + %s13692_s10]]   ;;  %s13695_s22 = smov 5  }
   0x4   :  { %s13767_s17 = sld [smem:[%s15525_s0 + %s13693_s14]]   ;;  %s13696_s26 = smov 6  }
   0x5   :  { %s13772_s21 = sld [smem:[%s15525_s0 + %s13694_s18]]   ;;  %s13697_s30 = smov 7  }
   0x6   :  { %s13777_s25 = sld [smem:[%s15525_s0 + %s13695_s22]]   ;;  %s13698_s4 = smov 8  }
   0x7   :  { %15553 = sst [smem:[#allocation5_spill]] %s13752_s5  ;;  %s13699_s10 = smov 9  }
   0x8   :  { %15554 = sst [smem:[#allocation6_spill]] %s13757_s9  ;;  %s13700_s15 = smov 10  }
   0x9   :  { %15555 = sst [smem:[#allocation7_spill]] %s13762_s13  ;;  %s13701_s20 = smov 11  }
   0xa   :  { %s13782_s29 = sld [smem:[%s15525_s0 + %s13696_s26]]   ;;  %s13702_s26 = smov 12  }
   0xb   :  { %s13787_s3 = sld [smem:[%s15525_s0 + %s13697_s30]]   ;;  %s13703_s1 = smov 13  }
   0xc   :  { %s13792_s8 = sld [smem:[%s15525_s0 + %s13698_s4]]   ;;  %s13704_s7 = smov 14  }
   0xd   :  { %s13797_s14 = sld [smem:[%s15525_s0 + %s13699_s10]]   ;;  %s13706_s22 = smov 16  }
   0xe   :  { %s13802_s19 = sld [smem:[%s15525_s0 + %s13700_s15]]   ;;  %s13705_s15 = smov 15  }
   0xf   :  { %s13807_s24 = sld [smem:[%s15525_s0 + %s13701_s20]]   ;;  %s13707_s28 = smov 17  }
  0x10   :  { %s13812_s30 = sld [smem:[%s15525_s0 + %s13702_s26]]  }
  0x11   :  { %15556 = sst [smem:[#allocation8_spill]] %s13787_s3 }
  0x12   :  { %15557 = sst [smem:[#allocation9_spill]] %s13792_s8 }
  0x13   :  { %15558 = sst [smem:[#allocation10_spill]] %s13797_s14 }
  0x14   :  { %s13817_s6 = sld [smem:[%s15525_s0 + %s13703_s1]]  }
  0x15   :  { %s13822_s12 = sld [smem:[%s15525_s0 + %s13704_s7]]   ;;  %s13708_s7 = smov 18  }
  0x16   :  { %s13827_s20 = sld [smem:[%s15525_s0 + %s13705_s15]]   ;;  %s13709_s15 = smov 19  }
  0x17   :  { %s13832_s27 = sld [smem:[%s15525_s0 + %s13706_s22]]   ;;  %s13710_s22 = smov 20  }
  0x18   :  { %s13837_s4 = sld [smem:[%s15525_s0 + %s13707_s28]]   ;;  %s13711_s28 = smov 21  }
  0x1a   :  { %15559 = sst [smem:[#allocation11_spill]] %s13817_s6 }
  0x1b   :  { %15560 = sst [smem:[#allocation12_spill]] %s13822_s12 }
  0x1c   :  { %15561 = sst [smem:[#allocation13_spill]] %s13827_s20 }
  0x1d   :  { %15562 = sst [smem:[#allocation14_spill]] %s13832_s27 }
  0x1e   :  { %15563 = sst [smem:[#allocation15_spill]] %s13837_s4 }
  0x1f   :  { %s13842_s12 = sld [smem:[%s15525_s0 + %s13708_s7]]   ;;  %s13712_s7 = smov 22  }
  0x20   :  { %s13847_s20 = sld [smem:[%s15525_s0 + %s13709_s15]]   ;;  %s13713_s15 = smov 23  }
  0x21   :  { %s13852_s27 = sld [smem:[%s15525_s0 + %s13710_s22]]   ;;  %s13714_s22 = smov 24  }
  0x22   :  { %s13857_s4 = sld [smem:[%s15525_s0 + %s13711_s28]]   ;;  %s13715_s28 = smov 25  }
  0x25   :  { %15564 = sst [smem:[#allocation16_spill]] %s13842_s12 }
  0x26   :  { %15565 = sst [smem:[#allocation17_spill]] %s13847_s20 }
  0x27   :  { %15566 = sst [smem:[#allocation18_spill]] %s13852_s27 }
  0x28   :  { %15567 = sst [smem:[#allocation19_spill]] %s13857_s4 }
  0x29   :  { %s13862_s12 = sld [smem:[%s15525_s0 + %s13712_s7]]   ;;  %s13716_s7 = smov 26  }
  0x2a   :  { %s13867_s20 = sld [smem:[%s15525_s0 + %s13713_s15]]   ;;  %s13717_s15 = smov 27  }
  0x2b   :  { %s13872_s27 = sld [smem:[%s15525_s0 + %s13714_s22]]   ;;  %s13718_s22 = smov 28  }
  0x2c   :  { %s13877_s4 = sld [smem:[%s15525_s0 + %s13715_s28]]   ;;  %s13719_s28 = smov 29  }
  0x2f   :  { %15568 = sst [smem:[#allocation20_spill]] %s13862_s12 }
  0x30   :  { %15569 = sst [smem:[#allocation21_spill]] %s13867_s20 }
  0x31   :  { %15570 = sst [smem:[#allocation22_spill]] %s13872_s27 }
  0x32   :  { %15571 = sst [smem:[#allocation23_spill]] %s13877_s4 }
  0x33   :  { %s13882_s12 = sld [smem:[%s15525_s0 + %s13716_s7]]   ;;  %s13720_s7 = smov 30  }
  0x34   :  { %s13887_s20 = sld [smem:[%s15525_s0 + %s13717_s15]]   ;;  %s13721_s15 = smov 31  }
  0x35   :  { %s13892_s27 = sld [smem:[%s15525_s0 + %s13718_s22]]   ;;  %s13722_s22 = smov 32  }
  0x36   :  { %s13897_s4 = sld [smem:[%s15525_s0 + %s13719_s28]]   ;;  %s13723_s28 = smov 33  }
  0x39   :  { %15572 = sst [smem:[#allocation24_spill]] %s13882_s12 }
  0x3a   :  { %15573 = sst [smem:[#allocation25_spill]] %s13887_s20 }
  0x3b   :  { %15574 = sst [smem:[#allocation26_spill]] %s13892_s27 }
  0x3c   :  { %15575 = sst [smem:[#allocation27_spill]] %s13897_s4 }
  0x3d   :  { %s13902_s12 = sld [smem:[%s15525_s0 + %s13720_s7]]   ;;  %s13724_s7 = smov 34  }
  0x3e   :  { %s13907_s20 = sld [smem:[%s15525_s0 + %s13721_s15]]   ;;  %s13725_s15 = smov 35  }
  0x3f   :  { %s13912_s27 = sld [smem:[%s15525_s0 + %s13722_s22]]   ;;  %s13726_s22 = smov 36  }
  0x40   :  { %s13917_s4 = sld [smem:[%s15525_s0 + %s13723_s28]]   ;;  %s13727_s28 = smov 37  }
  0x43   :  { %15576 = sst [smem:[#allocation28_spill]] %s13902_s12 }
  0x44   :  { %15577 = sst [smem:[#allocation29_spill]] %s13907_s20 }
  0x45   :  { %15578 = sst [smem:[#allocation30_spill]] %s13912_s27 }
  0x46   :  { %15579 = sst [smem:[#allocation31_spill]] %s13917_s4 }
  0x47   :  { %s13922_s12 = sld [smem:[%s15525_s0 + %s13724_s7]]   ;;  %s13728_s7 = smov 38  }
  0x48   :  { %s13927_s20 = sld [smem:[%s15525_s0 + %s13725_s15]]   ;;  %s13729_s15 = smov 39  }
  0x49   :  { %s13932_s27 = sld [smem:[%s15525_s0 + %s13726_s22]]   ;;  %s13730_s22 = smov 40  }
  0x4a   :  { %s13937_s4 = sld [smem:[%s15525_s0 + %s13727_s28]]   ;;  %s13731_s28 = smov 41  }
  0x4d   :  { %15580 = sst [smem:[#allocation32_spill]] %s13922_s12 }
  0x4e   :  { %15581 = sst [smem:[#allocation33_spill]] %s13927_s20 }
  0x4f   :  { %15582 = sst [smem:[#allocation34_spill]] %s13932_s27 }
  0x50   :  { %15583 = sst [smem:[#allocation35_spill]] %s13937_s4 }
  0x51   :  { %s13942_s12 = sld [smem:[%s15525_s0 + %s13728_s7]]  }
  0x52   :  { %s13947_s20 = sld [smem:[%s15525_s0 + %s13729_s15]]  }
  0x53   :  { %s13952_s27 = sld [smem:[%s15525_s0 + %s13730_s22]]  }
  0x54   :  { %s13957_s4 = sld [smem:[%s15525_s0 + %s13731_s28]]  }
  0x57   :  { %15584 = sst [smem:[#allocation36_spill]] %s13942_s12 }
  0x58   :  { %88 = vsyncpa [#allocation3], 0 }
  0x59   :  { %90 = vsyncpa [#allocation3 + $0x1], 0  ;;  %s13959_s7 = smov 0   ;;  %s13961_s10 = smov 0  }
  0x5a   :  { %s13963_s11 = smov 0   ;;  %s13965_s15 = smov 0  }
  0x5b LB: > { %s15585_s9 = sld [smem:[#allocation6_spill]]  ;;  %s15586_s6 = sld [smem:[#allocation11_spill]]  ;;  %s13685_s11 = sphi %s13963_s11, %s15630_s11   ;;  %s13681_s10 = sphi %s13961_s10, %s15629_s10   ;;  %s13677_s7 = sphi %s13959_s7, %s15628_s7   ;;  %s13689_s15 = sphi %s13965_s15, %s15631_s15  }
  0x5c   : > { %s15587_s3 = sld [smem:[#allocation8_spill]]  ;;  %s13980_s0 = sadd.s32 4294967295, %s13689_s15  }
  0x5d   : > { %s10481_s16 = sadd.s32 4294967294, %s13689_s15   ;;  %s13984_s18 = sadd.s32 1, %s13689_s15  }
  0x5e   : > { %s969_s22 = sadd.s32 1, %s13685_s11  ;;  %s966_s23 = ssub.s32 %s13689_s15, %s13984_s18 }
  0x5f   : > { %p979_p0 = scmp.ne.s32.totalorder %s13685_s11, %s13681_s10  ;;  %p967_p1 = scmp.eq.s32.totalorder %s966_s23, 0 }
  0x60   : > { %p980_p2 = scmp.eq.s32.totalorder %s13980_s0, 1  ;;  %p985_p3 = scmp.ne.s32.totalorder %s13681_s10, %s13677_s7 }
  0x61   : > { %p986_p4 = scmp.eq.s32.totalorder %s10481_s16, 1  ;;  %p10484_p7 = scmp.ge.s32.totalorder %s13689_s15, 1 }
  0x62   : > { %s13995_s26 = scalar_select %p967_p1, %s13685_s11, %s969_s22  }
  0x63   : > { %p13997_p5 = por %p980_p2, %p979_p0  ;;  %p14001_p6 = por %p986_p4, %p985_p3 }
  0x64   : > { %p1132_p8 = scmp.lt.s32.totalorder %s13689_s15, 3 }
  0x66   : > { %p1133_p9 = pnand %p10484_p7, %p1132_p8 }
  0x67   : > { %s15590_s5 = sld [smem:[#allocation5_spill]] (!%p1133_p9)  ;;  %p1231_p10 = scmp.lt.s32.totalorder (!%p1133_p9), %s13980_s0, 1  ;;  %v1253_v0 = vlaneseq (!%p1133_p9)  ;;  %v13732_v14 = vmov (!%p1133_p9), 1.0  }
  0x68   : > { %1136 = sbr.rel (%p1133_p9) target bundleno = 5483 (0x156b), region = 184  ;;  %s13733_s23 = smov (!%p1133_p9), 71  }
  0x69   : > { %v14009_v1 = vshrl.u32 (!%p1133_p9), %v1253_v0, 7  ;;  %v14011_v2 = vand.u32 (!%p1133_p9), 127, %v1253_v0  ;;  %s15591_s13 = sld [smem:[#allocation7_spill]] (!%p1133_p9)  ;;  %s15598_s8 = sld [smem:[#allocation9_spill]] (!%p1133_p9) }
  0x6a   : > { %s15599_s14 = sld [smem:[#allocation10_spill]] (!%p1133_p9)  ;;  %s15627_s12 = sld [smem:[#allocation36_spill]] (!%p1133_p9) }
  0x6b   : > { %v14014_v3 = vmul.u32 (!%p1133_p9), 2, %v14009_v1  ;;  %v1255_v4 = vadd.s32 (!%p1133_p9), 8, %v14009_v1  ;;  %v1256_v5 = vadd.s32 (!%p1133_p9), 16, %v14009_v1  ;;  %v1257_v10 = vadd.s32 (!%p1133_p9), 24, %v14009_v1 }
  0x6c   : > { %v1258_v11 = vadd.s32 (!%p1133_p9), 32, %v14009_v1  ;;  %v1259_v20 = vadd.s32 (!%p1133_p9), 40, %v14009_v1  ;;  %v1260_v21 = vadd.s32 (!%p1133_p9), 48, %v14009_v1  ;;  %v1261_v25 = vadd.s32 (!%p1133_p9), 56, %v14009_v1 }
  0x6d   : > { %v14025_v9 = vadd.s32 (!%p1133_p9), 4294967295, %v14014_v3  ;;  %vm1409_vm0 = vcmp.eq.s32.totalorder (!%p1133_p9), %v14011_v2, %v14014_v3  ;;  %v14038_v15 = vmul.u32 (!%p1133_p9), 2, %v1255_v4  ;;  %v14044_v19 = vmul.u32 (!%p1133_p9), 2, %v1256_v5 }
  0x6e   : > { %11898 = vmatprep.mubr.msk.f32.mxu1 (!%p1133_p9), %vm1409_vm0, %v13732_v14  ;;  %v14055_v23 = vmul.u32 (!%p1133_p9), 2, %v1257_v10  ;;  %v14057_v24 = vmul.u32 (!%p1133_p9), 2, %v1258_v11  ;;  %v14096_v38 = vadd.s32 (!%p1133_p9), 1, %v14014_v3  ;;  %v14099_v39 = vadd.s32 (!%p1133_p9), 2, %v14014_v3  ;;  %v13146_v10 = vld [vmem:[%s15585_s9 + $0x8] sm:$0xff] (!%p1133_p9)   ;;  %v13147_v11 = vld [vmem:[%s15585_s9 + $0x50] sm:$0xff] (!%p1133_p9)  }
  0x6f   : > { %s1232_s2 = scalar_select %p1231_p10, %s13980_s0, 1  ;;  %vm1280_vm1 = vcmp.eq.s32.totalorder %v14011_v2, %v14025_v9  ;;  %v14066_v28 = vadd.s32 4294967295, %v14038_v15  ;;  %v14073_v29 = vadd.s32 4294967295, %v14044_v19  ;;  %v14077_v32 = vmul.u32 2, %v1259_v20  ;;  %v13149_v20 = vld [vmem:[%s15585_s9 + $0x58] sm:$0xff]  }
  0x70   : > { %11854 = vmatprep.mubr.msk.f32.mxu0 %vm1280_vm1, %v13732_v14  ;;  %v14079_v33 = vmul.u32 2, %v1260_v21  ;;  %v14084_v34 = vadd.s32 4294967295, %v14055_v23  ;;  %v14087_v35 = vadd.s32 4294967295, %v14057_v24  ;;  %v14089_v36 = vmul.u32 2, %v1261_v25  ;;  %v14445_v3 = vld [vmem:[%s13767_s17] ss:$0 sm:$0xff] }
  0x71   : > { %s11103_s16 = sshll.u32 %s1232_s2, 7  ;;  %v14102_v40 = vadd.s32 4294967295, %v14077_v32  ;;  %v14117_v46 = vadd.s32 1, %v14038_v15  ;;  %v14120_v47 = vadd.s32 2, %v14038_v15  ;;  %v14123_v48 = vadd.s32 1, %v14044_v19  ;;  %s13734_s2 = smov 85  }
  0x72   : > { %s14019_s22 = scalar_lea.vmem %s15590_s5, %s11103_s16  ;;  %v14105_v41 = vadd.s32 4294967295, %v14079_v33  ;;  %v14108_v42 = vadd.s32 4294967295, %v14089_v36  ;;  %v14128_v49 = vadd.s32 1, %v14055_v23  ;;  %v14131_v50 = vadd.s32 2, %v14044_v19  ;;  %s13735_s16 = smov 14  }
  0x73   : > { %v1237_v6 = vld [vmem:[%s14019_s22] sm:$0xff]  ;;  %v1238_v7 = vld [vmem:[%s14019_s22 + $0x8] sm:$0xff]  ;;  %v1239_v8 = vld [vmem:[%s14019_s22 + $0x10] sm:$0xff]  ;;  %v14134_v51 = vadd.s32 2, %v14055_v23  ;;  %v14137_v52 = vadd.s32 1, %v14057_v24  ;;  %v14140_v53 = vadd.s32 2, %v14057_v24  ;;  %vm1281_vm2 = vcmp.eq.s32.totalorder %v14011_v2, %v14066_v28 }
  0x74   : > { %v14031_v12 = vpack.c.bf16 %v1238_v7, %v1237_v6  ;;  %v1240_v13 = vld [vmem:[%s14019_s22 + $0x18] sm:$0xff]  ;;  %v1241_v17 = vld [vmem:[%s14019_s22 + $0x20] sm:$0xff]  ;;  %v1242_v18 = vld [vmem:[%s14019_s22 + $0x28] sm:$0xff]  ;;  %v14147_v56 = vadd.s32 1, %v14077_v32  ;;  %v14150_v57 = vadd.s32 2, %v14077_v32  ;;  %v14153_v58 = vadd.s32 1, %v14079_v33 }
  0x75   : > { %v14040_v16 = vpack.c.bf16 %v1240_v13, %v1239_v8  ;;  %v1243_v22 = vld [vmem:[%s14019_s22 + $0x30] sm:$0xff]  ;;  %v14062_v26 = vpack.c.bf16 %v1242_v18, %v1241_v17  ;;  %v1244_v27 = vld [vmem:[%s14019_s22 + $0x38] sm:$0xff]  ;;  %v1245_v30 = vld [vmem:[%s14019_s22 + $0x40] sm:$0xff]  ;;  %v14160_v60 = vadd.s32 1, %v14089_v36  ;;  %v14163_v61 = vadd.s32 2, %v14079_v33  ;;  %s15619_s5 = sld [smem:[#allocation29_spill]] }
  0x76   : > { %12551 = vmatprep.subr.bf16.mxu0 %v14031_v12  ;;  %12583 = vmatprep.subr.bf16.mxu1 %v14031_v12  ;;  %v1246_v31 = vld [vmem:[%s14019_s22 + $0x48] sm:$0xff]  ;;  %v14093_v37 = vpack.c.bf16 %v1244_v27, %v1243_v22  ;;  %v1247_v44 = vld [vmem:[%s14019_s22 + $0x50] sm:$0xff]  ;;  %v1248_v45 = vld [vmem:[%s14019_s22 + $0x58] sm:$0xff]  ;;  %v14166_v62 = vadd.s32 2, %v14089_v36  ;;  %vm1410_vm3 = vcmp.eq.s32.totalorder %v14011_v2, %v14038_v15  ;;  %vm1282_vm4 = vcmp.eq.s32.totalorder %v14011_v2, %v14073_v29 }
  0x77   : > { %12553 = vmatpush3.bf16.msra.mxu0 %v14031_v12  ;;  %12585 = vmatpush3.bf16.msra.mxu1 %v14031_v12  ;;  %v14112_v43 = vpack.c.bf16 %v1246_v31, %v1245_v30  ;;  %v1249_v54 = vld [vmem:[%s14019_s22 + $0x60] sm:$0xff]  ;;  %v1250_v55 = vld [vmem:[%s14019_s22 + $0x68] sm:$0xff]  ;;  %v14157_v59 = vpack.c.bf16 %v1248_v45, %v1247_v44  ;;  %v1251_v63 = vld [vmem:[%s14019_s22 + $0x70] sm:$0xff]  ;;  %vm1411_vm5 = vcmp.eq.s32.totalorder %v14011_v2, %v14044_v19 }
  0x78   : > { %12555 = vmatprep.subr.bf16.mxu0 %v14040_v16  ;;  %12587 = vmatprep.subr.bf16.mxu1 %v14040_v16  ;;  %v1252_v0 = vld [vmem:[%s14019_s22 + $0x78] sm:$0xff]  ;;  %v14174_v4 = vpack.c.bf16 %v1250_v55, %v1249_v54  ;;  %vm1283_vm6 = vcmp.eq.s32.totalorder %v14011_v2, %v14084_v34  ;;  %vm1412_vm7 = vcmp.eq.s32.totalorder %v14011_v2, %v14055_v23  ;;  %v13143_v6 = vld [vmem:[%s15585_s9 + $0x40] sm:$0xff]   ;;  %v13145_v8 = vld [vmem:[%s15585_s9 + $0x48] sm:$0xff]   ;;  %s15540_s22 = smov 32  }
  0x79   : > { %v14180_v5 = vpack.c.bf16 %v1252_v0, %v1251_v63  ;;  %vm1284_vm8 = vcmp.eq.s32.totalorder %v14011_v2, %v14087_v35  ;;  %vm1413_vm9 = vcmp.eq.s32.totalorder %v14011_v2, %v14057_v24  ;;  %vm1285_vm10 = vcmp.eq.s32.totalorder %v14011_v2, %v14102_v40  ;;  %v13144_v7 = vld [vmem:[%s15585_s9] sm:$0xff]   ;;  %v13148_v18 = vld [vmem:[%s15585_s9 + $0x10] sm:$0xff]   ;;  %v13153_v40 = vld [vmem:[%s15585_s9 + $0x68] sm:$0xff]  }
  0x7a   : > { %vm1414_vm11 = vcmp.eq.s32.totalorder %v14011_v2, %v14077_v32  ;;  %vm1286_vm12 = vcmp.eq.s32.totalorder %v14011_v2, %v14105_v41  ;;  %vm1415_vm13 = vcmp.eq.s32.totalorder %v14011_v2, %v14079_v33  ;;  %vm1287_vm14 = vcmp.eq.s32.totalorder %v14011_v2, %v14108_v42  ;;  %v13151_v30 = vld [vmem:[%s15585_s9 + $0x60] sm:$0xff]   ;;  %v13154_v45 = vld [vmem:[%s15585_s9 + $0x28] sm:$0xff]   ;;  %v13156_v54 = vld [vmem:[%s15585_s9 + $0x30] sm:$0xff]  }
  0x7b   : > { %12557 = vmatpush3.bf16.msra.mxu0 %v14040_v16  ;;  %12589 = vmatpush3.bf16.msra.mxu1 %v14040_v16  ;;  %vm1416_vm15 = vcmp.eq.s32.totalorder %v14011_v2, %v14089_v36  ;;  %v13152_v36 = vld [vmem:[%s15585_s9 + $0x20] sm:$0xff]   ;;  %v13157_v55 = vld [vmem:[%s15585_s9 + $0x78] sm:$0xff]  }
  0x7c   : > { %12559 = vmatprep.subr.bf16.mxu0 %v14062_v26  ;;  %12591 = vmatprep.subr.bf16.mxu1 %v14062_v26 }
  0x7f   : > { %12561 = vmatpush3.bf16.msra.mxu0 %v14062_v26  ;;  %12593 = vmatpush3.bf16.msra.mxu1 %v14062_v26 }
  0x80   : > { %12563 = vmatprep.subr.bf16.mxu0 %v14093_v37  ;;  %12595 = vmatprep.subr.bf16.mxu1 %v14093_v37 }
  0x83   : > { %12565 = vmatpush3.bf16.msra.mxu0 %v14093_v37  ;;  %12597 = vmatpush3.bf16.msra.mxu1 %v14093_v37 }
  0x84   : > { %12567 = vmatprep.subr.bf16.mxu0 %v14112_v43  ;;  %12599 = vmatprep.subr.bf16.mxu1 %v14112_v43 }
  0x87   : > { %12569 = vmatpush3.bf16.msra.mxu0 %v14112_v43  ;;  %12601 = vmatpush3.bf16.msra.mxu1 %v14112_v43 }
  0x88   : > { %12571 = vmatprep.subr.bf16.mxu0 %v14157_v59  ;;  %12603 = vmatprep.subr.bf16.mxu1 %v14157_v59 }
  0x8b   : > { %12573 = vmatpush3.bf16.msra.mxu0 %v14157_v59  ;;  %12605 = vmatpush3.bf16.msra.mxu1 %v14157_v59 }
  0x8c   : > { %12575 = vmatprep.subr.bf16.mxu0 %v14174_v4  ;;  %12607 = vmatprep.subr.bf16.mxu1 %v14174_v4 }
  0x8f   : > { %12577 = vmatpush3.bf16.msra.mxu0 %v14174_v4  ;;  %12609 = vmatpush3.bf16.msra.mxu1 %v14174_v4 }
  0x90   : > { %12579 = vmatprep.subr.bf16.mxu0 %v14180_v5  ;;  %12611 = vmatprep.subr.bf16.mxu1 %v14180_v5 }
  0x93   : > { %12581 = vmatpush3.bf16.msra.mxu0 %v14180_v5  ;;  %12613 = vmatpush3.bf16.msra.mxu1 %v14180_v5 }
  0x94   : > { %12615 = vmatprep.subr.bf16.mxu0 %v14031_v12  ;;  %12647 = vmatprep.subr.bf16.mxu1 %v14031_v12 }
  0x96   : > { %11855 = vmatmul.mubr.msk.f32.vlgmr.msra.gmra.mrb[0].mxu0 %vm1281_vm2, %v13732_v14  ;;  %11899 = vmatmul.mubr.msk.f32.vlgmr.msra.gmra.mrb[0].mxu1 %vm1410_vm3, %v13732_v14 }
  0x97   : > { %12617 = vmatpush3.bf16.msra.mxu0 %v14031_v12  ;;  %12649 = vmatpush3.bf16.msra.mxu1 %v14031_v12 }
  0x98   : > { %12619 = vmatprep.subr.bf16.mxu0 %v14040_v16  ;;  %12651 = vmatprep.subr.bf16.mxu1 %v14040_v16 }
  0x99   : > { %11857 = vmatprep.mubr.msk.f32.mxu0 %vm1282_vm4, %v13732_v14  ;;  %11901 = vmatprep.mubr.msk.f32.mxu1 %vm1411_vm5, %v13732_v14 }
  0x9a   : > { %11858 = vmatmul.mubr.msk.f32.gmra.mrb[2].mxu0 %vm1283_vm6, %v13732_v14  ;;  %11902 = vmatmul.mubr.msk.f32.gmra.mrb[2].mxu1 %vm1412_vm7, %v13732_v14 }
  0x9b   : > { %12621 = vmatpush3.bf16.msra.mxu0 %v14040_v16  ;;  %12653 = vmatpush3.bf16.msra.mxu1 %v14040_v16 }
  0x9c   : > { %12623 = vmatprep.subr.bf16.mxu0 %v14062_v26  ;;  %12655 = vmatprep.subr.bf16.mxu1 %v14062_v26 }
  0x9d   : > { %11860 = vmatprep.mubr.msk.f32.mxu0 %vm1284_vm8, %v13732_v14  ;;  %11904 = vmatprep.mubr.msk.f32.mxu1 %vm1413_vm9, %v13732_v14  ;;  %vm15539_vm8 = vcmp.eq.s32.totalorder %v14011_v2, %v14096_v38  ;;  %vm1683_vm9 = vcmp.eq.s32.totalorder %v14011_v2, %v14099_v39 }
  0x9e   : > { %11861 = vmatmul.mubr.msk.f32.gmra.mrb[4].mxu0 %vm1285_vm10, %v13732_v14  ;;  %11905 = vmatmul.mubr.msk.f32.gmra.mrb[4].mxu1 %vm1414_vm11, %v13732_v14  ;;  %vm15534_vm10 = vcmp.eq.s32.totalorder %v14011_v2, %v14117_v46  ;;  %vm15535_vm11 = vcmp.eq.s32.totalorder %v14011_v2, %v14120_v47 }
  0x9f   : > { %12625 = vmatpush3.bf16.msra.mxu0 %v14062_v26  ;;  %12657 = vmatpush3.bf16.msra.mxu1 %v14062_v26  ;;  %v13150_v26 = vld [vmem:[%s15585_s9 + $0x18] sm:$0xff]  }
  0xa0   : > { %12627 = vmatprep.subr.bf16.mxu0 %v14093_v37  ;;  %12659 = vmatprep.subr.bf16.mxu1 %v14093_v37 }
  0xa1   : > { %11863 = vmatprep.mubr.msk.f32.mxu0 %vm1286_vm12, %v13732_v14  ;;  %11907 = vmatprep.mubr.msk.f32.mxu1 %vm1415_vm13, %v13732_v14  ;;  %vm15536_vm12 = vcmp.eq.s32.totalorder %v14011_v2, %v14123_v48  ;;  %vm15537_vm13 = vcmp.eq.s32.totalorder %v14011_v2, %v14131_v50 }
  0xa2   : > { %11864 = vmatmul.mubr.msk.f32.gmra.mrb[6].mxu0 %vm1287_vm14, %v13732_v14  ;;  %11908 = vmatmul.mubr.msk.f32.gmra.mrb[6].mxu1 %vm1416_vm15, %v13732_v14  ;;  %vm15538_vm14 = vcmp.eq.s32.totalorder %v14011_v2, %v14128_v49  ;;  %vm1686_vm15 = vcmp.eq.s32.totalorder %v14011_v2, %v14134_v51 }
  0xa3   : > { %12629 = vmatpush3.bf16.msra.mxu0 %v14093_v37  ;;  %12661 = vmatpush3.bf16.msra.mxu1 %v14093_v37 }
  0xa4   : > { %12631 = vmatprep.subr.bf16.mxu0 %v14112_v43  ;;  %12663 = vmatprep.subr.bf16.mxu1 %v14112_v43 }
  0xa5   : > { %11942 = vmatprep.mubr.msk.f32.mxu0 %vm15539_vm8, %v13732_v14  ;;  %11986 = vmatprep.mubr.msk.f32.mxu1 %vm1683_vm9, %v13732_v14  ;;  %vm1689_vm8 = vcmp.eq.s32.totalorder %v14011_v2, %v14163_v61 }
  0xa7   : > { %12633 = vmatpush3.bf16.msra.mxu0 %v14112_v43  ;;  %12665 = vmatpush3.bf16.msra.mxu1 %v14112_v43 }
  0xa8   : > { %12635 = vmatprep.subr.bf16.mxu0 %v14157_v59  ;;  %12667 = vmatprep.subr.bf16.mxu1 %v14157_v59 }
  0xab   : > { %12637 = vmatpush3.bf16.msra.mxu0 %v14157_v59  ;;  %12669 = vmatpush3.bf16.msra.mxu1 %v14157_v59 }
  0xac   : > { %12639 = vmatprep.subr.bf16.mxu0 %v14174_v4  ;;  %12671 = vmatprep.subr.bf16.mxu1 %v14174_v4 }
  0xaf   : > { %12641 = vmatpush3.bf16.msra.mxu0 %v14174_v4  ;;  %12673 = vmatpush3.bf16.msra.mxu1 %v14174_v4 }
  0xb0   : > { %12643 = vmatprep.subr.bf16.mxu0 %v14180_v5  ;;  %12675 = vmatprep.subr.bf16.mxu1 %v14180_v5 }
  0xb3   : > { %12645 = vmatpush3.bf16.msra.mxu0 %v14180_v5  ;;  %12677 = vmatpush3.bf16.msra.mxu1 %v14180_v5 }
  0xb4   : > { %11200 = vmatprep.subr.bf16.mxu0 %v13143_v6 }
  0xb6   : > { %11943 = vmatmul.mubr.msk.f32.vlgmr.msra.gmra.mrb[8].mxu0 %vm15534_vm10, %v13732_v14  ;;  %11987 = vmatmul.mubr.msk.f32.vlgmr.msra.gmra.mrb[8].mxu1 %vm15535_vm11, %v13732_v14  ;;  %vm1550_vm10 = vcmp.eq.s32.totalorder %v14011_v2, %v14137_v52  ;;  %vm1687_vm11 = vcmp.eq.s32.totalorder %v14011_v2, %v14140_v53  ;;  %v13155_v53 = vld [vmem:[%s15585_s9 + $0x70] sm:$0xff]  }
  0xb7   : > { %11945 = vmatprep.mubr.msk.f32.mxu0 %vm15536_vm12, %v13732_v14  ;;  %11989 = vmatprep.mubr.msk.f32.mxu1 %vm15537_vm13, %v13732_v14  ;;  %vm1551_vm12 = vcmp.eq.s32.totalorder %v14011_v2, %v14147_v56  ;;  %vm1688_vm13 = vcmp.eq.s32.totalorder %v14011_v2, %v14150_v57  ;;  %v13158_v56 = vld [vmem:[%s15585_s9 + $0x38] sm:$0xff]   ;;  %v13159_v57 = vld [vmem:[%s15585_s9 + $0x80] sm:$0xff]  }
  0xb8   : > { %11201 = vmatpush3.bf16.msra.mxu0 %v13144_v7  ;;  %11998 = vmatprep.subr.bf16.mxu1 %v13159_v57 }
  0xb9   : > { %11202 = vmatprep.subr.bf16.mxu0 %v13145_v8  ;;  %11999 = vmatpush3.bf16.msra.mxu1 %v13159_v57 }
  0xba   : > { %11946 = vmatmul.mubr.msk.f32.gmra.mrb[10].mxu0 %vm15538_vm14, %v13732_v14  ;;  %11990 = vmatmul.mubr.msk.f32.gmra.mrb[10].mxu1 %vm1686_vm15, %v13732_v14  ;;  %vm1552_vm14 = vcmp.eq.s32.totalorder %v14011_v2, %v14153_v58  ;;  %v13160_v58 = vld [vmem:[%s15585_s9 + $0x88] sm:$0x3f]  }
  0xbb   : > { %11948 = vmatprep.mubr.msk.f32.mxu0 %vm1550_vm10, %v13732_v14  ;;  %11992 = vmatprep.mubr.msk.f32.mxu1 %vm1687_vm11, %v13732_v14  ;;  %vm1553_vm10 = vcmp.eq.s32.totalorder %v14011_v2, %v14160_v60  ;;  %vm1690_vm11 = vcmp.eq.s32.totalorder %v14011_v2, %v14166_v62 }
  0xbc   : > { %11203 = vmatpush3.bf16.msra.mxu0 %v13146_v10 }
  0xbd   : > { %11204 = vmatprep.subr.bf16.mxu0 %v13147_v11 }
  0xbe   : > { %11949 = vmatmul.mubr.msk.f32.gmra.mrb[12].mxu0 %vm1551_vm12, %v13732_v14  ;;  %11993 = vmatmul.mubr.msk.f32.gmra.mrb[12].mxu1 %vm1688_vm13, %v13732_v14  ;;  %vm1908_vm12 = vcmask 580608   ;;  %vm1917_vm13 = vcmask 113664  }
  0xbf   : > { %11951 = vmatprep.mubr.msk.f32.mxu0 %vm1552_vm14, %v13732_v14  ;;  %11995 = vmatprep.mubr.msk.f32.mxu1 %vm1689_vm8, %v13732_v14  ;;  %vm2110_vm8 = vcmask 1045504   ;;  %vm1926_vm14 = vcmask 695296  }
  0xc0   : > { %11205 = vmatpush3.bf16.msra.mxu0 %v13148_v18  ;;  %12906 = vmatprep.subr.msk.bf16.mxu1 %vm2110_vm8, %v13160_v58  ;;  %v2112_v61 = vsel %vm2110_vm8, %v13160_v58, 0  ;;  %vm5932_vm8 = vcmask 64512  }
  0xc1   : > { %11206 = vmatprep.subr.bf16.mxu0 %v13149_v20  ;;  %12001 = vmatpush3.bf16.msra.mxu1 %v2112_v61 }
  0xc2   : > { %11952 = vmatmul.mubr.msk.f32.gmra.mrb[14].mxu0 %vm1553_vm10, %v13732_v14  ;;  %11996 = vmatmul.mubr.msk.f32.gmra.mrb[14].mxu1 %vm1690_vm11, %v13732_v14  ;;  %vm2097_vm10 = vcmask 228352   ;;  %vm2395_vm11 = vcmask 523264  }
  0xc4   : > { %11207 = vmatpush3.bf16.msra.mxu0 %v13150_v26 }
  0xc5   : > { %11208 = vmatprep.subr.bf16.mxu0 %v13151_v30 }
  0xc8   : > { %11209 = vmatpush3.bf16.msra.mxu0 %v13152_v36 }
  0xc9   : > { %11210 = vmatprep.subr.bf16.mxu0 %v13153_v40 }
  0xcc   : > { %11211 = vmatpush3.bf16.msra.mxu0 %v13154_v45 }
  0xcd   : > { %11212 = vmatprep.subr.bf16.mxu0 %v13155_v53 }
  0xd0   : > { %11213 = vmatpush3.bf16.msra.mxu0 %v13156_v54 }
  0xd1   : > { %11214 = vmatprep.subr.bf16.mxu0 %v13157_v55 }
  0xd4   : > { %11215 = vmatpush3.bf16.msra.mxu0 %v13158_v56 }
 0x169   : > { %v14357_v12 = vpop.f32.mrb[0].mxu0  ;;  %v11900_v13 = vpop.f32.mrb[0].mxu1 }
 0x16a   : > { %v14359_v16 = vpop.f32.mrb[1].mxu0  ;;  %v1499_v17 = vpop.f32.mrb[1].mxu1 }
 0x16b   : > { %v12998_v14 = vpack.i.bf16 %v11900_v13, %v1499_v17 }
 0x16d   : > { %12999 = vrot.lane.b32.xlu0 %v12998_v14, %s13733_s23  ;;  %v14364_v21 = vpop.f32.mrb[2].mxu0  ;;  %v11903_v22 = vpop.f32.mrb[2].mxu1 }
 0x16e   : > { %v14366_v24 = vpop.f32.mrb[3].mxu0  ;;  %v1509_v25 = vpop.f32.mrb[3].mxu1 }
 0x16f   : > { %v13013_v27 = vpack.i.bf16 %v11903_v22, %v1509_v25 }
 0x171   : > { %v14370_v31 = vpop.f32.mrb[4].mxu0  ;;  %v11906_v32 = vpop.f32.mrb[4].mxu1 }
 0x172   : > { %v14372_v33 = vpop.f32.mrb[5].mxu0  ;;  %v1519_v35 = vpop.f32.mrb[5].mxu1 }
 0x173   : > { %v13028_v37 = vpack.i.bf16 %v11906_v32, %v1519_v35 }
 0x175   : > { %v14376_v41 = vpop.f32.mrb[6].mxu0  ;;  %v11909_v42 = vpop.f32.mrb[6].mxu1 }
 0x176   : > { %v14378_v43 = vpop.f32.mrb[7].mxu0  ;;  %v1529_v44 = vpop.f32.mrb[7].mxu1 }
 0x177   : > { %v13043_v52 = vpack.i.bf16 %v11909_v42, %v1529_v44 }
 0x189   : > { %v11944_v59 = vpop.f32.mrb[8].mxu0  ;;  %v11988_v60 = vpop.f32.mrb[8].mxu1 }
 0x18a   : > { %v1636_v62 = vpop.f32.mrb[9].mxu0  ;;  %v1773_v63 = vpop.f32.mrb[9].mxu1 }
 0x18b   : > { %v13003_v0 = vpack.i.bf16 %v11944_v59, %v1636_v62  ;;  %v13008_v4 = vpack.i.bf16 %v11988_v60, %v1773_v63 }
 0x18d   : > { %13009 = vrot.lane.b32.xlu1 %v13008_v4, %s13734_s2  ;;  %13004 = vrot.lane.b32.xlu0 %v13003_v0, %s13735_s16  ;;  %v11947_v5 = vpop.f32.mrb[10].mxu0  ;;  %v11991_v6 = vpop.f32.mrb[10].mxu1 }
 0x18e   : > { %v1646_v7 = vpop.f32.mrb[11].mxu0  ;;  %v1783_v8 = vpop.f32.mrb[11].mxu1 }
 0x18f   : > { %v13018_v10 = vpack.i.bf16 %v11947_v5, %v1646_v7  ;;  %v13023_v11 = vpack.i.bf16 %v11991_v6, %v1783_v8 }
 0x191   : > { %13014 = vrot.lane.b32.xlu1 %v13013_v27, %s13733_s23  ;;  %13019 = vrot.lane.b32.xlu0 %v13018_v10, %s13735_s16  ;;  %v11994_v13 = vpop.f32.mrb[12].mxu1  ;;  %v11950_v17 = vpop.f32.mrb[12].mxu0 }
 0x192   : > { %v1656_v18 = vpop.f32.mrb[13].mxu0  ;;  %v1793_v14 = vpop.f32.mrb[13].mxu1 }
 0x193   : > { %v13033_v20 = vpack.i.bf16 %v11950_v17, %v1656_v18  ;;  %v13038_v22 = vpack.i.bf16 %v11994_v13, %v1793_v14 }
 0x195   : > { %13024 = vrot.lane.b32.xlu1 %v13023_v11, %s13734_s2  ;;  %13029 = vrot.lane.b32.xlu0 %v13028_v37, %s13733_s23  ;;  %v11953_v25 = vpop.f32.mrb[14].mxu0  ;;  %v11997_v26 = vpop.f32.mrb[14].mxu1 }
 0x196   : > { %v1666_v30 = vpop.f32.mrb[15].mxu0  ;;  %v1803_v32 = vpop.f32.mrb[15].mxu1 }
 0x197   : > { %v13048_v35 = vpack.i.bf16 %v11953_v25, %v1666_v30  ;;  %v13053_v36 = vpack.i.bf16 %v11997_v26, %v1803_v32 }
 0x199   : > { %13039 = vrot.lane.b32.xlu0 %v13038_v22, %s13734_s2  ;;  %13034 = vrot.lane.b32.xlu1 %v13033_v20, %s13735_s16 }
 0x19d   : > { %13044 = vrot.lane.b32.xlu1 %v13043_v52, %s13733_s23  ;;  %13049 = vrot.lane.b32.xlu0 %v13048_v35, %s13735_s16  ;;  %s15543_s23 = smov 96   ;;  %s15600_s16 = sld [smem:[#allocation15_spill]] }
 0x1a1   : > { %13054 = vrot.lane.b32.xlu1 %v13053_v36, %s13734_s2  ;;  %s15541_s2 = smov 64  }
 0x1df   : > { %v13000_v27 = vpop.permute.xlu0 %12999 }
 0x1e0   : > { %v13002_v40 = vunpack.i.h.bf16 %v13000_v27  ;;  %v13001_v42 = vunpack.i.l.bf16 %v13000_v27 }
 0x1e2   : > { %v1909_v37 = vsel %vm1908_vm12, %v14359_v16, %v13001_v42  ;;  %v1910_v44 = vsel %vm1908_vm12, %v14357_v12, %v13002_v40 }
 0x1e3   : > { %v1935_v45 = vpack.c.bf16 %v1910_v44, %v1909_v37 }
 0x1ff   : > { %v13010_v53 = vpop.permute.xlu1 %13009  ;;  %v13005_v54 = vpop.permute.xlu0 %13004 }
 0x200   : > { %v13012_v55 = vunpack.i.h.bf16 %v13010_v53  ;;  %v13011_v52 = vunpack.i.l.bf16 %v13010_v53  ;;  %v13007_v56 = vunpack.i.h.bf16 %v13005_v54  ;;  %v13006_v57 = vunpack.i.l.bf16 %v13005_v54 }
 0x202   : > { %v1937_v58 = vpack.c.bf16 %v13012_v55, %v13011_v52  ;;  %v1919_v59 = vsel %vm1917_vm13, %v13002_v40, %v13007_v56  ;;  %v1918_v60 = vsel %vm1917_vm13, %v13001_v42, %v13006_v57 }
 0x203   : > { %v13015_v61 = vpop.permute.xlu1 %13014  ;;  %v13020_v16 = vpop.permute.xlu0 %13019  ;;  %v1927_v62 = vsel %vm1926_vm14, %v1918_v60, %v13011_v52  ;;  %v1928_v12 = vsel %vm1926_vm14, %v1919_v59, %v13012_v55 }
 0x204   : > { %v13017_v63 = vunpack.i.h.bf16 %v13015_v61  ;;  %v13016_v0 = vunpack.i.l.bf16 %v13015_v61  ;;  %12002 = vmatprep.mubr.msk.bf16.mxu1 %vm2097_vm10, %v1937_v58  ;;  %v13022_v4 = vunpack.i.h.bf16 %v13020_v16  ;;  %v13021_v5 = vunpack.i.l.bf16 %v13020_v16 }
 0x205   : > { %v1936_v6 = vpack.c.bf16 %v1928_v12, %v1927_v62 }
 0x206   : > { %v1911_v7 = vsel %vm1908_vm12, %v14366_v24, %v13016_v0  ;;  %v1912_v8 = vsel %vm1908_vm12, %v14364_v21, %v13017_v63  ;;  %v1921_v22 = vsel %vm1917_vm13, %v13017_v63, %v13022_v4  ;;  %v1920_v25 = vsel %vm1917_vm13, %v13016_v0, %v13021_v5 }
 0x207   : > { %2146 = vmatprep.mubr.bf16.mxu0 %v1936_v6  ;;  %v13025_v10 = vpop.permute.xlu1 %13024  ;;  %v13030_v11 = vpop.permute.xlu0 %13029  ;;  %v1938_v13 = vpack.c.bf16 %v1912_v8, %v1911_v7 }
 0x208   : > { %v13027_v17 = vunpack.i.h.bf16 %v13025_v10  ;;  %v13026_v18 = vunpack.i.l.bf16 %v13025_v10  ;;  %2147 = vmatmul.mubr.bf16.vlgmr.msra.gmra.mrb[16].mxu0 %v1935_v45  ;;  %v13032_v14 = vunpack.i.h.bf16 %v13030_v11  ;;  %v13031_v20 = vunpack.i.l.bf16 %v13030_v11  ;;  %v13162_v11 = vld [vmem:[%s13777_s25 + $0x8] sm:$0xff]  }
 0x20a   : > { %v1940_v26 = vpack.c.bf16 %v13027_v17, %v13026_v18  ;;  %v1929_v30 = vsel %vm1926_vm14, %v1920_v25, %v13026_v18  ;;  %v1930_v24 = vsel %vm1926_vm14, %v1921_v22, %v13027_v17  ;;  %v1913_v21 = vsel %vm1908_vm12, %v14372_v33, %v13031_v20 }
 0x20b   : > { %v13040_v32 = vpop.permute.xlu0 %13039  ;;  %v13035_v35 = vpop.permute.xlu1 %13034  ;;  %v1939_v36 = vpack.c.bf16 %v1930_v24, %v1929_v30  ;;  %v1914_v27 = vsel %vm1908_vm12, %v14370_v31, %v13032_v14 }
 0x20c   : > { %v13042_v40 = vunpack.i.h.bf16 %v13040_v32  ;;  %v13041_v42 = vunpack.i.l.bf16 %v13040_v32  ;;  %v13037_v37 = vunpack.i.h.bf16 %v13035_v35  ;;  %v13036_v44 = vunpack.i.l.bf16 %v13035_v35  ;;  %12003 = vmatmul.mubr.msk.bf16.vlgmr.msra.gmra.mrb[16].mxu1 %vm2097_vm10, %v1940_v26 }
 0x20d   : > { %2154 = vmatprep.mubr.bf16.mxu0 %v1939_v36  ;;  %v1941_v45 = vpack.c.bf16 %v1914_v27, %v1913_v21 }
 0x20e   : > { %v1943_v53 = vpack.c.bf16 %v13042_v40, %v13041_v42  ;;  %v1923_v54 = vsel %vm1917_vm13, %v13032_v14, %v13037_v37  ;;  %v1922_v55 = vsel %vm1917_vm13, %v13031_v20, %v13036_v44  ;;  %v14441_v20 = vld [vmem:[%s15591_s13] ss:$0 sm:$0xff]  ;;  %s13743_s13 = smov [#allocation2]  }
 0x20f   : > { %v13045_v33 = vpop.permute.xlu1 %13044  ;;  %v13050_v52 = vpop.permute.xlu0 %13049  ;;  %v1931_v56 = vsel %vm1926_vm14, %v1922_v55, %v13041_v42  ;;  %v1932_v57 = vsel %vm1926_vm14, %v1923_v54, %v13042_v40  ;;  %v14449_v40 = vld [vmem:[%s13772_s21] ss:$0 sm:$0xff] }
 0x210   : > { %2155 = vmatmul.mubr.bf16.gmra.mrb[20].mxu0 %v1938_v13  ;;  %v13047_v31 = vunpack.i.h.bf16 %v13045_v33  ;;  %v13046_v58 = vunpack.i.l.bf16 %v13045_v33  ;;  %12006 = vmatprep.mubr.msk.bf16.mxu1 %vm2097_vm10, %v1943_v53  ;;  %v13052_v59 = vunpack.i.h.bf16 %v13050_v52  ;;  %v13051_v60 = vunpack.i.l.bf16 %v13050_v52 }
 0x211   : > { %v1942_v61 = vpack.c.bf16 %v1932_v57, %v1931_v56  ;;  %v13736_v13 = vmov 0.0  }
 0x212   : > { %v1915_v16 = vsel %vm1908_vm12, %v14378_v43, %v13046_v58  ;;  %v1916_v62 = vsel %vm1908_vm12, %v14376_v41, %v13047_v31  ;;  %v1925_v5 = vsel %vm1917_vm13, %v13047_v31, %v13052_v59  ;;  %v1924_v6 = vsel %vm1917_vm13, %v13046_v58, %v13051_v60  ;;  %v13161_v41 = vld [vmem:[%s13777_s25] sm:$0xff]  }
 0x213   : > { %2162 = vmatprep.mubr.bf16.mxu0 %v1942_v61  ;;  %v13055_v12 = vpop.permute.xlu1 %13054  ;;  %v1944_v63 = vpack.c.bf16 %v1916_v62, %v1915_v16  ;;  %12010 = vmatprep.subr.bf16.mxu1 %v13161_v41  ;;  %v14436_v17 = vsel %vm1409_vm0, 1.0, %v13736_v13  ;;  %vm2309_vm0 = vcmask 261120   ;;  %v14523_v19 = vsel %vm1412_vm7, 1.0, %v13736_v13 }
 0x214   : > { %v13057_v0 = vunpack.i.h.bf16 %v13055_v12  ;;  %v13056_v4 = vunpack.i.l.bf16 %v13055_v12  ;;  %12011 = vmatpush3.bf16.msra.mxu1 %v13161_v41  ;;  %v14529_v9 = vsel %vm1683_vm9, 1.0, %v13736_v13  ;;  %v14545_v23 = vsel %vm1281_vm2, 1.0, %v13736_v13 }
 0x215   : > { %12012 = vmatprep.subr.bf16.mxu1 %v13162_v11  ;;  %v14551_v39 = vsel %vm1282_vm4, 1.0, %v13736_v13  ;;  %v14563_v28 = vsel %vm1283_vm6, 1.0, %v13736_v13  ;;  %vm15593_vm2 = vcmp.eq.s32.totalorder %v14011_v2, %v14120_v47  ;;  %vm15595_vm4 = vcmp.eq.s32.totalorder %v14011_v2, %v14117_v46  ;;  %v10576_v46 = vld [vmem:[%s13782_s29] ss:$0 sm:$0xff] }
 0x216   : > { %v1946_v7 = vpack.c.bf16 %v13057_v0, %v13056_v4  ;;  %v1933_v8 = vsel %vm1926_vm14, %v1924_v6, %v13056_v4  ;;  %v1934_v10 = vsel %vm1926_vm14, %v1925_v5, %v13057_v0  ;;  %v14609_v47 = vsel %vm15595_vm4, 1.0, %v13736_v13 }
 0x217   : > { %v1945_v43 = vpack.c.bf16 %v1934_v10, %v1933_v8  ;;  %vm15597_vm6 = vcmp.eq.s32.totalorder %v14011_v2, %v14128_v49  ;;  %vm3228_vm7 = vcmask 785408   ;;  %vm13741_vm9 = vmmov 0  }
 0x218   : > { %2163 = vmatmul.mubr.bf16.gmra.mrb[24].mxu0 %v1941_v45  ;;  %12007 = vmatmul.mubr.msk.bf16.gmra.mrb[20].mxu1 %vm2097_vm10, %v1946_v7  ;;  %v14625_v51 = vsel %vm15597_vm6, 1.0, %v13736_v13  ;;  %vm7321_vm12 = vcmask 1043456   ;;  %vm7318_vm13 = vcmask 31744   ;;  %vm8714_vm14 = vcmask 1041408  }
 0x219   : > { %2170 = vmatprep.mubr.bf16.mxu0 %v1945_v43  ;;  %12013 = vmatpush3.bf16.msra.mxu1 %v13162_v11  ;;  %vm8711_vm10 = vcmask 15360  }
 0x220   : > { %2171 = vmatmul.mubr.bf16.gmra.mrb[28].mxu0 %v1944_v63 }
 0x221   : > { %12060 = vmatprep.mubr.msk.f32.mxu0 %vm2395_vm11, %v14436_v17 }
 0x2db   : > { %v11216_v18 = vpop.f32.mrb[16].mxu0 }
 0x2dc   : > { %v11217_v14 = vpop.f32.mrb[17].mxu0 }
 0x2dd   : > { %v11218_v22 = vadd.f32 %v11217_v14, %v11216_v18  ;;  %v11219_v25 = vpop.f32.mrb[18].mxu0 }
 0x2de   : > { %v11220_v26 = vpop.f32.mrb[19].mxu0 }
 0x2df   : > { %v11221_v30 = vadd.f32 %v11220_v26, %v11219_v25  ;;  %v12004_v24 = vpop.f32.mrb[16].mxu1  ;;  %v2149_v21 = vadd.f32 %v11218_v22, %v14441_v20 }
 0x2e0   : > { %v2213_v32 = vpop.f32.mrb[17].mxu1 }
 0x2e1   : > { %v2214_v35 = vadd.f32 %v2213_v32, %v2149_v21  ;;  %v12005_v36 = vpop.f32.mrb[18].mxu1  ;;  %v2152_v27 = vadd.f32 %v11221_v30, %v14441_v20 }
 0x2e2   : > { %v2216_v42 = vpop.f32.mrb[19].mxu1 }
 0x2e3   : > { %v2251_v37 = vmul.f32 %v14445_v3, %v2214_v35  ;;  %v11222_v44 = vpop.f32.mrb[20].mxu0  ;;  %v2217_v45 = vadd.f32 %v2216_v42, %v2152_v27 }
 0x2e4   : > { %v11223_v53 = vpop.f32.mrb[21].mxu0 }
 0x2e5   : > { %v2266_v54 = vadd.f32 %v14449_v40, %v2251_v37  ;;  %v2252_v55 = vmul.f32 %v14445_v3, %v2217_v45  ;;  %v14454_v33 = vpack.c.bf16 %v2217_v45, %v2214_v35  ;;  %v11224_v52 = vadd.f32 %v11223_v53, %v11222_v44  ;;  %v11225_v56 = vpop.f32.mrb[22].mxu0 }
 0x2e6   : > { %v11226_v57 = vpop.f32.mrb[23].mxu0 }
 0x2e7   : > { %v2267_v31 = vadd.f32 %v14449_v40, %v2252_v55  ;;  %v2157_v58 = vadd.f32 %v11224_v52, %v14441_v20  ;;  %v11227_v59 = vadd.f32 %v11226_v57, %v11225_v56  ;;  %12679 = vmatprep.subr.bf16.mxu1 %v14454_v33  ;;  %12695 = vmatprep.subr.bf16.mxu0 %v14454_v33  ;;  %v2274_v60 = vmax.f32 %v2266_v54, 0.0 }
 0x2e8   : > { %12697 = vmatpush3.bf16.msra.mxu0 %v14454_v33 }
 0x2e9   : > { %v2275_v61 = vmax.f32 %v2267_v31, 0.0  ;;  %v2222_v16 = vadd.f32 %v12004_v24, %v2157_v58  ;;  %v2160_v62 = vadd.f32 %v11227_v59, %v14441_v20 }
 0x2eb   : > { %v2282_v12 = vpack.c.bf16 %v2275_v61, %v2274_v60  ;;  %v2253_v63 = vmul.f32 %v14445_v3, %v2222_v16  ;;  %v2225_v0 = vadd.f32 %v12005_v36, %v2160_v62  ;;  %v11228_v4 = vpop.f32.mrb[24].mxu0  ;;  %v12008_v5 = vpop.f32.mrb[20].mxu1 }
 0x2ec   : > { %v11229_v6 = vpop.f32.mrb[25].mxu0  ;;  %v2229_v7 = vpop.f32.mrb[21].mxu1 }
 0x2ed   : > { %v2268_v8 = vadd.f32 %v14449_v40, %v2253_v63  ;;  %v2254_v10 = vmul.f32 %v14445_v3, %v2225_v0  ;;  %v14465_v43 = vpack.c.bf16 %v2225_v0, %v2222_v16  ;;  %v11230_v41 = vadd.f32 %v11229_v6, %v11228_v4  ;;  %v11231_v11 = vpop.f32.mrb[26].mxu0  ;;  %12014 = vmatprep.mubr.msk.bf16.mxu1 %vm2309_vm0, %v2282_v12  ;;  %v12009_v18 = vpop.f32.mrb[22].mxu1 }
 0x2ee   : > { %v11232_v14 = vpop.f32.mrb[27].mxu0  ;;  %v2232_v22 = vpop.f32.mrb[23].mxu1 }
 0x2ef   : > { %v2269_v25 = vadd.f32 %v14449_v40, %v2254_v10  ;;  %v11233_v26 = vadd.f32 %v11232_v14, %v11231_v11  ;;  %v2165_v30 = vadd.f32 %v11230_v41, %v14441_v20  ;;  %12699 = vmatprep.subr.bf16.mxu0 %v14465_v43  ;;  %v2276_v24 = vmax.f32 %v2268_v8, 0.0 }
 0x2f0   : > { %12701 = vmatpush3.bf16.msra.mxu0 %v14465_v43 }
 0x2f1   : > { %v2277_v21 = vmax.f32 %v2269_v25, 0.0  ;;  %v2230_v32 = vadd.f32 %v2229_v7, %v2165_v30  ;;  %v2168_v35 = vadd.f32 %v11233_v26, %v14441_v20 }
 0x2f3   : > { %v2283_v36 = vpack.c.bf16 %v2277_v21, %v2276_v24  ;;  %v2255_v27 = vmul.f32 %v14445_v3, %v2230_v32  ;;  %v2233_v42 = vadd.f32 %v2232_v22, %v2168_v35  ;;  %v11234_v37 = vpop.f32.mrb[28].mxu0 }
 0x2f4   : > { %v11235_v44 = vpop.f32.mrb[29].mxu0 }
 0x2f5   : > { %v2270_v45 = vadd.f32 %v14449_v40, %v2255_v27  ;;  %v2256_v53 = vmul.f32 %v14445_v3, %v2233_v42  ;;  %v14476_v54 = vpack.c.bf16 %v2233_v42, %v2230_v32  ;;  %v11236_v55 = vadd.f32 %v11235_v44, %v11234_v37  ;;  %v11237_v52 = vpop.f32.mrb[30].mxu0  ;;  %12015 = vmatmul.mubr.msk.bf16.vlgmr.msra.gmra.mrb[24].mxu1 %vm2309_vm0, %v2283_v36 }
 0x2f6   : > { %12681 = vmatpush3.bf16.msra.mxu1 %v14454_v33  ;;  %v11238_v56 = vpop.f32.mrb[31].mxu0 }
 0x2f7   : > { %v2271_v57 = vadd.f32 %v14449_v40, %v2256_v53  ;;  %v2173_v31 = vadd.f32 %v11236_v55, %v14441_v20  ;;  %v11239_v58 = vadd.f32 %v11238_v56, %v11237_v52  ;;  %12683 = vmatprep.subr.bf16.mxu1 %v14465_v43  ;;  %12703 = vmatprep.subr.bf16.mxu0 %v14476_v54  ;;  %v2278_v59 = vmax.f32 %v2270_v45, 0.0 }
 0x2f8   : > { %12705 = vmatpush3.bf16.msra.mxu0 %v14476_v54 }
 0x2f9   : > { %v2279_v60 = vmax.f32 %v2271_v57, 0.0  ;;  %v2238_v61 = vadd.f32 %v12008_v5, %v2173_v31  ;;  %v2176_v16 = vadd.f32 %v11239_v58, %v14441_v20  ;;  %v14498_v20 = vsel %vm1410_vm3, 1.0, %v13736_v13 }
 0x2fa   : > { %12685 = vmatpush3.bf16.msra.mxu1 %v14465_v43  ;;  %vm15594_vm3 = vcmp.eq.s32.totalorder %v14011_v2, %v14131_v50 }
 0x2fb   : > { %v2284_v62 = vpack.c.bf16 %v2279_v60, %v2278_v59  ;;  %v2257_v12 = vmul.f32 %v14445_v3, %v2238_v61  ;;  %v2241_v63 = vadd.f32 %v12009_v18, %v2176_v16  ;;  %12687 = vmatprep.subr.bf16.mxu1 %v14476_v54  ;;  %v14584_v34 = vsel %vm15594_vm3, 1.0, %v13736_v13 }
 0x2fd   : > { %v2272_v0 = vadd.f32 %v14449_v40, %v2257_v12  ;;  %v2258_v4 = vmul.f32 %v14445_v3, %v2241_v63  ;;  %v12690_v6 = vpack.c.bf16 %v2241_v63, %v2238_v61  ;;  %12018 = vmatprep.mubr.msk.bf16.mxu1 %vm2309_vm0, %v2284_v62  ;;  %v14505_v3 = vsel %vm1411_vm5, 1.0, %v13736_v13 }
 0x2fe   : > { %12689 = vmatpush3.bf16.msra.mxu1 %v14476_v54  ;;  %vm15596_vm5 = vcmp.eq.s32.totalorder %v14011_v2, %v14123_v48 }
 0x2ff   : > { %v2273_v5 = vadd.f32 %v14449_v40, %v2258_v4  ;;  %12691 = vmatprep.subr.bf16.mxu1 %v12690_v6  ;;  %12707 = vmatprep.subr.bf16.mxu0 %v12690_v6  ;;  %v2280_v7 = vmax.f32 %v2272_v0, 0.0  ;;  %v14511_v40 = vsel %vm1280_vm1, 1.0, %v13736_v13  ;;  %vm15592_vm1 = vcmp.eq.s32.totalorder %v14011_v2, %v14096_v38 }
 0x300   : > { %12709 = vmatpush3.bf16.msra.mxu0 %v12690_v6  ;;  %v14569_v29 = vsel %vm15592_vm1, 1.0, %v13736_v13  ;;  %v14598_v38 = vsel %vm1686_vm15, 1.0, %v13736_v13  ;;  %v14615_v50 = vsel %vm15596_vm5, 1.0, %v13736_v13  ;;  %vm4686_vm15 = vcmask 130048  }
 0x301   : > { %v2281_v8 = vmax.f32 %v2273_v5, 0.0  ;;  %12727 = vmatprep.subr.bf16.mxu0 %v14454_v33 }
 0x302   : > { %12693 = vmatpush3.bf16.msra.mxu1 %v12690_v6 }
 0x303   : > { %12711 = vmatprep.subr.bf16.mxu1 %v14454_v33  ;;  %12061 = vmatmul.mubr.msk.f32.vlgmr.msra.gmra.mrb[32].mxu0 %vm2395_vm11, %v14498_v20  ;;  %v2285_v15 = vpack.c.bf16 %v2281_v8, %v2280_v7 }
 0x304   : > { %12729 = vmatpush3.bf16.msra.mxu0 %v14454_v33  ;;  %12063 = vmatprep.mubr.msk.f32.mxu0 %vm2395_vm11, %v14505_v3 }
 0x305   : > { %12019 = vmatmul.mubr.msk.bf16.gmra.mrb[28].mxu1 %vm2309_vm0, %v2285_v15  ;;  %12731 = vmatprep.subr.bf16.mxu0 %v14465_v43 }
 0x306   : > { %12038 = vmatprep.mubr.msk.f32.mxu1 %vm2395_vm11, %v14511_v40 }
 0x307   : > { %12064 = vmatmul.mubr.msk.f32.gmra.mrb[34].mxu0 %vm2395_vm11, %v14523_v19 }
 0x308   : > { %12733 = vmatpush3.bf16.msra.mxu0 %v14465_v43  ;;  %12104 = vmatprep.mubr.msk.f32.mxu0 %vm2395_vm11, %v14529_v9 }
 0x309   : > { %12735 = vmatprep.subr.bf16.mxu0 %v14476_v54 }
 0x30c   : > { %12737 = vmatpush3.bf16.msra.mxu0 %v14476_v54 }
 0x30d   : > { %12039 = vmatmul.mubr.msk.f32.vlgmr.msra.gmra.mrb[32].mxu1 %vm2395_vm11, %v14545_v23  ;;  %12739 = vmatprep.subr.bf16.mxu0 %v12690_v6 }
 0x30e   : > { %12713 = vmatpush3.bf16.msra.mxu1 %v14454_v33  ;;  %12041 = vmatprep.mubr.msk.f32.mxu1 %vm2395_vm11, %v14551_v39  ;;  %v14576_v33 = vsel %vm15593_vm2, 1.0, %v13736_v13 }
 0x30f   : > { %12715 = vmatprep.subr.bf16.mxu1 %v14465_v43 }
 0x310   : > { %12741 = vmatpush3.bf16.msra.mxu0 %v12690_v6 }
 0x311   : > { %12042 = vmatmul.mubr.msk.f32.gmra.mrb[34].mxu1 %vm2395_vm11, %v14563_v28 }
 0x312   : > { %12717 = vmatpush3.bf16.msra.mxu1 %v14465_v43  ;;  %12082 = vmatprep.mubr.msk.f32.mxu1 %vm2395_vm11, %v14569_v29 }
 0x313   : > { %12719 = vmatprep.subr.bf16.mxu1 %v14476_v54  ;;  %12105 = vmatmul.mubr.msk.f32.vlgmr.msra.gmra.mrb[36].mxu0 %vm2395_vm11, %v14576_v33 }
 0x314   : > { %12107 = vmatprep.mubr.msk.f32.mxu0 %vm2395_vm11, %v14584_v34 }
 0x316   : > { %12721 = vmatpush3.bf16.msra.mxu1 %v14476_v54 }
 0x317   : > { %12723 = vmatprep.subr.bf16.mxu1 %v12690_v6  ;;  %12108 = vmatmul.mubr.msk.f32.gmra.mrb[38].mxu0 %vm2395_vm11, %v14598_v38 }
 0x318   : > { %12148 = vmatprep.mubr.msk.f32.mxu0 %vm2395_vm11, %v14436_v17 }
 0x31a   : > { %12725 = vmatpush3.bf16.msra.mxu1 %v12690_v6 }
 0x31d   : > { %12083 = vmatmul.mubr.msk.f32.vlgmr.msra.gmra.mrb[36].mxu1 %vm2395_vm11, %v14609_v47 }
 0x31e   : > { %12085 = vmatprep.mubr.msk.f32.mxu1 %vm2395_vm11, %v14615_v50 }
 0x321   : > { %12086 = vmatmul.mubr.msk.f32.gmra.mrb[38].mxu1 %vm2395_vm11, %v14625_v51 }
 0x322   : > { %12126 = vmatprep.mubr.msk.f32.mxu1 %vm2395_vm11, %v14511_v40 }
 0x3c8   : > { %v12016_v48 = vpop.f32.mrb[24].mxu1 }
 0x3c9   : > { %v2365_v10 = vadd.f32 %v12016_v48, %v10576_v46  ;;  %v2356_v43 = vpop.f32.mrb[25].mxu1  ;;  %v13165_v48 = vld [vmem:[%s15587_s3 + $0x48] sm:$0xff]  }
 0x3ca   : > { %v2357_v41 = vadd.f32 %v10576_v46, %v2356_v43  ;;  %v12017_v11 = vpop.f32.mrb[26].mxu1  ;;  %v13166_v43 = vld [vmem:[%s15587_s3 + $0x8] sm:$0xff]  }
 0x3cb   : > { %v2368_v18 = vadd.f32 %v12017_v11, %v10576_v46  ;;  %v2359_v14 = vpop.f32.mrb[27].mxu1  ;;  %v2389_v25 = vmax.f32 %v2365_v10, 0.0 }
 0x3cc   : > { %v2360_v22 = vadd.f32 %v10576_v46, %v2359_v14  ;;  %v2387_v2 = vmax.f32 %v2357_v41, 0.0 }
 0x3cd   : > { %v2390_v26 = vmax.f32 %v2368_v18, 0.0 }
 0x3ce   : > { %v2388_v49 = vmax.f32 %v2360_v22, 0.0 }
 0x3cf   : > { %v12746_v30 = vpack.c.bf16 %v2390_v26, %v2389_v25 }
 0x3d0   : > { %v12742_v24 = vpack.c.bf16 %v2388_v49, %v2387_v2 }
 0x3d2   : > { %12743 = vmatprep.subr.bf16.mxu1 %v12742_v24  ;;  %12759 = vmatprep.subr.bf16.mxu0 %v12742_v24 }
 0x3d3   : > { %12745 = vmatpush3.bf16.msra.mxu1 %v12742_v24  ;;  %12761 = vmatpush3.bf16.msra.mxu0 %v12742_v24 }
 0x3d4   : > { %12747 = vmatprep.subr.bf16.mxu1 %v12746_v30  ;;  %12763 = vmatprep.subr.bf16.mxu0 %v12746_v30 }
 0x3d6   : > { %v12062_v21 = vpop.f32.mrb[32].mxu0 }
 0x3d7   : > { %12749 = vmatpush3.bf16.msra.mxu1 %v12746_v30  ;;  %12765 = vmatpush3.bf16.msra.mxu0 %v12746_v30  ;;  %v2571_v32 = vpop.f32.mrb[33].mxu0 }
 0x3d8   : > { %v12020_v35 = vpop.f32.mrb[28].mxu1  ;;  %v13058_v36 = vpack.i.bf16 %v12062_v21, %v2571_v32 }
 0x3d9   : > { %v2381_v27 = vadd.f32 %v12020_v35, %v10576_v46  ;;  %v2372_v42 = vpop.f32.mrb[29].mxu1 }
 0x3da   : > { %v2373_v37 = vadd.f32 %v10576_v46, %v2372_v42  ;;  %v12021_v44 = vpop.f32.mrb[30].mxu1  ;;  %v14632_v45 = vpop.f32.mrb[34].mxu0  ;;  %13059 = vrot.lane.b32.xlu1 %v13058_v36, %s15540_s22 }
 0x3db   : > { %v2384_v53 = vadd.f32 %v12021_v44, %v10576_v46  ;;  %v2375_v54 = vpop.f32.mrb[31].mxu1  ;;  %v14635_v55 = vpop.f32.mrb[35].mxu0  ;;  %v2393_v57 = vmax.f32 %v2381_v27, 0.0 }
 0x3dc   : > { %v2376_v52 = vadd.f32 %v10576_v46, %v2375_v54  ;;  %v13073_v56 = vpack.i.bf16 %v14632_v45, %v14635_v55  ;;  %v2391_v58 = vmax.f32 %v2373_v37, 0.0 }
 0x3dd   : > { %v2394_v31 = vmax.f32 %v2384_v53, 0.0 }
 0x3de   : > { %v2392_v59 = vmax.f32 %v2376_v52, 0.0 }
 0x3df   : > { %v12754_v60 = vpack.c.bf16 %v2394_v31, %v2393_v57 }
 0x3e0   : > { %v12750_v61 = vpack.c.bf16 %v2392_v59, %v2391_v58  ;;  %v14639_v16 = vpop.f32.mrb[32].mxu1 }
 0x3e1   : > { %v14641_v62 = vpop.f32.mrb[33].mxu1 }
 0x3e2   : > { %12751 = vmatprep.subr.bf16.mxu1 %v12750_v61  ;;  %12767 = vmatprep.subr.bf16.mxu0 %v12750_v61 }
 0x3e3   : > { %12753 = vmatpush3.bf16.msra.mxu1 %v12750_v61  ;;  %12769 = vmatpush3.bf16.msra.mxu0 %v12750_v61 }
 0x3e4   : > { %12755 = vmatprep.subr.bf16.mxu1 %v12754_v60  ;;  %12771 = vmatprep.subr.bf16.mxu0 %v12754_v60  ;;  %v14643_v12 = vpop.f32.mrb[34].mxu1 }
 0x3e5   : > { %v14645_v63 = vpop.f32.mrb[35].mxu1 }
 0x3e6   : > { %v12106_v0 = vpop.f32.mrb[36].mxu0 }
 0x3e7   : > { %12757 = vmatpush3.bf16.msra.mxu1 %v12754_v60  ;;  %12773 = vmatpush3.bf16.msra.mxu0 %v12754_v60  ;;  %v2765_v4 = vpop.f32.mrb[37].mxu0 }
 0x3e8   : > { %12775 = vmatprep.subr.bf16.mxu1 %v12742_v24  ;;  %12791 = vmatprep.subr.bf16.mxu0 %v12742_v24  ;;  %v13063_v6 = vpack.i.bf16 %v12106_v0, %v2765_v4 }
 0x3ea   : > { %12127 = vmatmul.mubr.msk.f32.vlgmr.msra.gmra.mrb[40].mxu1 %vm2395_vm11, %v14545_v23  ;;  %12149 = vmatmul.mubr.msk.f32.vlgmr.msra.gmra.mrb[40].mxu0 %vm2395_vm11, %v14498_v20  ;;  %v12109_v5 = vpop.f32.mrb[38].mxu0 }
 0x3eb   : > { %12777 = vmatpush3.bf16.msra.mxu1 %v12742_v24  ;;  %12793 = vmatpush3.bf16.msra.mxu0 %v12742_v24  ;;  %v2775_v7 = vpop.f32.mrb[39].mxu0 }
 0x3ec   : > { %12779 = vmatprep.subr.bf16.mxu1 %v12746_v30  ;;  %12795 = vmatprep.subr.bf16.mxu0 %v12746_v30  ;;  %v13113_v8 = vpack.i.bf16 %v12109_v5, %v2775_v7 }
 0x3ed   : > { %12151 = vmatprep.mubr.msk.f32.mxu0 %vm2395_vm11, %v14505_v3  ;;  %12129 = vmatprep.mubr.msk.f32.mxu1 %vm2395_vm11, %v14551_v39 }
 0x3ee   : > { %12152 = vmatmul.mubr.msk.f32.gmra.mrb[42].mxu0 %vm2395_vm11, %v14523_v19  ;;  %12130 = vmatmul.mubr.msk.f32.gmra.mrb[42].mxu1 %vm2395_vm11, %v14563_v28 }
 0x3ef   : > { %12781 = vmatpush3.bf16.msra.mxu1 %v12746_v30  ;;  %12797 = vmatpush3.bf16.msra.mxu0 %v12746_v30 }
 0x3f0   : > { %12783 = vmatprep.subr.bf16.mxu1 %v12750_v61  ;;  %12799 = vmatprep.subr.bf16.mxu0 %v12750_v61  ;;  %v12084_v15 = vpop.f32.mrb[36].mxu1 }
 0x3f1   : > { %12170 = vmatprep.mubr.msk.f32.mxu1 %vm2395_vm11, %v14569_v29  ;;  %12192 = vmatprep.mubr.msk.f32.mxu0 %vm2395_vm11, %v14529_v9  ;;  %v2668_v3 = vpop.f32.mrb[37].mxu1 }
 0x3f2   : > { %13064 = vrot.lane.b32.xlu1 %v13063_v6, %s15543_s23  ;;  %v13068_v39 = vpack.i.bf16 %v12084_v15, %v2668_v3  ;;  %v13173_v6 = vld [vmem:[%s15587_s3 + $0x68] sm:$0xff]  }
 0x3f3   : > { %12785 = vmatpush3.bf16.msra.mxu1 %v12750_v61  ;;  %12801 = vmatpush3.bf16.msra.mxu0 %v12750_v61  ;;  %v13168_v61 = vld [vmem:[%s15587_s3 + $0x10] sm:$0xff]   ;;  %v13174_v15 = vld [vmem:[%s15587_s3 + $0x28] sm:$0xff]  }
 0x3f4   : > { %12787 = vmatprep.subr.bf16.mxu1 %v12754_v60  ;;  %12803 = vmatprep.subr.bf16.mxu0 %v12754_v60  ;;  %v12087_v19 = vpop.f32.mrb[38].mxu1 }
 0x3f5   : > { %v2678_v28 = vpop.f32.mrb[39].mxu1 }
 0x3f6   : > { %13069 = vrot.lane.b32.xlu1 %v13068_v39, %s15541_s2  ;;  %v13078_v46 = vpack.i.bf16 %v12087_v19, %v2678_v28 }
 0x3f7   : > { %12789 = vmatpush3.bf16.msra.mxu1 %v12754_v60  ;;  %12805 = vmatpush3.bf16.msra.mxu0 %v12754_v60  ;;  %v13167_v60 = vld [vmem:[%s15587_s3 + $0x50] sm:$0xff]  }
 0x3fa   : > { %12171 = vmatmul.mubr.msk.f32.vlgmr.msra.gmra.mrb[44].mxu1 %vm2395_vm11, %v14609_v47  ;;  %12193 = vmatmul.mubr.msk.f32.vlgmr.msra.gmra.mrb[44].mxu0 %vm2395_vm11, %v14576_v33 }
 0x3fb   : > { %12173 = vmatprep.mubr.msk.f32.mxu1 %vm2395_vm11, %v14615_v50  ;;  %12195 = vmatprep.mubr.msk.f32.mxu0 %vm2395_vm11, %v14584_v34  ;;  %v13163_v50 = vld [vmem:[%s15587_s3 + $0x40] sm:$0xff]  }
 0x3fc   : > { %13074 = vrot.lane.b32.xlu1 %v13073_v56, %s15540_s22  ;;  %v13164_v34 = vld [vmem:[%s15587_s3] sm:$0xff]   ;;  %11348 = vmatprep.subr.bf16.mxu0 %v13163_v50  ;;  %v13175_v50 = vld [vmem:[%s15587_s3 + $0x70] sm:$0xff]  }
 0x3fd   : > { %11349 = vmatpush3.bf16.msra.mxu0 %v13164_v34  ;;  %v13176_v34 = vld [vmem:[%s15587_s3 + $0x30] sm:$0xff]  }
 0x3fe   : > { %12174 = vmatmul.mubr.msk.f32.gmra.mrb[46].mxu1 %vm2395_vm11, %v14625_v51  ;;  %12196 = vmatmul.mubr.msk.f32.gmra.mrb[46].mxu0 %vm2395_vm11, %v14598_v38 }
 0x3ff   : > { %12262 = vmatprep.mubr.msk.f32.mxu1 %vm2309_vm0, %v14511_v40  ;;  %11350 = vmatprep.subr.bf16.mxu0 %v13165_v48  ;;  %v13177_v48 = vld [vmem:[%s15587_s3 + $0x78] sm:$0xff]  }
 0x400   : > { %13079 = vrot.lane.b32.xlu1 %v13078_v46, %s15541_s2 }
 0x401   : > { %11351 = vmatpush3.bf16.msra.mxu0 %v13166_v43 }
 0x402   : > { %11352 = vmatprep.subr.bf16.mxu0 %v13167_v60 }
 0x404   : > { %13114 = vrot.lane.b32.xlu1 %v13113_v8, %s15543_s23 }
 0x405   : > { %11353 = vmatpush3.bf16.msra.mxu0 %v13168_v61 }
 0x44c   : > { %v13060_v10 = vpop.permute.xlu1 %13059 }
 0x44d   : > { %v13062_v41 = vunpack.i.h.bf16 %v13060_v10  ;;  %v13061_v51 = vunpack.i.l.bf16 %v13060_v10  ;;  %v13178_v10 = vld [vmem:[%s15587_s3 + $0x38] sm:$0xff]  }
 0x44f   : > { %v3220_v38 = vsel %vm2309_vm0, %v14641_v62, %v13061_v51  ;;  %v3221_v18 = vsel %vm2309_vm0, %v14639_v16, %v13062_v41  ;;  %v13169_v16 = vld [vmem:[%s15587_s3 + $0x58] sm:$0xff]  }
 0x450   : > { %v13170_v62 = vld [vmem:[%s15587_s3 + $0x18] sm:$0xff]   ;;  %11354 = vmatprep.subr.bf16.mxu0 %v13169_v16 }
 0x451   : > { %11355 = vmatpush3.bf16.msra.mxu0 %v13170_v62 }
 0x464   : > { %v13065_v11 = vpop.permute.xlu1 %13064 }
 0x465   : > { %v13067_v14 = vunpack.i.h.bf16 %v13065_v11  ;;  %v13066_v22 = vunpack.i.l.bf16 %v13065_v11 }
 0x468   : > { %v13070_v25 = vpop.permute.xlu1 %13069 }
 0x469   : > { %v13072_v26 = vunpack.i.h.bf16 %v13070_v25  ;;  %v13071_v2 = vunpack.i.l.bf16 %v13070_v25 }
 0x46b   : > { %v3225_v49 = vsel %vm2395_vm11, %v3221_v18, %v13072_v26  ;;  %v3224_v30 = vsel %vm2395_vm11, %v3220_v38, %v13071_v2 }
 0x46c   : > { %v14696_v24 = vsel %vm3228_vm7, %v3225_v49, %v13067_v14  ;;  %v14699_v21 = vsel %vm3228_vm7, %v3224_v30, %v13066_v22  ;;  %v13179_v30 = vld [vmem:[%s13807_s24] sm:$0xff]  }
 0x46d   : > { %v3245_v32 = vpack.c.bf16 %v14696_v24, %v14699_v21 }
 0x46e   : > { %v13075_v35 = vpop.permute.xlu1 %13074 }
 0x46f   : > { %v13077_v36 = vunpack.i.h.bf16 %v13075_v35  ;;  %v13076_v27 = vunpack.i.l.bf16 %v13075_v35 }
 0x471   : > { %v3223_v37 = vsel %vm2309_vm0, %v14643_v12, %v13077_v36  ;;  %v3222_v44 = vsel %vm2309_vm0, %v14645_v63, %v13076_v27  ;;  %v13171_v12 = vld [vmem:[%s15587_s3 + $0x60] sm:$0xff]  }
 0x472   : > { %v13080_v42 = vpop.permute.xlu1 %13079  ;;  %v13172_v63 = vld [vmem:[%s15587_s3 + $0x20] sm:$0xff]   ;;  %11356 = vmatprep.subr.bf16.mxu0 %v13171_v12  ;;  %s15607_s3 = smov 64  }
 0x473   : > { %v13082_v45 = vunpack.i.h.bf16 %v13080_v42  ;;  %v13081_v53 = vunpack.i.l.bf16 %v13080_v42  ;;  %11357 = vmatpush3.bf16.msra.mxu0 %v13172_v63 }
 0x474   : > { %11358 = vmatprep.subr.bf16.mxu0 %v13173_v6 }
 0x475   : > { %v3227_v54 = vsel %vm2395_vm11, %v3223_v37, %v13082_v45  ;;  %v3226_v55 = vsel %vm2395_vm11, %v3222_v44, %v13081_v53 }
 0x476   : > { %v13115_v52 = vpop.permute.xlu1 %13114 }
 0x477   : > { %v13117_v56 = vunpack.i.h.bf16 %v13115_v52  ;;  %v13116_v57 = vunpack.i.l.bf16 %v13115_v52  ;;  %11359 = vmatpush3.bf16.msra.mxu0 %v13174_v15 }
 0x478   : > { %11360 = vmatprep.subr.bf16.mxu0 %v13175_v50 }
 0x479   : > { %v14710_v31 = vsel %vm3228_vm7, %v3226_v55, %v13116_v57  ;;  %v14713_v58 = vsel %vm3228_vm7, %v3227_v54, %v13117_v56 }
 0x47a   : > { %v3247_v59 = vpack.c.bf16 %v14713_v58, %v14710_v31 }
 0x47b   : > { %11361 = vmatpush3.bf16.msra.mxu0 %v13176_v34 }
 0x47c   : > { %11362 = vmatprep.subr.bf16.mxu0 %v13177_v48  ;;  %v10615_v48 = vld [vmem:[%s15598_s8] ss:$0 sm:$0xff] }
 0x47f   : > { %11363 = vmatpush3.bf16.msra.mxu0 %v13178_v10 }
 0x480   : > { %12198 = vmatprep.subr.bf16.mxu0 %v13179_v30 }
 0x4bd   : > { %v12128_v0 = vpop.f32.mrb[40].mxu1  ;;  %v12150_v4 = vpop.f32.mrb[40].mxu0 }
 0x4be   : > { %v2850_v5 = vpop.f32.mrb[41].mxu1  ;;  %v2935_v7 = vpop.f32.mrb[41].mxu0 }
 0x4bf   : > { %v13083_v8 = vpack.i.bf16 %v12150_v4, %v2935_v7 }
 0x4c1   : > { %13084 = vrot.lane.b32.xlu0 %v13083_v8, %s15540_s22  ;;  %v12153_v3 = vpop.f32.mrb[42].mxu0  ;;  %v12131_v39 = vpop.f32.mrb[42].mxu1 }
 0x4c2   : > { %v2945_v19 = vpop.f32.mrb[43].mxu0  ;;  %v2860_v28 = vpop.f32.mrb[43].mxu1 }
 0x4c3   : > { %v13088_v46 = vpack.i.bf16 %v12153_v3, %v2945_v19 }
 0x4c5   : > { %13089 = vrot.lane.b32.xlu0 %v13088_v46, %s15540_s22  ;;  %s15601_s22 = sld [smem:[#allocation12_spill]] }
 0x4cd   : > { %v12172_v43 = vpop.f32.mrb[44].mxu1  ;;  %v12194_v41 = vpop.f32.mrb[44].mxu0 }
 0x4ce   : > { %v3020_v51 = vpop.f32.mrb[45].mxu1  ;;  %v3105_v11 = vpop.f32.mrb[45].mxu0 }
 0x4cf   : > { %v13093_v38 = vpack.i.bf16 %v12172_v43, %v3020_v51  ;;  %v13098_v18 = vpack.i.bf16 %v12194_v41, %v3105_v11  ;;  %v10632_v51 = vld [vmem:[%s15599_s14] ss:$0 sm:$0xff]  ;;  %s13631_s14 = sshll.u32 %s13743_s13, 4  ;;  %s13632_s14 = int_to_ptr.vmem [resolvable:$false] %s13631_s14 }
 0x4d1   : > { %13094 = vrot.lane.b32.xlu0 %v13093_v38, %s15541_s2  ;;  %v12175_v14 = vpop.f32.mrb[46].mxu1  ;;  %v12197_v22 = vpop.f32.mrb[46].mxu0 }
 0x4d2   : > { %v3030_v25 = vpop.f32.mrb[47].mxu1  ;;  %v3115_v26 = vpop.f32.mrb[47].mxu0 }
 0x4d3   : > { %v13103_v2 = vpack.i.bf16 %v12175_v14, %v3030_v25  ;;  %v13108_v49 = vpack.i.bf16 %v12197_v22, %v3115_v26 }
 0x4d5   : > { %13099 = vrot.lane.b32.xlu0 %v13098_v18, %s15543_s23 }
 0x4d9   : > { %13104 = vrot.lane.b32.xlu0 %v13103_v2, %s15541_s2 }
 0x4dd   : > { %13109 = vrot.lane.b32.xlu0 %v13108_v49, %s15543_s23  ;;  %s15603_s23 = sld [smem:[#allocation14_spill]] }
 0x533   : > { %v13085_v35 = vpop.permute.xlu0 %13084 }
 0x534   : > { %v13087_v42 = vunpack.i.h.bf16 %v13085_v35  ;;  %v13086_v37 = vunpack.i.l.bf16 %v13085_v35 }
 0x536   : > { %v3233_v54 = vsel %vm2309_vm0, %v2850_v5, %v13086_v37  ;;  %v3234_v55 = vsel %vm2309_vm0, %v12128_v0, %v13087_v42 }
 0x537   : > { %v13090_v36 = vpop.permute.xlu0 %13089 }
 0x538   : > { %v13092_v63 = vunpack.i.h.bf16 %v13090_v36  ;;  %v13091_v4 = vunpack.i.l.bf16 %v13090_v36 }
 0x53a   : > { %v3235_v5 = vsel %vm2309_vm0, %v2860_v28, %v13091_v4  ;;  %v3236_v8 = vsel %vm2309_vm0, %v12131_v39, %v13092_v63  ;;  %v13181_v39 = vld [vmem:[%s13807_s24 + $0x10] sm:$0xff]   ;;  %v13182_v28 = vld [vmem:[%s13807_s24 + $0x18] sm:$0xff]  }
 0x543   : > { %v13095_v27 = vpop.permute.xlu0 %13094 }
 0x544   : > { %v13097_v44 = vunpack.i.h.bf16 %v13095_v27  ;;  %v13096_v45 = vunpack.i.l.bf16 %v13095_v27 }
 0x546   : > { %v3238_v57 = vsel %vm2395_vm11, %v3234_v55, %v13097_v44  ;;  %v3237_v60 = vsel %vm2395_vm11, %v3233_v54, %v13096_v45 }
 0x547   : > { %v13100_v53 = vpop.permute.xlu0 %13099 }
 0x548   : > { %v13102_v52 = vunpack.i.h.bf16 %v13100_v53  ;;  %v13101_v56 = vunpack.i.l.bf16 %v13100_v53 }
 0x54a   : > { %v3241_v61 = vsel %vm3228_vm7, %v3237_v60, %v13101_v56  ;;  %v3242_v16 = vsel %vm3228_vm7, %v3238_v57, %v13102_v52 }
 0x54b   : > { %v13105_v62 = vpop.permute.xlu0 %13104  ;;  %v3246_v12 = vpack.c.bf16 %v3242_v16, %v3241_v61 }
 0x54c   : > { %v13107_v6 = vunpack.i.h.bf16 %v13105_v62  ;;  %v13106_v7 = vunpack.i.l.bf16 %v13105_v62  ;;  %v10634_v62 = vld [vmem:[%s13812_s30] ss:$0 sm:$0xff] }
 0x54d   : > { %3416 = vmatprep.mubr.bf16.mxu0 %v3246_v12 }
 0x54e   : > { %3417 = vmatmul.mubr.bf16.vlgmr.msra.gmra.mrb[48].mxu0 %v3245_v32  ;;  %v3240_v19 = vsel %vm2395_vm11, %v3236_v8, %v13107_v6  ;;  %v3239_v46 = vsel %vm2395_vm11, %v3235_v5, %v13106_v7  ;;  %v13180_v32 = vld [vmem:[%s13807_s24 + $0x8] sm:$0xff]  }
 0x54f   : > { %v13110_v0 = vpop.permute.xlu0 %13109  ;;  %12199 = vmatpush3.bf16.msra.mxu0 %v13179_v30 }
 0x550   : > { %v13112_v15 = vunpack.i.h.bf16 %v13110_v0  ;;  %v13111_v3 = vunpack.i.l.bf16 %v13110_v0  ;;  %12200 = vmatprep.subr.bf16.mxu0 %v13180_v32 }
 0x552   : > { %v3243_v50 = vsel %vm3228_vm7, %v3239_v46, %v13111_v3  ;;  %v3244_v24 = vsel %vm3228_vm7, %v3240_v19, %v13112_v15 }
 0x553   : > { %v3248_v21 = vpack.c.bf16 %v3244_v24, %v3243_v50  ;;  %12201 = vmatpush3.bf16.msra.mxu0 %v13180_v32 }
 0x554   : > { %12202 = vmatprep.subr.bf16.mxu0 %v13181_v39 }
 0x555   : > { %3424 = vmatprep.mubr.bf16.mxu0 %v3248_v21 }
 0x556   : > { %3425 = vmatmul.mubr.bf16.gmra.mrb[52].mxu0 %v3247_v59  ;;  %v10633_v59 = vld [vmem:[%s13802_s19] ss:$0 sm:$0xff] }
 0x557   : > { %12203 = vmatpush3.bf16.msra.mxu0 %v13181_v39 }
 0x558   : > { %12204 = vmatprep.subr.bf16.mxu0 %v13182_v28 }
 0x55b   : > { %12205 = vmatpush3.bf16.msra.mxu0 %v13182_v28 }
 0x621   : > { %v11364_v34 = vpop.f32.mrb[48].mxu0 }
 0x622   : > { %v11365_v10 = vpop.f32.mrb[49].mxu0 }
 0x623   : > { %v11366_v43 = vadd.f32 %v11365_v10, %v11364_v34  ;;  %v11367_v41 = vpop.f32.mrb[50].mxu0  ;;  %v13185_v10 = vld [vmem:[%s15586_s6 + $0x48] sm:$0xff]  }
 0x624   : > { %v11368_v11 = vpop.f32.mrb[51].mxu0 }
 0x625   : > { %v3419_v31 = vadd.f32 %v11366_v43, %v10615_v48  ;;  %v11369_v58 = vadd.f32 %v11368_v11, %v11367_v41  ;;  %v13186_v41 = vld [vmem:[%s15586_s6 + $0x8] sm:$0xff]   ;;  %v13188_v11 = vld [vmem:[%s15586_s6 + $0x10] sm:$0xff]  }
 0x627   : > { %v3440_v38 = vmul.f32 %v10632_v51, %v3419_v31  ;;  %v3422_v18 = vadd.f32 %v11369_v58, %v10615_v48  ;;  %v13189_v58 = vld [vmem:[%s15586_s6 + $0x58] sm:$0xff]  }
 0x629   : > { %v3451_v14 = vadd.f32 %v10633_v59, %v3440_v38  ;;  %v3441_v22 = vmul.f32 %v10632_v51, %v3422_v18  ;;  %v12806_v25 = vpack.c.bf16 %v3422_v18, %v3419_v31  ;;  %v11370_v26 = vpop.f32.mrb[52].mxu0  ;;  %v13191_v38 = vld [vmem:[%s15586_s6 + $0x60] sm:$0xff]  }
 0x62a   : > { %v11371_v2 = vpop.f32.mrb[53].mxu0  ;;  %v13192_v18 = vld [vmem:[%s15586_s6 + $0x20] sm:$0xff]  }
 0x62b   : > { %v3452_v49 = vadd.f32 %v10633_v59, %v3441_v22  ;;  %v11372_v30 = vadd.f32 %v11371_v2, %v11370_v26  ;;  %v11373_v35 = vpop.f32.mrb[54].mxu0  ;;  %12807 = vmatprep.subr.bf16.mxu0 %v12806_v25  ;;  %v3455_v27 = vmax.f32 %v3451_v14, 0.0  ;;  %v13193_v14 = vld [vmem:[%s15586_s6 + $0x68] sm:$0xff]   ;;  %v13196_v26 = vld [vmem:[%s15586_s6 + $0x30] sm:$0xff]   ;;  %v13197_v2 = vld [vmem:[%s15586_s6 + $0x78] sm:$0xff]  }
 0x62c   : > { %v11374_v36 = vpop.f32.mrb[55].mxu0  ;;  %v13194_v22 = vld [vmem:[%s15586_s6 + $0x28] sm:$0xff]  }
 0x62d   : > { %v3456_v42 = vmax.f32 %v3452_v49, 0.0  ;;  %v3427_v37 = vadd.f32 %v11372_v30, %v10615_v48  ;;  %v11375_v44 = vadd.f32 %v11374_v36, %v11373_v35  ;;  %v13198_v49 = vld [vmem:[%s15586_s6 + $0x38] sm:$0xff]   ;;  %v13199_v30 = vld [vmem:[%s15586_s6 + $0xc0] sm:$0xff]   ;;  %v13201_v36 = vld [vmem:[%s15586_s6 + $0xc8] sm:$0xff]  }
 0x62e   : > { %v13200_v35 = vld [vmem:[%s15586_s6 + $0x80] sm:$0xff]  }
 0x62f   : > { %v3442_v45 = vmul.f32 %v10632_v51, %v3427_v37  ;;  %v3430_v53 = vadd.f32 %v11375_v44, %v10615_v48  ;;  %v3459_v54 = vpack.c.bf16 %v3456_v42, %v3455_v27  ;;  %v13183_v48 = vld [vmem:[%s15586_s6 + $0x40] sm:$0xff]   ;;  %v13202_v27 = vld [vmem:[%s15586_s6 + $0x88] sm:$0xff]   ;;  %v13203_v42 = vld [vmem:[%s15586_s6 + $0xd0] sm:$0xff]  }
 0x630   : > { %v13205_v44 = vld [vmem:[%s15586_s6 + $0xd8] sm:$0xff]  }
 0x631   : > { %v3453_v55 = vadd.f32 %v10633_v59, %v3442_v45  ;;  %v3443_v52 = vmul.f32 %v10632_v51, %v3430_v53  ;;  %v12810_v56 = vpack.c.bf16 %v3430_v53, %v3427_v37  ;;  %12206 = vmatprep.mubr.msk.bf16.mxu0 %vm2395_vm11, %v3459_v54  ;;  %v13187_v51 = vld [vmem:[%s15586_s6 + $0x50] sm:$0xff]   ;;  %v13206_v45 = vld [vmem:[%s15586_s6 + $0x98] sm:$0xff]   ;;  %v13207_v53 = vld [vmem:[%s15586_s6 + $0xe0] sm:$0xff]  }
 0x632   : > { %v13204_v37 = vld [vmem:[%s15586_s6 + $0x90] sm:$0xff]   ;;  %v13208_v54 = vld [vmem:[%s15586_s6 + $0xa0] sm:$0xff]  }
 0x633   : > { %v3454_v57 = vadd.f32 %v10633_v59, %v3443_v52  ;;  %v3457_v60 = vmax.f32 %v3453_v55, 0.0 }
 0x635   : > { %v3458_v61 = vmax.f32 %v3454_v57, 0.0 }
 0x637   : > { %v3460_v16 = vpack.c.bf16 %v3458_v61, %v3457_v60 }
 0x639   : > { %12207 = vmatmul.mubr.msk.bf16.vlgmr.msra.gmra.mrb[56].mxu0 %vm2395_vm11, %v3460_v16 }
 0x63a   : > { %12809 = vmatpush3.bf16.msra.mxu0 %v12806_v25  ;;  %12218 = vmatprep.mubr.msk.f32.mxu0 %vm2309_vm0, %v14511_v40 }
 0x63b   : > { %12811 = vmatprep.subr.bf16.mxu0 %v12810_v56 }
 0x63e   : > { %12813 = vmatpush3.bf16.msra.mxu0 %v12810_v56 }
 0x63f   : > { %12815 = vmatprep.subr.bf16.mxu0 %v12806_v25 }
 0x641   : > { %12219 = vmatmul.mubr.msk.f32.vlgmr.msra.gmra.mrb[60].mxu0 %vm2309_vm0, %v14545_v23 }
 0x642   : > { %12817 = vmatpush3.bf16.msra.mxu0 %v12806_v25  ;;  %12229 = vmatprep.mubr.msk.f32.mxu0 %vm2309_vm0, %v14436_v17 }
 0x643   : > { %12819 = vmatprep.subr.bf16.mxu0 %v12810_v56 }
 0x646   : > { %12821 = vmatpush3.bf16.msra.mxu0 %v12810_v56 }
 0x647   : > { %12823 = vmatprep.subr.bf16.mxu0 %v12806_v25 }
 0x649   : > { %12230 = vmatmul.mubr.msk.f32.vlgmr.msra.gmra.mrb[62].mxu0 %vm2309_vm0, %v14498_v20 }
 0x64a   : > { %12825 = vmatpush3.bf16.msra.mxu0 %v12806_v25  ;;  %12240 = vmatprep.mubr.msk.f32.mxu0 %vm2309_vm0, %v14569_v29 }
 0x64b   : > { %12827 = vmatprep.subr.bf16.mxu0 %v12810_v56 }
 0x64e   : > { %12829 = vmatpush3.bf16.msra.mxu0 %v12810_v56 }
 0x64f   : > { %12831 = vmatprep.subr.bf16.mxu0 %v12806_v25 }
 0x651   : > { %12241 = vmatmul.mubr.msk.f32.vlgmr.msra.gmra.mrb[64].mxu0 %vm2309_vm0, %v14609_v47 }
 0x652   : > { %12833 = vmatpush3.bf16.msra.mxu0 %v12806_v25  ;;  %12251 = vmatprep.mubr.msk.f32.mxu0 %vm2309_vm0, %v14529_v9  ;;  %v13195_v25 = vld [vmem:[%s15586_s6 + $0x70] sm:$0xff]  }
 0x653   : > { %12835 = vmatprep.subr.bf16.mxu0 %v12810_v56 }
 0x656   : > { %12837 = vmatpush3.bf16.msra.mxu0 %v12810_v56 }
 0x659   : > { %12252 = vmatmul.mubr.msk.f32.vlgmr.msra.gmra.mrb[66].mxu0 %vm2309_vm0, %v14576_v33 }
 0x65a   : > { %12273 = vmatprep.mubr.msk.f32.mxu0 %vm2309_vm0, %v14436_v17 }
 0x70c   : > { %v12208_v12 = vpop.f32.mrb[56].mxu0 }
 0x70d   : > { %v3549_v63 = vadd.f32 %v12208_v12, %v10634_v62  ;;  %v3540_v4 = vpop.f32.mrb[57].mxu0 }
 0x70e   : > { %v3541_v6 = vadd.f32 %v10634_v62, %v3540_v4  ;;  %v12209_v7 = vpop.f32.mrb[58].mxu0 }
 0x70f   : > { %v3552_v0 = vadd.f32 %v12209_v7, %v10634_v62  ;;  %v3543_v5 = vpop.f32.mrb[59].mxu0  ;;  %v3557_v15 = vmax.f32 %v3549_v63, 0.0  ;;  %v13209_v7 = vld [vmem:[%s15586_s6 + $0xe8] sm:$0xff]  }
 0x710   : > { %v3544_v8 = vadd.f32 %v10634_v62, %v3543_v5  ;;  %v3555_v19 = vmax.f32 %v3541_v6, 0.0  ;;  %v13211_v5 = vld [vmem:[%s15586_s6 + $0xf0] sm:$0xff]  }
 0x711   : > { %v3558_v3 = vmax.f32 %v3552_v0, 0.0  ;;  %v13210_v0 = vld [vmem:[%s15586_s6 + $0xa8] sm:$0xff]  }
 0x712   : > { %v3556_v46 = vmax.f32 %v3544_v8, 0.0  ;;  %v13212_v8 = vld [vmem:[%s15586_s6 + $0xb0] sm:$0xff]  }
 0x713   : > { %v12842_v50 = vpack.c.bf16 %v3558_v3, %v3557_v15 }
 0x714   : > { %v12838_v24 = vpack.c.bf16 %v3556_v46, %v3555_v19  ;;  %v14781_v21 = vpop.f32.mrb[60].mxu0  ;;  %v13213_v19 = vld [vmem:[%s15586_s6 + $0xf8] sm:$0xff]  }
 0x715   : > { %v14783_v32 = vpop.f32.mrb[61].mxu0 }
 0x716   : > { %12839 = vmatprep.subr.bf16.mxu1 %v12838_v24  ;;  %12847 = vmatprep.subr.bf16.mxu0 %v12838_v24 }
 0x717   : > { %12841 = vmatpush3.bf16.msra.mxu1 %v12838_v24  ;;  %12849 = vmatpush3.bf16.msra.mxu0 %v12838_v24 }
 0x718   : > { %12843 = vmatprep.subr.bf16.mxu1 %v12842_v50  ;;  %12851 = vmatprep.subr.bf16.mxu0 %v12842_v50 }
 0x71b   : > { %12845 = vmatpush3.bf16.msra.mxu1 %v12842_v50  ;;  %12853 = vmatpush3.bf16.msra.mxu0 %v12842_v50 }
 0x71c   : > { %12855 = vmatprep.subr.bf16.mxu1 %v12838_v24  ;;  %12863 = vmatprep.subr.bf16.mxu0 %v12838_v24  ;;  %v12231_v39 = vpop.f32.mrb[62].mxu0 }
 0x71d   : > { %v3708_v28 = vpop.f32.mrb[63].mxu0 }
 0x71e   : > { %12274 = vmatmul.mubr.msk.f32.vlgmr.msra.gmra.mrb[68].mxu0 %vm2309_vm0, %v14498_v20  ;;  %12263 = vmatmul.mubr.msk.f32.vlgmr.msra.gmra.mrb[48].mxu1 %vm2309_vm0, %v14545_v23  ;;  %v13118_v34 = vpack.i.bf16 %v12231_v39, %v3708_v28  ;;  %v13184_v20 = vld [vmem:[%s15586_s6] sm:$0xff]  }
 0x71f   : > { %12857 = vmatpush3.bf16.msra.mxu1 %v12838_v24  ;;  %12865 = vmatpush3.bf16.msra.mxu0 %v12838_v24  ;;  %v13214_v24 = vld [vmem:[%s15586_s6 + $0xb8] sm:$0xff]  }
 0x720   : > { %12859 = vmatprep.subr.bf16.mxu1 %v12842_v50  ;;  %12867 = vmatprep.subr.bf16.mxu0 %v12842_v50 }
 0x721   : > { %12295 = vmatprep.mubr.msk.f32.mxu0 %vm2309_vm0, %v14529_v9  ;;  %13119 = vrot.lane.b32.xlu1 %v13118_v34, %s15541_s2 }
 0x722   : > { %12284 = vmatprep.mubr.msk.f32.mxu1 %vm2309_vm0, %v14569_v29 }
 0x723   : > { %12861 = vmatpush3.bf16.msra.mxu1 %v12842_v50  ;;  %12869 = vmatpush3.bf16.msra.mxu0 %v12842_v50 }
 0x724   : > { %v14796_v23 = vpop.f32.mrb[64].mxu0  ;;  %11430 = vmatprep.subr.bf16.mxu1 %v13183_v48  ;;  %11452 = vmatprep.subr.bf16.mxu0 %v13199_v30  ;;  %v13217_v30 = vld [vmem:[%s15600_s16 + $0x10] sm:$0xff]  }
 0x725   : > { %v14799_v43 = vpop.f32.mrb[65].mxu0 }
 0x726   : > { %12296 = vmatmul.mubr.msk.f32.vlgmr.msra.gmra.mrb[70].mxu0 %vm2309_vm0, %v14576_v33  ;;  %12285 = vmatmul.mubr.msk.f32.vlgmr.msra.gmra.mrb[50].mxu1 %vm2309_vm0, %v14609_v47  ;;  %v13190_v47 = vld [vmem:[%s15586_s6 + $0x18] sm:$0xff]  }
 0x727   : > { %11431 = vmatpush3.bf16.msra.mxu1 %v13184_v20  ;;  %11453 = vmatpush3.bf16.msra.mxu0 %v13200_v35  ;;  %v13215_v20 = vld [vmem:[%s15600_s16] sm:$0xff]   ;;  %v13218_v35 = vld [vmem:[%s15600_s16 + $0x18] sm:$0xff]  }
 0x728   : > { %11432 = vmatprep.subr.bf16.mxu1 %v13185_v10  ;;  %11454 = vmatprep.subr.bf16.mxu0 %v13201_v36  ;;  %v13219_v36 = vld [vmem:[%s15600_s16 + $0x20] sm:$0xff]  }
 0x72b   : > { %11433 = vmatpush3.bf16.msra.mxu1 %v13186_v41  ;;  %11455 = vmatpush3.bf16.msra.mxu0 %v13202_v27  ;;  %v13740_v27 = vmov 0.0|0.0  }
 0x72c   : > { %v12253_v31 = vpop.f32.mrb[66].mxu0  ;;  %11434 = vmatprep.subr.bf16.mxu1 %v13187_v51  ;;  %11456 = vmatprep.subr.bf16.mxu0 %v13203_v42  ;;  %v13220_v42 = vld [vmem:[%s15600_s16 + $0x28] sm:$0xff]  }
 0x72d   : > { %v3866_v59 = vpop.f32.mrb[67].mxu0 }
 0x72e   : > { %v13123_v33 = vpack.i.bf16 %v12253_v31, %v3866_v59 }
 0x72f   : > { %11435 = vmatpush3.bf16.msra.mxu1 %v13188_v11  ;;  %11457 = vmatpush3.bf16.msra.mxu0 %v13204_v37  ;;  %v10657_v37 = vld [vmem:[%s15601_s22] ss:$0 sm:$0xff]  ;;  %s15604_s22 = sld [smem:[#allocation16_spill]] }
 0x730   : > { %13124 = vrot.lane.b32.xlu0 %v13123_v33, %s15541_s2  ;;  %11436 = vmatprep.subr.bf16.mxu1 %v13189_v58 }
 0x731   : > { %11458 = vmatprep.subr.bf16.mxu0 %v13205_v44 }
 0x733   : > { %11437 = vmatpush3.bf16.msra.mxu1 %v13190_v47  ;;  %11459 = vmatpush3.bf16.msra.mxu0 %v13206_v45 }
 0x734   : > { %11438 = vmatprep.subr.bf16.mxu1 %v13191_v38  ;;  %11460 = vmatprep.subr.bf16.mxu0 %v13207_v53 }
 0x737   : > { %11439 = vmatpush3.bf16.msra.mxu1 %v13192_v18  ;;  %11461 = vmatpush3.bf16.msra.mxu0 %v13208_v54 }
 0x738   : > { %11440 = vmatprep.subr.bf16.mxu1 %v13193_v14  ;;  %11462 = vmatprep.subr.bf16.mxu0 %v13209_v7 }
 0x73b   : > { %11441 = vmatpush3.bf16.msra.mxu1 %v13194_v22  ;;  %11463 = vmatpush3.bf16.msra.mxu0 %v13210_v0 }
 0x73c   : > { %11442 = vmatprep.subr.bf16.mxu1 %v13195_v25  ;;  %11464 = vmatprep.subr.bf16.mxu0 %v13211_v5 }
 0x73f   : > { %11443 = vmatpush3.bf16.msra.mxu1 %v13196_v26  ;;  %11465 = vmatpush3.bf16.msra.mxu0 %v13212_v8 }
 0x740   : > { %11444 = vmatprep.subr.bf16.mxu1 %v13197_v2  ;;  %11466 = vmatprep.subr.bf16.mxu0 %v13213_v19 }
 0x743   : > { %11445 = vmatpush3.bf16.msra.mxu1 %v13198_v49  ;;  %11467 = vmatpush3.bf16.msra.mxu0 %v13214_v24 }
 0x744   : > { %12298 = vmatprep.subr.bf16.mxu1 %v13736_v13  ;;  %12870 = vmatprep.subr.bf16.mxu0 %v13740_v27 }
 0x793   : > { %v13120_v55 = vpop.permute.xlu1 %13119 }
 0x794   : > { %v13122_v52 = vunpack.i.h.bf16 %v13120_v55  ;;  %v13121_v56 = vunpack.i.l.bf16 %v13120_v55 }
 0x796   : > { %v4208_v57 = vsel %vm2395_vm11, %v14781_v21, %v13122_v52  ;;  %v4207_v60 = vsel %vm2395_vm11, %v14783_v32, %v13121_v56 }
 0x797   : > { %v4215_v61 = vpack.c.bf16 %v4208_v57, %v4207_v60 }
 0x7a2   : > { %v13125_v16 = vpop.permute.xlu0 %13124 }
 0x7a3   : > { %v13127_v62 = vunpack.i.h.bf16 %v13125_v16  ;;  %v13126_v12 = vunpack.i.l.bf16 %v13125_v16  ;;  %v10691_v16 = vld [vmem:[%s15603_s23] ss:$0 sm:$0xff]  ;;  %s15605_s23 = smov 96  }
 0x7a5   : > { %v4209_v63 = vsel %vm2395_vm11, %v14799_v43, %v13126_v12  ;;  %v4210_v4 = vsel %vm2395_vm11, %v14796_v23, %v13127_v62  ;;  %v13216_v23 = vld [vmem:[%s15600_s16 + $0x8] sm:$0xff]  }
 0x7a6   : > { %v4216_v6 = vpack.c.bf16 %v4210_v4, %v4209_v63 }
 0x7a8   : > { %4514 = vmatprep.mubr.bf16.mxu1 %v4216_v6 }
 0x7a9   : > { %4515 = vmatmul.mubr.bf16.vlgmr.msra.gmra.mrb[52].mxu1 %v4215_v61 }
 0x7aa   : > { %12299 = vmatpush3.bf16.msra.mxu1 %v13215_v20  ;;  %12310 = vmatprep.mubr.msk.bf16.mxu1 %vm13741_vm9, %v13736_v13 }
 0x7ab   : > { %12300 = vmatprep.subr.bf16.mxu1 %v13736_v13 }
 0x7ae   : > { %12301 = vmatpush3.bf16.msra.mxu1 %v13216_v23 }
 0x7af   : > { %12302 = vmatprep.subr.bf16.mxu1 %v13736_v13 }
 0x7b2   : > { %12303 = vmatpush3.bf16.msra.mxu1 %v13217_v30 }
 0x7b3   : > { %12304 = vmatprep.subr.bf16.mxu1 %v13736_v13 }
 0x7b6   : > { %12305 = vmatpush3.bf16.msra.mxu1 %v13218_v35 }
 0x7b7   : > { %12306 = vmatprep.subr.bf16.mxu1 %v13736_v13 }
 0x7ba   : > { %12307 = vmatpush3.bf16.msra.mxu1 %v13219_v36 }
 0x7bb   : > { %12308 = vmatprep.subr.bf16.mxu1 %v13736_v13 }
 0x7be   : > { %12309 = vmatpush3.bf16.msra.mxu1 %v13220_v42 }
 0x7bf   : > { %12885 = vmatprep.subr.bf16.mxu1 %v13740_v27 }
 0x7f1   : > { %v12275_v15 = vpop.f32.mrb[68].mxu0  ;;  %v12264_v3 = vpop.f32.mrb[48].mxu1 }
 0x7f2   : > { %v4016_v46 = vpop.f32.mrb[69].mxu0  ;;  %v3941_v50 = vpop.f32.mrb[49].mxu1 }
 0x7f3   : > { %v13133_v21 = vpack.i.bf16 %v12275_v15, %v4016_v46 }
 0x7f5   : > { %13134 = vrot.lane.b32.xlu1 %v13133_v21, %s15541_s2 }
 0x7f9   : > { %v12297_v32 = vpop.f32.mrb[70].mxu0  ;;  %v12286_v39 = vpop.f32.mrb[50].mxu1 }
 0x7fa   : > { %v4166_v28 = vpop.f32.mrb[71].mxu0  ;;  %v4091_v34 = vpop.f32.mrb[51].mxu1 }
 0x7fb   : > { %v13128_v48 = vpack.i.bf16 %v12297_v32, %v4166_v28 }
 0x7fd   : > { %13129 = vrot.lane.b32.xlu0 %v13128_v48, %s15541_s2  ;;  %s15602_s2 = sld [smem:[#allocation13_spill]] }
 0x803   : > { %v10690_v52 = vld [vmem:[%s15602_s2] ss:$0 sm:$0xff]  ;;  %s15606_s2 = sld [smem:[#allocation17_spill]] }
 0x809   : > { %v13235_v30 = vld [vmem:[%s15606_s2 + $0x78] sm:$0xff]   ;;  %v13237_v36 = vld [vmem:[%s15606_s2 + $0xc0] sm:$0xff]  }
 0x80a   : > { %v13236_v35 = vld [vmem:[%s15606_s2 + $0x38] sm:$0xff]   ;;  %v13239_v42 = vld [vmem:[%s15606_s2 + $0x140] sm:$0xff]  }
 0x867   : > { %v13135_v10 = vpop.permute.xlu1 %13134 }
 0x868   : > { %v13137_v43 = vunpack.i.h.bf16 %v13135_v10  ;;  %v13136_v41 = vunpack.i.l.bf16 %v13135_v10 }
 0x86a   : > { %v4212_v51 = vsel %vm2395_vm11, %v12264_v3, %v13137_v43  ;;  %v4211_v11 = vsel %vm2395_vm11, %v3941_v50, %v13136_v41  ;;  %v10692_v3 = vld [vmem:[%s15604_s22] ss:$0 sm:$0xff]  ;;  %s15608_s22 = smov 32  }
 0x86b   : > { %v4217_v31 = vpack.c.bf16 %v4212_v51, %v4211_v11  ;;  %v13221_v11 = vld [vmem:[%s15606_s2 + $0x40] sm:$0xff]  }
 0x86f   : > { %v13130_v58 = vpop.permute.xlu0 %13129 }
 0x870   : > { %v13132_v59 = vunpack.i.h.bf16 %v13130_v58  ;;  %v13131_v33 = vunpack.i.l.bf16 %v13130_v58  ;;  %v13223_v58 = vld [vmem:[%s15606_s2 + $0x48] sm:$0xff]  }
 0x872   : > { %v4214_v47 = vsel %vm2395_vm11, %v12286_v39, %v13132_v59  ;;  %v4213_v38 = vsel %vm2395_vm11, %v4091_v34, %v13131_v33  ;;  %v13224_v59 = vld [vmem:[%s15606_s2 + $0x8] sm:$0xff]   ;;  %v13225_v33 = vld [vmem:[%s15606_s2 + $0x50] sm:$0xff]  }
 0x873   : > { %v4218_v18 = vpack.c.bf16 %v4214_v47, %v4213_v38  ;;  %v13226_v47 = vld [vmem:[%s15606_s2 + $0x10] sm:$0xff]   ;;  %v13227_v38 = vld [vmem:[%s15606_s2 + $0x58] sm:$0xff]  }
 0x875   : > { %4555 = vmatprep.mubr.bf16.mxu0 %v4218_v18  ;;  %v13228_v18 = vld [vmem:[%s15606_s2 + $0x18] sm:$0xff]  }
 0x876   : > { %4556 = vmatmul.mubr.bf16.vlgmr.msra.gmra.mrb[72].mxu0 %v4217_v31  ;;  %v13222_v31 = vld [vmem:[%s15606_s2] sm:$0xff]  }
 0x877   : > { %12318 = vmatprep.mubr.msk.f32.mxu0 %vm13741_vm9, %v13736_v13 }
 0x87c   : > { %v11446_v14 = vpop.f32.mrb[52].mxu1 }
 0x87d   : > { %v11447_v22 = vpop.f32.mrb[53].mxu1 }
 0x87e   : > { %v11448_v25 = vadd.f32 %v11447_v22, %v11446_v14  ;;  %v11449_v26 = vpop.f32.mrb[54].mxu1  ;;  %v13229_v14 = vld [vmem:[%s15606_s2 + $0x60] sm:$0xff]  }
 0x87f   : > { %v11450_v2 = vpop.f32.mrb[55].mxu1  ;;  %v13230_v22 = vld [vmem:[%s15606_s2 + $0x20] sm:$0xff]  }
 0x880   : > { %v11451_v49 = vadd.f32 %v11450_v2, %v11449_v26  ;;  %v4517_v53 = vadd.f32 %v11448_v25, %v10657_v37  ;;  %v13231_v25 = vld [vmem:[%s15606_s2 + $0x68] sm:$0xff]   ;;  %v13233_v2 = vld [vmem:[%s15606_s2 + $0x70] sm:$0xff]  }
 0x881   : > { %v13232_v26 = vld [vmem:[%s15606_s2 + $0x28] sm:$0xff]  }
 0x882   : > { %v4520_v57 = vadd.f32 %v11451_v49, %v10657_v37  ;;  %v13234_v49 = vld [vmem:[%s15606_s2 + $0x30] sm:$0xff]   ;;  %v13241_v37 = vld [vmem:[%s15606_s2 + $0xc8] sm:$0xff]  }
 0x949   : > { %v11468_v44 = vpop.f32.mrb[72].mxu0 }
 0x94a   : > { %v11469_v45 = vpop.f32.mrb[73].mxu0 }
 0x94b   : > { %v11470_v54 = vadd.f32 %v11469_v45, %v11468_v44  ;;  %v11471_v55 = vpop.f32.mrb[74].mxu0  ;;  %v13242_v44 = vld [vmem:[%s15606_s2 + $0x88] sm:$0xff]   ;;  %v13245_v45 = vld [vmem:[%s15606_s2 + $0xd0] sm:$0xff]  }
 0x94c   : > { %v11472_v56 = vpop.f32.mrb[75].mxu0 }
 0x94d   : > { %v4558_v60 = vadd.f32 %v11470_v54, %v4517_v53  ;;  %v11473_v61 = vadd.f32 %v11472_v56, %v11471_v55  ;;  %v13246_v53 = vld [vmem:[%s15606_s2 + $0x90] sm:$0xff]   ;;  %v13249_v54 = vld [vmem:[%s15606_s2 + $0xd8] sm:$0xff]  }
 0x94e   : > { %v13250_v55 = vld [vmem:[%s15606_s2 + $0x98] sm:$0xff]  }
 0x94f   : > { %v4571_v62 = vmul.f32 %v10690_v52, %v4558_v60  ;;  %v4561_v12 = vadd.f32 %v11473_v61, %v4520_v57  ;;  %v13254_v57 = vld [vmem:[%s15606_s2 + $0xa0] sm:$0xff]   ;;  %v13257_v61 = vld [vmem:[%s15606_s2 + $0xe8] sm:$0xff]  }
 0x951   : > { %v4580_v63 = vadd.f32 %v10691_v16, %v4571_v62  ;;  %v4572_v4 = vmul.f32 %v10690_v52, %v4561_v12  ;;  %v12871_v6 = vpack.c.bf16 %v4561_v12, %v4558_v60  ;;  %v13253_v52 = vld [vmem:[%s15606_s2 + $0xe0] sm:$0xff]  }
 0x953   : > { %v4581_v7 = vadd.f32 %v10691_v16, %v4572_v4  ;;  %12872 = vmatpush3.bf16.msra.mxu0 %v12871_v6  ;;  %v4582_v0 = vmax.f32 %v4580_v63, 0.0  ;;  %v13240_v4 = vld [vmem:[%s15606_s2 + $0x100] sm:$0xff]  }
 0x954   : > { %12873 = vmatprep.subr.bf16.mxu0 %v13740_v27 }
 0x955   : > { %v4583_v5 = vmax.f32 %v4581_v7, 0.0  ;;  %v13244_v7 = vld [vmem:[%s15606_s2 + $0x108] sm:$0xff]  }
 0x956   : > { %12319 = vmatmul.mubr.msk.f32.vlgmr.msra.gmra.mrb[76].mxu0 %vm4686_vm15, %v14511_v40 }
 0x957   : > { %v4584_v8 = vpack.c.bf16 %v4583_v5, %v4582_v0  ;;  %12875 = vmatpush3.bf16.msra.mxu0 %v12871_v6  ;;  %12325 = vmatprep.mubr.msk.f32.mxu0 %vm13741_vm9, %v13736_v13  ;;  %v13247_v0 = vld [vmem:[%s15606_s2 + $0x150] sm:$0xff]  }
 0x958   : > { %12876 = vmatprep.subr.bf16.mxu0 %v13740_v27  ;;  %v13248_v5 = vld [vmem:[%s15606_s2 + $0x110] sm:$0xff]  }
 0x959   : > { %12311 = vmatmul.mubr.msk.bf16.vlgmr.msra.gmra.mrb[56].mxu1 %vm3228_vm7, %v4584_v8  ;;  %v13251_v8 = vld [vmem:[%s15606_s2 + $0x158] sm:$0xff]  }
 0x95a   : > { %12326 = vmatmul.mubr.msk.f32.vlgmr.msra.gmra.mrb[78].mxu0 %vm4686_vm15, %v14436_v17  ;;  %12353 = vmatprep.mubr.msk.f32.mxu1 %vm13741_vm9, %v13736_v13 }
 0x95b   : > { %12878 = vmatpush3.bf16.msra.mxu0 %v12871_v6  ;;  %12332 = vmatprep.mubr.msk.f32.mxu0 %vm13741_vm9, %v13736_v13 }
 0x95c   : > { %12879 = vmatprep.subr.bf16.mxu0 %v13740_v27 }
 0x95e   : > { %12333 = vmatmul.mubr.msk.f32.vlgmr.msra.gmra.mrb[80].mxu0 %vm4686_vm15, %v14569_v29 }
 0x95f   : > { %12881 = vmatpush3.bf16.msra.mxu0 %v12871_v6  ;;  %12339 = vmatprep.mubr.msk.f32.mxu0 %vm13741_vm9, %v13736_v13  ;;  %v13243_v6 = vld [vmem:[%s15606_s2 + $0x148] sm:$0xff]  }
 0x960   : > { %12882 = vmatprep.subr.bf16.mxu0 %v13740_v27 }
 0x962   : > { %12340 = vmatmul.mubr.msk.f32.vlgmr.msra.gmra.mrb[82].mxu0 %vm4686_vm15, %v14529_v9 }
 0x963   : > { %12346 = vmatprep.mubr.msk.f32.mxu0 %vm13741_vm9, %v13736_v13 }
 0xa29   : > { %v14893_v15 = vpop.f32.mrb[76].mxu0 }
 0xa2a   : > { %v12320_v19 = vpop.f32.mrb[77].mxu0 }
 0xa2b   : > { %v13256_v19 = vld [vmem:[%s15606_s2 + $0x120] sm:$0xff]  }
 0xa2c   : > { %v4677_v46 = vpop.f32.mrb[56].mxu1 }
 0xa2d   : > { %v4678_v50 = vadd.f32 %v10692_v3, %v4677_v46  ;;  %v12312_v24 = vpop.f32.mrb[57].mxu1  ;;  %v4827_v21 = vpop.f32.mrb[78].mxu0  ;;  %v13258_v46 = vld [vmem:[%s15606_s2 + $0xa8] sm:$0xff]  }
 0xa2e   : > { %v4680_v32 = vpop.f32.mrb[58].mxu1  ;;  %v12327_v39 = vpop.f32.mrb[79].mxu0  ;;  %5256 = vrot.lane.b32.xlu0 %v4827_v21, %s15605_s23  ;;  %v13260_v24 = vld [vmem:[%s15606_s2 + $0x128] sm:$0xff]   ;;  %v13261_v21 = vld [vmem:[%s15606_s2 + $0xf0] sm:$0xff]  }
 0xa2f   : > { %v4681_v28 = vadd.f32 %v10692_v3, %v4680_v32  ;;  %v12313_v34 = vpop.f32.mrb[59].mxu1  ;;  %v4684_v48 = vmax.f32 %v4678_v50, 0.0  ;;  %v13255_v3 = vld [vmem:[%s15606_s2 + $0x160] sm:$0xff]   ;;  %v13259_v50 = vld [vmem:[%s15606_s2 + $0x168] sm:$0xff]   ;;  %v13262_v32 = vld [vmem:[%s15606_s2 + $0xb0] sm:$0xff]  }
 0xa30   : > { %v13263_v39 = vld [vmem:[%s15606_s2 + $0x170] sm:$0xff]   ;;  %v13265_v34 = vld [vmem:[%s15606_s2 + $0xf8] sm:$0xff]  }
 0xa31   : > { %v4685_v20 = vmax.f32 %v4681_v28, 0.0  ;;  %v4899_v23 = vpop.f32.mrb[80].mxu0  ;;  %v13264_v28 = vld [vmem:[%s15606_s2 + $0x130] sm:$0xff]  }
 0xa32   : > { %5260 = vrot.lane.b32.xlu1 %v4899_v23, %s15607_s3  ;;  %v12334_v10 = vpop.f32.mrb[81].mxu0  ;;  %v13268_v23 = vld [vmem:[%s15606_s2 + $0x138] sm:$0xff]  }
 0xa33   : > { %v12883_v43 = vpack.c.bf16 %v4685_v20, %v4684_v48  ;;  %v13266_v48 = vld [vmem:[%s15606_s2 + $0xb8] sm:$0xff]  }
 0xa34   : > { %v13267_v20 = vld [vmem:[%s15606_s2 + $0x178] sm:$0xff]  }
 0xa35   : > { %12884 = vmatpush3.bf16.msra.mxu0 %v12883_v43  ;;  %12887 = vmatpush3.bf16.msra.mxu1 %v12883_v43  ;;  %v14898_v41 = vpop.f32.mrb[82].mxu0 }
 0xa36   : > { %12888 = vmatprep.subr.bf16.mxu0 %v13740_v27  ;;  %12891 = vmatprep.subr.bf16.mxu1 %v13740_v27  ;;  %v12341_v51 = vpop.f32.mrb[83].mxu0  ;;  %v13238_v27 = vld [vmem:[%s15606_s2 + $0x80] sm:$0xff]  }
 0xa38   : > { %12347 = vmatmul.mubr.msk.f32.vlgmr.msra.gmra.mrb[84].mxu0 %vm4686_vm15, %v14511_v40  ;;  %12354 = vmatmul.mubr.msk.f32.vlgmr.msra.gmra.mrb[60].mxu1 %vm4686_vm15, %v14436_v17 }
 0xa39   : > { %12890 = vmatpush3.bf16.msra.mxu0 %v12883_v43  ;;  %12893 = vmatpush3.bf16.msra.mxu1 %v12883_v43 }
 0xa3a   : > { %12360 = vmatprep.mubr.msk.f32.mxu0 %vm13741_vm9, %v13736_v13  ;;  %12367 = vmatprep.mubr.msk.f32.mxu1 %vm13741_vm9, %v13736_v13 }
 0xa3b   : > { %11505 = vmatprep.subr.bf16.mxu0 %v13221_v11  ;;  %11527 = vmatprep.subr.bf16.mxu1 %v13237_v36 }
 0xa3c   : > { %12361 = vmatmul.mubr.msk.f32.vlgmr.msra.gmra.mrb[86].mxu0 %vm4686_vm15, %v14569_v29  ;;  %12368 = vmatmul.mubr.msk.f32.vlgmr.msra.gmra.mrb[62].mxu1 %vm4686_vm15, %v14529_v9 }
 0xa3d   : > { %11506 = vmatpush3.bf16.msra.mxu0 %v13222_v31  ;;  %11528 = vmatpush3.bf16.msra.mxu1 %v13238_v27 }
 0xa3e   : > { %11507 = vmatprep.subr.bf16.mxu0 %v13223_v58  ;;  %11529 = vmatprep.subr.bf16.mxu1 %v13241_v37 }
 0xa41   : > { %11508 = vmatpush3.bf16.msra.mxu0 %v13224_v59  ;;  %11530 = vmatpush3.bf16.msra.mxu1 %v13242_v44 }
 0xa42   : > { %11509 = vmatprep.subr.bf16.mxu0 %v13225_v33  ;;  %11531 = vmatprep.subr.bf16.mxu1 %v13245_v45 }
 0xa45   : > { %11510 = vmatpush3.bf16.msra.mxu0 %v13226_v47  ;;  %11532 = vmatpush3.bf16.msra.mxu1 %v13246_v53 }
 0xa46   : > { %11511 = vmatprep.subr.bf16.mxu0 %v13227_v38  ;;  %11533 = vmatprep.subr.bf16.mxu1 %v13249_v54 }
 0xa49   : > { %11512 = vmatpush3.bf16.msra.mxu0 %v13228_v18  ;;  %11534 = vmatpush3.bf16.msra.mxu1 %v13250_v55 }
 0xa4a   : > { %11513 = vmatprep.subr.bf16.mxu0 %v13229_v14  ;;  %11535 = vmatprep.subr.bf16.mxu1 %v13253_v52 }
 0xa4d   : > { %11514 = vmatpush3.bf16.msra.mxu0 %v13230_v22  ;;  %11536 = vmatpush3.bf16.msra.mxu1 %v13254_v57 }
 0xa4e   : > { %11515 = vmatprep.subr.bf16.mxu0 %v13231_v25  ;;  %11537 = vmatprep.subr.bf16.mxu1 %v13257_v61 }
 0xa51   : > { %11516 = vmatpush3.bf16.msra.mxu0 %v13232_v26  ;;  %11538 = vmatpush3.bf16.msra.mxu1 %v13258_v46 }
 0xa52   : > { %11517 = vmatprep.subr.bf16.mxu0 %v13233_v2  ;;  %11539 = vmatprep.subr.bf16.mxu1 %v13261_v21 }
 0xa55   : > { %11518 = vmatpush3.bf16.msra.mxu0 %v13234_v49  ;;  %11540 = vmatpush3.bf16.msra.mxu1 %v13262_v32 }
 0xa56   : > { %11519 = vmatprep.subr.bf16.mxu0 %v13235_v30  ;;  %11541 = vmatprep.subr.bf16.mxu1 %v13265_v34 }
 0xa59   : > { %11520 = vmatpush3.bf16.msra.mxu0 %v13236_v35  ;;  %11542 = vmatpush3.bf16.msra.mxu1 %v13266_v48 }
 0xa5a   : > { %11549 = vmatprep.subr.bf16.mxu0 %v13239_v42  ;;  %12370 = vmatprep.subr.bf16.mxu1 %v13736_v13 }
 0xaa0   : > { %v5257_v56 = vpop.permute.xlu0 %5256 }
 0xaa1   : > { %v5279_v60 = vsel %vm3228_vm7, %v14893_v15, %v5257_v56  ;;  %v13252_v15 = vld [vmem:[%s15606_s2 + $0x118] sm:$0xff]   ;;  %s15609_s2 = sld [smem:[#allocation21_spill]] }
 0xaa2   : > { %v5285_v62 = vpack.c.bf16 %v5279_v60, %v5279_v60 }
 0xaa4   : > { %v14944_v16 = vpop.permute.xlu1 %5260 }
 0xaa5   : > { %v5280_v12 = vsel %vm2395_vm11, %v5257_v56, %v14944_v16 }
 0xaa6   : > { %v5286_v63 = vpack.c.bf16 %v5280_v12, %v5280_v12 }
 0xaa7   : > { %v13269_v44 = vld [vmem:[%s15609_s2] sm:$0xff]   ;;  %v13270_v55 = vld [vmem:[%s15609_s2 + $0x8] sm:$0xff]   ;;  %v13271_v52 = vld [vmem:[%s15609_s2 + $0x10] sm:$0xff]  }
 0xaa8   : > { %5714 = vmatprep.mubr.bf16.mxu0 %v5286_v63  ;;  %v13272_v56 = vld [vmem:[%s15609_s2 + $0x18] sm:$0xff]   ;;  %v13273_v57 = vld [vmem:[%s15609_s2 + $0x20] sm:$0xff]   ;;  %v13274_v60 = vld [vmem:[%s15609_s2 + $0x28] sm:$0xff]  }
 0xaa9   : > { %5715 = vmatmul.mubr.bf16.vlgmr.msra.gmra.mrb[88].mxu0 %v5285_v62  ;;  %v13275_v61 = vld [vmem:[%s15609_s2 + $0x30] sm:$0xff]  }
 0xaaa   : > { %11550 = vmatpush3.bf16.msra.mxu0 %v13240_v4 }
 0xaab   : > { %11551 = vmatprep.subr.bf16.mxu0 %v13243_v6 }
 0xaae   : > { %11552 = vmatpush3.bf16.msra.mxu0 %v13244_v7 }
 0xaaf   : > { %11553 = vmatprep.subr.bf16.mxu0 %v13247_v0 }
 0xab2   : > { %11554 = vmatpush3.bf16.msra.mxu0 %v13248_v5 }
 0xab3   : > { %11555 = vmatprep.subr.bf16.mxu0 %v13251_v8 }
 0xab6   : > { %11556 = vmatpush3.bf16.msra.mxu0 %v13252_v15 }
 0xab7   : > { %11557 = vmatprep.subr.bf16.mxu0 %v13255_v3 }
 0xaba   : > { %11558 = vmatpush3.bf16.msra.mxu0 %v13256_v19 }
 0xabb   : > { %11559 = vmatprep.subr.bf16.mxu0 %v13259_v50 }
 0xabe   : > { %11560 = vmatpush3.bf16.msra.mxu0 %v13260_v24 }
 0xabf   : > { %11561 = vmatprep.subr.bf16.mxu0 %v13263_v39 }
 0xac2   : > { %11562 = vmatpush3.bf16.msra.mxu0 %v13264_v28 }
 0xac3   : > { %11563 = vmatprep.subr.bf16.mxu0 %v13267_v20 }
 0xac6   : > { %11564 = vmatpush3.bf16.msra.mxu0 %v13268_v23 }
 0xac7   : > { %12390 = vmatprep.subr.mxu0 %v13736_v13 }
 0xb0b   : > { %v5111_v10 = vpop.f32.mrb[60].mxu1  ;;  %v5041_v43 = vpop.f32.mrb[84].mxu0 }
 0xb0c   : > { %5268 = vrot.lane.b32.xlu0 %v5111_v10, %s15605_s23  ;;  %v12355_v51 = vpop.f32.mrb[61].mxu1  ;;  %v12348_v11 = vpop.f32.mrb[85].mxu0  ;;  %s15611_s23 = sld [smem:[#allocation19_spill]] }
 0xb0f   : > { %v5181_v31 = vpop.f32.mrb[86].mxu0  ;;  %v5251_v58 = vpop.f32.mrb[62].mxu1 }
 0xb10   : > { %v13138_v59 = vpack.i.bf16 %v5251_v58, %v14898_v41  ;;  %5272 = vrot.lane.b32.xlu0 %v5181_v31, %s15607_s3  ;;  %v12369_v33 = vpop.f32.mrb[63].mxu1  ;;  %v12362_v47 = vpop.f32.mrb[87].mxu0  ;;  %s15610_s3 = sld [smem:[#allocation18_spill]] }
 0xb12   : > { %13139 = vrot.lane.b32.xlu1 %v13138_v59, %s15608_s22  ;;  %s15612_s22 = sld [smem:[#allocation20_spill]]  ;;  %v10757_v50 = vld [vmem:[%s15611_s23] ss:$0 sm:$0xff]  ;;  %s15614_s23 = sld [smem:[#allocation23_spill]] }
 0xb16   : > { %v10708_v62 = vld [vmem:[%s15610_s3] ss:$0 sm:$0xff]  ;;  %s15613_s3 = sld [smem:[#allocation22_spill]] }
 0xb18   : > { %v10758_v21 = vld [vmem:[%s15612_s22] ss:$0 sm:$0xff]  ;;  %s15615_s22 = sld [smem:[#allocation27_spill]] }
 0xb19   : > { %v13277_v47 = vld [vmem:[%s15614_s23 + $0x40] sm:$0xff]  }
 0xb1c   : > { %v10759_v10 = vld [vmem:[%s15613_s3] ss:$0 sm:$0xff]  ;;  %s15616_s3 = sld [smem:[#allocation24_spill]] }
 0xb7c   : > { %v11521_v38 = vpop.f32.mrb[88].mxu0 }
 0xb7d   : > { %v11522_v18 = vpop.f32.mrb[89].mxu0 }
 0xb7e   : > { %v5269_v14 = vpop.permute.xlu0 %5268  ;;  %v11523_v22 = vadd.f32 %v11522_v18, %v11521_v38  ;;  %v11524_v25 = vpop.f32.mrb[90].mxu0  ;;  %v13280_v38 = vld [vmem:[%s15614_s23 + $0xc0] sm:$0xff]  }
 0xb7f   : > { %v5282_v26 = vsel %vm3228_vm7, %v5041_v43, %v5269_v14  ;;  %v11525_v2 = vpop.f32.mrb[91].mxu0  ;;  %v13278_v18 = vld [vmem:[%s15614_s23] sm:$0xff]   ;;  %v13279_v25 = vld [vmem:[%s15614_s23 + $0x48] sm:$0xff]  }
 0xb80   : > { %v5288_v49 = vpack.c.bf16 %v5282_v26, %v5282_v26  ;;  %v5717_v6 = vadd.f32 %v11523_v22, %v10708_v62  ;;  %v13284_v26 = vld [vmem:[%s15614_s23 + $0xc8] sm:$0xff]  }
 0xb81   : > { %v13300_v62 = vld [vmem:[%s15614_s23 + $0xe8] sm:$0xff]  }
 0xb82   : > { %5754 = vmatprep.mubr.bf16.mxu1 %v5288_v49  ;;  %v5273_v30 = vpop.permute.xlu0 %5272 }
 0xb83   : > { %v5283_v27 = vsel %vm2395_vm11, %v5269_v14, %v5273_v30  ;;  %v13282_v14 = vld [vmem:[%s15614_s23 + $0x80] sm:$0xff]  }
 0xb84   : > { %v13140_v41 = vpop.permute.xlu1 %13139  ;;  %v5289_v54 = vpack.c.bf16 %v5283_v27, %v5283_v27  ;;  %v13288_v27 = vld [vmem:[%s15614_s23 + $0xd0] sm:$0xff]  }
 0xb85   : > { %v13142_v35 = vunpack.i.h.bf16 %v13140_v41  ;;  %v13141_v36 = vunpack.i.l.bf16 %v13140_v41  ;;  %v13286_v41 = vld [vmem:[%s15614_s23 + $0x88] sm:$0xff]  }
 0xb87   : > { %v5281_v42 = vsel %vm2309_vm0, %v14944_v16, %v13141_v36  ;;  %v5284_v37 = vsel %vm2309_vm0, %v5273_v30, %v13142_v35  ;;  %v13276_v16 = vld [vmem:[%s15609_s2 + $0x38] sm:$0xff]   ;;  %v13281_v30 = vld [vmem:[%s15614_s23 + $0x8] sm:$0xff]   ;;  %v13283_v36 = vld [vmem:[%s15614_s23 + $0x50] sm:$0xff]   ;;  %s15618_s2 = sld [smem:[#allocation26_spill]] }
 0xb88   : > { %v5287_v45 = vpack.c.bf16 %v5281_v42, %v5281_v42  ;;  %v5290_v53 = vpack.c.bf16 %v5284_v37, %v5284_v37 }
 0xb8a   : > { %5755 = vmatmul.mubr.bf16.vlgmr.msra.gmra.mrb[64].mxu1 %v5287_v45  ;;  %5794 = vmatprep.mubr.bf16.mxu0 %v5290_v53  ;;  %v13290_v45 = vld [vmem:[%s15614_s23 + $0x90] sm:$0xff]   ;;  %v13287_v53 = vld [vmem:[%s15614_s23 + $0x58] sm:$0xff]  }
 0xb8b   : > { %5795 = vmatmul.mubr.bf16.vlgmr.msra.gmra.mrb[92].mxu0 %v5289_v54  ;;  %12371 = vmatpush3.bf16.msra.mxu1 %v13269_v44  ;;  %v13285_v44 = vld [vmem:[%s15614_s23 + $0x10] sm:$0xff]   ;;  %v13292_v54 = vld [vmem:[%s15614_s23 + $0xd8] sm:$0xff]  }
 0xb8c   : > { %12372 = vmatprep.subr.bf16.mxu1 %v13736_v13  ;;  %12392 = vmatprep.mubr.msk.f32.mxu0 %vm13741_vm9, %v13736_v13 }
 0xb8d   : > { %12386 = vmatprep.mubr.msk.bf16.mxu1 %vm13741_vm9, %v13736_v13 }
 0xb8f   : > { %12373 = vmatpush3.bf16.msra.mxu1 %v13270_v55  ;;  %v13289_v55 = vld [vmem:[%s15614_s23 + $0x18] sm:$0xff]  }
 0xb90   : > { %12374 = vmatprep.subr.bf16.mxu1 %v13736_v13 }
 0xb93   : > { %12375 = vmatpush3.bf16.msra.mxu1 %v13271_v52  ;;  %v13294_v52 = vld [vmem:[%s15614_s23 + $0x98] sm:$0xff]  }
 0xb94   : > { %12376 = vmatprep.subr.bf16.mxu1 %v13736_v13 }
 0xb97   : > { %12377 = vmatpush3.bf16.msra.mxu1 %v13272_v56  ;;  %v13291_v56 = vld [vmem:[%s15614_s23 + $0x60] sm:$0xff]  }
 0xb98   : > { %12378 = vmatprep.subr.bf16.mxu1 %v13736_v13 }
 0xb9b   : > { %12379 = vmatpush3.bf16.msra.mxu1 %v13273_v57  ;;  %v13296_v57 = vld [vmem:[%s15614_s23 + $0xe0] sm:$0xff]  }
 0xb9c   : > { %12380 = vmatprep.subr.bf16.mxu1 %v13736_v13 }
 0xb9f   : > { %12381 = vmatpush3.bf16.msra.mxu1 %v13274_v60  ;;  %v13293_v60 = vld [vmem:[%s15614_s23 + $0x20] sm:$0xff]  }
 0xba0   : > { %12382 = vmatprep.subr.bf16.mxu1 %v13736_v13 }
 0xba3   : > { %12383 = vmatpush3.bf16.msra.mxu1 %v13275_v61  ;;  %v13298_v61 = vld [vmem:[%s15614_s23 + $0xa0] sm:$0xff]  }
 0xba4   : > { %12384 = vmatprep.subr.bf16.mxu1 %v13736_v13 }
 0xba7   : > { %12385 = vmatpush3.bf16.msra.mxu1 %v13276_v16  ;;  %v13295_v16 = vld [vmem:[%s15614_s23 + $0x68] sm:$0xff]  }
 0xba8   : > { %12395 = vmatprep.subr.mxu1 %v13736_v13 }
 0xc5d   : > { %v11543_v12 = vpop.f32.mrb[64].mxu1 }
 0xc5e   : > { %v11544_v63 = vpop.f32.mrb[65].mxu1  ;;  %v11565_v4 = vpop.f32.mrb[92].mxu0 }
 0xc5f   : > { %v11545_v7 = vadd.f32 %v11544_v63, %v11543_v12  ;;  %v11546_v0 = vpop.f32.mrb[66].mxu1  ;;  %v11566_v5 = vpop.f32.mrb[93].mxu0  ;;  %v13297_v12 = vld [vmem:[%s15614_s23 + $0x28] sm:$0xff]  }
 0xc60   : > { %v11567_v8 = vadd.f32 %v11566_v5, %v11565_v4  ;;  %v11547_v15 = vpop.f32.mrb[67].mxu1  ;;  %v11568_v3 = vpop.f32.mrb[94].mxu0  ;;  %v13302_v63 = vld [vmem:[%s15614_s23 + $0xa8] sm:$0xff]   ;;  %v13299_v4 = vld [vmem:[%s15614_s23 + $0x70] sm:$0xff]   ;;  %v13303_v5 = vld [vmem:[%s15614_s23 + $0x78] sm:$0xff]  }
 0xc61   : > { %v5757_v19 = vadd.f32 %v11545_v7, %v5717_v6  ;;  %v11569_v46 = vpop.f32.mrb[95].mxu0  ;;  %v13304_v6 = vld [vmem:[%s15614_s23 + $0xf0] sm:$0xff]   ;;  %v13305_v15 = vld [vmem:[%s15614_s23 + $0x38] sm:$0xff]  }
 0xc62   : > { %v13301_v7 = vld [vmem:[%s15614_s23 + $0x30] sm:$0xff]   ;;  %v13309_v3 = vld [vmem:[%s15614_s23 + $0xb8] sm:$0xff]   ;;  %v13312_v46 = vld [vmem:[%s15614_s23 + $0x1c0] sm:$0xff]  }
 0xc63   : > { %v5797_v24 = vadd.f32 %v11567_v8, %v5757_v19  ;;  %v13306_v0 = vld [vmem:[%s15614_s23 + $0xb0] sm:$0xff]   ;;  %v13307_v8 = vld [vmem:[%s15614_s23 + $0xf8] sm:$0xff]   ;;  %v13308_v19 = vld [vmem:[%s15614_s23 + $0x140] sm:$0xff]  }
 0xc65   : > { %12391 = vmatpush3.msra.mxu0 %v5797_v24  ;;  %v5809_v32 = vmul.f32 %v10757_v50, %v5797_v24 }
 0xc66   : > { %12400 = vmatprep.subr.mxu0 %v13736_v13  ;;  %12393 = vmatmul.mubr.msk.f32.vlgmr.msra.gmra.mrb[96].mxu0 %vm5932_vm8, %v14511_v40 }
 0xc67   : > { %12401 = vmatpush3.msra.mxu0 %v5797_v24  ;;  %v5817_v39 = vadd.f32 %v10758_v21, %v5809_v32  ;;  %12402 = vmatprep.mubr.msk.f32.mxu0 %vm13741_vm9, %v13736_v13  ;;  %v13310_v21 = vld [vmem:[%s15614_s23 + $0x100] sm:$0xff]  }
 0xc68   : > { %12410 = vmatprep.subr.mxu0 %v13736_v13  ;;  %v13314_v32 = vld [vmem:[%s15614_s23 + $0x180] sm:$0xff]  }
 0xc69   : > { %v5818_v28 = vmax.f32 %v5817_v39, 0.0  ;;  %v13311_v39 = vld [vmem:[%s15614_s23 + $0x148] sm:$0xff]  }
 0xc6a   : > { %12403 = vmatmul.mubr.msk.f32.vlgmr.msra.gmra.mrb[98].mxu0 %vm5932_vm8, %v14569_v29 }
 0xc6b   : > { %v5819_v34 = vpack.c.bf16 %v5818_v28, %v5818_v28  ;;  %12412 = vmatprep.mubr.msk.f32.mxu0 %vm13741_vm9, %v13736_v13  ;;  %v13316_v28 = vld [vmem:[%s15614_s23 + $0x1c8] sm:$0xff]  }
 0xc6d   : > { %12387 = vmatmul.mubr.bf16.vlgmr.msra.gmra.mrb[68].mxu1 %v5819_v34  ;;  %v13313_v34 = vld [vmem:[%s15614_s23 + $0x108] sm:$0xff]  }
 0xc6e   : > { %12396 = vmatpush3.msra.mxu1 %v5797_v24  ;;  %12397 = vmatprep.mubr.msk.f32.mxu1 %vm13741_vm9, %v13736_v13 }
 0xc6f   : > { %12405 = vmatprep.subr.mxu1 %v13736_v13 }
 0xc75   : > { %12398 = vmatmul.mubr.msk.f32.vlgmr.msra.gmra.mrb[72].mxu1 %vm5932_vm8, %v14436_v17 }
 0xc76   : > { %12406 = vmatpush3.msra.mxu1 %v5797_v24  ;;  %12407 = vmatprep.mubr.msk.f32.mxu1 %vm13741_vm9, %v13736_v13 }
 0xc77   : > { %12415 = vmatprep.subr.mxu1 %v13736_v13 }
 0xc79   : > { %12408 = vmatmul.mubr.msk.f32.vlgmr.msra.gmra.mrb[74].mxu1 %vm5932_vm8, %v14529_v9 }
 0xc7a   : > { %12417 = vmatprep.mubr.msk.f32.mxu1 %vm13741_vm9, %v13736_v13 }
 0xd39   : > { %v15024_v48 = vpop.f32.mrb[96].mxu0 }
 0xd3a   : > { %v12394_v20 = vpop.f32.mrb[97].mxu0  ;;  %v6501_v50 = vpack.c.bf16 %v15024_v48, %v15024_v48  ;;  %v13318_v48 = vld [vmem:[%s15614_s23 + $0x188] sm:$0xff]  }
 0xd3b   : > { %v13315_v20 = vld [vmem:[%s15614_s23 + $0x150] sm:$0xff]  }
 0xd3d   : > { %v15026_v23 = vpop.f32.mrb[98].mxu0 }
 0xd3e   : > { %v12404_v43 = vpop.f32.mrb[99].mxu0  ;;  %v6503_v24 = vpack.c.bf16 %v15026_v23, %v15026_v23  ;;  %v13320_v23 = vld [vmem:[%s15614_s23 + $0x1d0] sm:$0xff]  }
 0xd3f   : > { %v13322_v43 = vld [vmem:[%s15614_s23 + $0x190] sm:$0xff]  }
 0xd40   : > { %v5925_v51 = vpop.f32.mrb[68].mxu1 }
 0xd41   : > { %v5926_v11 = vadd.f32 %v10759_v10, %v5925_v51  ;;  %v12388_v31 = vpop.f32.mrb[69].mxu1  ;;  %v13317_v10 = vld [vmem:[%s15614_s23 + $0x110] sm:$0xff]   ;;  %v13319_v51 = vld [vmem:[%s15614_s23 + $0x158] sm:$0xff]  }
 0xd42   : > { %v5928_v58 = vpop.f32.mrb[70].mxu1  ;;  %v13321_v31 = vld [vmem:[%s15614_s23 + $0x118] sm:$0xff]  }
 0xd43   : > { %v5931_v59 = vmax.f32 %v5926_v11, 0.0  ;;  %v12389_v33 = vpop.f32.mrb[71].mxu1  ;;  %v13324_v11 = vld [vmem:[%s15614_s23 + $0x1d8] sm:$0xff]  }
 0xd44   : > { %v13326_v58 = vld [vmem:[%s15614_s23 + $0x198] sm:$0xff]   ;;  %v13328_v33 = vld [vmem:[%s15614_s23 + $0x1e0] sm:$0xff]  }
 0xd45   : > { %12411 = vmatpush3.msra.mxu0 %v5931_v59  ;;  %12416 = vmatpush3.msra.mxu1 %v5931_v59 }
 0xd46   : > { %12418 = vmatmul.mubr.msk.f32.vlgmr.msra.gmra.mrb[76].mxu1 %vm5932_vm8, %v14436_v17  ;;  %12420 = vmatprep.subr.mxu0 %v13736_v13 }
 0xd47   : > { %12425 = vmatprep.subr.mxu1 %v13736_v13  ;;  %12413 = vmatmul.mubr.msk.f32.vlgmr.msra.gmra.mrb[100].mxu0 %vm5932_vm8, %v14511_v40 }
 0xd48   : > { %12421 = vmatpush3.msra.mxu0 %v5931_v59  ;;  %12426 = vmatpush3.msra.mxu1 %v5931_v59  ;;  %v6073_v22 = vpop.f32.mrb[72].mxu1  ;;  %v13323_v59 = vld [vmem:[%s15614_s23 + $0x160] sm:$0xff]  }
 0xd49   : > { %12427 = vmatprep.mubr.msk.f32.mxu1 %vm13741_vm9, %v13736_v13  ;;  %12422 = vmatprep.mubr.msk.f32.mxu0 %vm13741_vm9, %v13736_v13  ;;  %v12399_v2 = vpop.f32.mrb[73].mxu1  ;;  %v6502_v49 = vpack.c.bf16 %v6073_v22, %v6073_v22  ;;  %v13329_v22 = vld [vmem:[%s15614_s23 + $0x128] sm:$0xff]  }
 0xd4a   : > { %12428 = vmatmul.mubr.msk.f32.vlgmr.msra.gmra.mrb[78].mxu1 %vm5932_vm8, %v14529_v9  ;;  %11596 = vmatprep.subr.bf16.mxu0 %v13277_v47  ;;  %v13325_v47 = vld [vmem:[%s15614_s23 + $0x120] sm:$0xff]   ;;  %v13333_v2 = vld [vmem:[%s15614_s23 + $0x130] sm:$0xff]  }
 0xd4b   : > { %12423 = vmatmul.mubr.msk.f32.vlgmr.msra.gmra.mrb[102].mxu0 %vm5932_vm8, %v14569_v29  ;;  %11618 = vmatprep.subr.bf16.mxu1 %v13280_v38  ;;  %v13330_v38 = vld [vmem:[%s15614_s23 + $0x1a0] sm:$0xff]  }
 0xd4c   : > { %11597 = vmatpush3.bf16.msra.mxu0 %v13278_v18  ;;  %11619 = vmatpush3.bf16.msra.mxu1 %v13282_v14  ;;  %v6217_v35 = vpop.f32.mrb[74].mxu1  ;;  %v13327_v18 = vld [vmem:[%s15614_s23 + $0x168] sm:$0xff]  }
 0xd4d   : > { %11598 = vmatprep.subr.bf16.mxu0 %v13279_v25  ;;  %11620 = vmatprep.subr.bf16.mxu1 %v13284_v26  ;;  %v6504_v42 = vpack.c.bf16 %v6217_v35, %v6217_v35  ;;  %v12409_v37 = vpop.f32.mrb[75].mxu1  ;;  %v13332_v14 = vld [vmem:[%s15614_s23 + $0x1e8] sm:$0xff]   ;;  %v13331_v26 = vld [vmem:[%s15614_s23 + $0x170] sm:$0xff]  }
 0xd4e   : > { %7060 = vmatprep.mubr.bf16.mxu0 %v6502_v49  ;;  %v13334_v25 = vld [vmem:[%s15614_s23 + $0x1a8] sm:$0xff]   ;;  %v13335_v49 = vld [vmem:[%s15614_s23 + $0x178] sm:$0xff]   ;;  %v13338_v35 = vld [vmem:[%s15614_s23 + $0x1b0] sm:$0xff]  }
 0xd4f   : > { %7100 = vmatprep.mubr.bf16.mxu1 %v6504_v42 }
 0xd50   : > { %11599 = vmatpush3.bf16.msra.mxu0 %v13281_v30  ;;  %11621 = vmatpush3.bf16.msra.mxu1 %v13286_v41  ;;  %v13336_v30 = vld [vmem:[%s15614_s23 + $0x1f0] sm:$0xff]   ;;  %v13337_v41 = vld [vmem:[%s15614_s23 + $0x138] sm:$0xff]  }
 0xd51   : > { %11600 = vmatprep.subr.bf16.mxu0 %v13283_v36  ;;  %11622 = vmatprep.subr.bf16.mxu1 %v13288_v27  ;;  %v13339_v36 = vld [vmem:[%s15614_s23 + $0x1f8] sm:$0xff]  }
 0xd52   : > { %v13340_v27 = vld [vmem:[%s15614_s23 + $0x1b8] sm:$0xff]  }
 0xd54   : > { %11601 = vmatpush3.bf16.msra.mxu0 %v13285_v44  ;;  %11623 = vmatpush3.bf16.msra.mxu1 %v13290_v45 }
 0xd55   : > { %11602 = vmatprep.subr.bf16.mxu0 %v13287_v53  ;;  %11624 = vmatprep.subr.bf16.mxu1 %v13292_v54  ;;  %v13341_v53 = vld [vmem:[%s15615_s22] sm:$0xff]  }
 0xd58   : > { %11603 = vmatpush3.bf16.msra.mxu0 %v13289_v55  ;;  %11625 = vmatpush3.bf16.msra.mxu1 %v13294_v52 }
 0xd59   : > { %11604 = vmatprep.subr.bf16.mxu0 %v13291_v56  ;;  %11626 = vmatprep.subr.bf16.mxu1 %v13296_v57 }
 0xd5c   : > { %11605 = vmatpush3.bf16.msra.mxu0 %v13293_v60  ;;  %11627 = vmatpush3.bf16.msra.mxu1 %v13298_v61  ;;  %v13342_v61 = vld [vmem:[%s15615_s22 + $0x8] sm:$0xff]  }
 0xd5d   : > { %11606 = vmatprep.subr.bf16.mxu0 %v13295_v16  ;;  %11628 = vmatprep.subr.bf16.mxu1 %v13300_v62 }
 0xd60   : > { %11607 = vmatpush3.bf16.msra.mxu0 %v13297_v12  ;;  %11629 = vmatpush3.bf16.msra.mxu1 %v13302_v63  ;;  %v13343_v12 = vld [vmem:[%s15615_s22 + $0x10] sm:$0xff]   ;;  %v13344_v63 = vld [vmem:[%s15615_s22 + $0x18] sm:$0xff]  }
 0xd61   : > { %11608 = vmatprep.subr.bf16.mxu0 %v13299_v4  ;;  %11630 = vmatprep.subr.bf16.mxu1 %v13304_v6 }
 0xd64   : > { %11609 = vmatpush3.bf16.msra.mxu0 %v13301_v7  ;;  %11631 = vmatpush3.bf16.msra.mxu1 %v13306_v0  ;;  %v10776_v7 = vld [vmem:[%s15616_s3] ss:$0 sm:$0xff]  ;;  %s15617_s3 = sld [smem:[#allocation25_spill]] }
 0xd65   : > { %11610 = vmatprep.subr.bf16.mxu0 %v13303_v5  ;;  %11632 = vmatprep.subr.bf16.mxu1 %v13307_v8 }
 0xd68   : > { %11611 = vmatpush3.bf16.msra.mxu0 %v13305_v15  ;;  %11633 = vmatpush3.bf16.msra.mxu1 %v13309_v3 }
 0xd69   : > { %11640 = vmatprep.subr.bf16.mxu0 %v13308_v19  ;;  %11662 = vmatprep.subr.bf16.mxu1 %v13312_v46 }
 0xd6b   : > { %7061 = vmatmul.mubr.bf16.vlgmr.msra.gmra.mrb[104].mxu0 %v6501_v50  ;;  %7101 = vmatmul.mubr.bf16.vlgmr.msra.gmra.mrb[80].mxu1 %v6503_v24 }
 0xd6c   : > { %11641 = vmatpush3.bf16.msra.mxu0 %v13310_v21  ;;  %11663 = vmatpush3.bf16.msra.mxu1 %v13314_v32  ;;  %v13345_v32 = vld [vmem:[%s15615_s22 + $0x20] sm:$0xff]  }
 0xd6d   : > { %11642 = vmatprep.subr.bf16.mxu0 %v13311_v39  ;;  %11664 = vmatprep.subr.bf16.mxu1 %v13316_v28  ;;  %v13346_v39 = vld [vmem:[%s15615_s22 + $0x28] sm:$0xff]   ;;  %v13347_v28 = vld [vmem:[%s15615_s22 + $0x30] sm:$0xff]  }
 0xd70   : > { %11643 = vmatpush3.bf16.msra.mxu0 %v13313_v34  ;;  %11665 = vmatpush3.bf16.msra.mxu1 %v13318_v48  ;;  %v13348_v34 = vld [vmem:[%s15615_s22 + $0x38] sm:$0xff]  }
 0xd71   : > { %11644 = vmatprep.subr.bf16.mxu0 %v13315_v20  ;;  %11666 = vmatprep.subr.bf16.mxu1 %v13320_v23 }
 0xd74   : > { %11645 = vmatpush3.bf16.msra.mxu0 %v13317_v10  ;;  %11667 = vmatpush3.bf16.msra.mxu1 %v13322_v43 }
 0xd75   : > { %11646 = vmatprep.subr.bf16.mxu0 %v13319_v51  ;;  %11668 = vmatprep.subr.bf16.mxu1 %v13324_v11 }
 0xd78   : > { %11647 = vmatpush3.bf16.msra.mxu0 %v13321_v31  ;;  %11669 = vmatpush3.bf16.msra.mxu1 %v13326_v58 }
 0xd79   : > { %11648 = vmatprep.subr.bf16.mxu0 %v13323_v59  ;;  %11670 = vmatprep.subr.bf16.mxu1 %v13328_v33 }
 0xd7c   : > { %11649 = vmatpush3.bf16.msra.mxu0 %v13325_v47  ;;  %11671 = vmatpush3.bf16.msra.mxu1 %v13330_v38  ;;  %v10841_v47 = vld [vmem:[%s15617_s3] ss:$0 sm:$0xff]  ;;  %s15621_s3 = sld [smem:[#allocation33_spill]] }
 0xd7d   : > { %11650 = vmatprep.subr.bf16.mxu0 %v13327_v18  ;;  %11672 = vmatprep.subr.bf16.mxu1 %v13332_v14  ;;  %v10842_v18 = vld [vmem:[%s15618_s2] ss:$0 sm:$0xff]  ;;  %s15620_s2 = sld [smem:[#allocation28_spill]] }
 0xd80   : > { %11651 = vmatpush3.bf16.msra.mxu0 %v13329_v22  ;;  %11673 = vmatpush3.bf16.msra.mxu1 %v13334_v25 }
 0xd81   : > { %11652 = vmatprep.subr.bf16.mxu0 %v13331_v26  ;;  %11674 = vmatprep.subr.bf16.mxu1 %v13336_v30  ;;  %v13351_v30 = vld [vmem:[%s15619_s5 + $0x48] sm:$0xff]  }
 0xd84   : > { %11653 = vmatpush3.bf16.msra.mxu0 %v13333_v2  ;;  %11675 = vmatpush3.bf16.msra.mxu1 %v13338_v35  ;;  %v13349_v2 = vld [vmem:[%s15619_s5 + $0x40] sm:$0xff]   ;;  %v13355_v35 = vld [vmem:[%s15619_s5 + $0x50] sm:$0xff]  }
 0xd85   : > { %11654 = vmatprep.subr.bf16.mxu0 %v13335_v49  ;;  %11676 = vmatprep.subr.bf16.mxu1 %v13339_v36  ;;  %v13350_v49 = vld [vmem:[%s15619_s5] sm:$0xff]   ;;  %v13357_v36 = vld [vmem:[%s15619_s5 + $0x10] sm:$0xff]  }
 0xd88   : > { %11655 = vmatpush3.bf16.msra.mxu0 %v13337_v41  ;;  %11677 = vmatpush3.bf16.msra.mxu1 %v13340_v27  ;;  %v13353_v41 = vld [vmem:[%s15619_s5 + $0x8] sm:$0xff]   ;;  %v13359_v27 = vld [vmem:[%s15619_s5 + $0x58] sm:$0xff]  }
 0xd89   : > { %12430 = vmatprep.subr.bf16.mxu0 %v13736_v13  ;;  %12450 = vmatprep.subr.mxu1 %v13736_v13 }
 0xe19   : > { %v6357_v42 = vpop.f32.mrb[76].mxu1 }
 0xe1a   : > { %v6506_v37 = vpack.c.bf16 %v6357_v42, %v6357_v42  ;;  %v6287_v44 = vpop.f32.mrb[100].mxu0  ;;  %v12419_v45 = vpop.f32.mrb[77].mxu1  ;;  %v13361_v42 = vld [vmem:[%s15619_s5 + $0x18] sm:$0xff]  }
 0xe1b   : > { %v6505_v54 = vpack.c.bf16 %v6287_v44, %v6287_v44  ;;  %v12414_v55 = vpop.f32.mrb[101].mxu0  ;;  %v13365_v44 = vld [vmem:[%s15619_s5 + $0x20] sm:$0xff]   ;;  %v13367_v45 = vld [vmem:[%s15619_s5 + $0x68] sm:$0xff]  }
 0xe1c   : > { %7140 = vmatprep.mubr.bf16.mxu0 %v6506_v37  ;;  %v13363_v37 = vld [vmem:[%s15619_s5 + $0x60] sm:$0xff]   ;;  %v13373_v55 = vld [vmem:[%s15619_s5 + $0x30] sm:$0xff]  }
 0xe1d   : > { %v6497_v52 = vpop.f32.mrb[78].mxu1  ;;  %7141 = vmatmul.mubr.bf16.vlgmr.msra.gmra.mrb[108].mxu0 %v6505_v54  ;;  %v13371_v54 = vld [vmem:[%s15619_s5 + $0x70] sm:$0xff]  }
 0xe1e   : > { %v6508_v56 = vpack.c.bf16 %v6497_v52, %v6497_v52  ;;  %v6427_v57 = vpop.f32.mrb[102].mxu0  ;;  %v12429_v60 = vpop.f32.mrb[79].mxu1  ;;  %12431 = vmatpush3.bf16.msra.mxu0 %v13341_v53  ;;  %12446 = vmatprep.mubr.msk.bf16.mxu0 %vm13741_vm9, %v13736_v13  ;;  %v13369_v53 = vld [vmem:[%s15619_s5 + $0x28] sm:$0xff]   ;;  %v13375_v52 = vld [vmem:[%s15619_s5 + $0x78] sm:$0xff]  }
 0xe1f   : > { %v6507_v16 = vpack.c.bf16 %v6427_v57, %v6427_v57  ;;  %v12424_v62 = vpop.f32.mrb[103].mxu0  ;;  %12432 = vmatprep.subr.bf16.mxu0 %v13736_v13  ;;  %v13381_v57 = vld [vmem:[%s15619_s5 + $0x140] sm:$0xff]  }
 0xe20   : > { %7180 = vmatprep.mubr.bf16.mxu1 %v6508_v56  ;;  %v13377_v56 = vld [vmem:[%s15619_s5 + $0x38] sm:$0xff]  }
 0xe21   : > { %7181 = vmatmul.mubr.bf16.vlgmr.msra.gmra.mrb[84].mxu1 %v6507_v16 }
 0xe22   : > { %12433 = vmatpush3.bf16.msra.mxu0 %v13342_v61  ;;  %12452 = vmatprep.mubr.msk.f32.mxu1 %vm13741_vm9, %v13736_v13 }
 0xe23   : > { %12434 = vmatprep.subr.bf16.mxu0 %v13736_v13 }
 0xe26   : > { %12435 = vmatpush3.bf16.msra.mxu0 %v13343_v12  ;;  %v10843_v12 = vld [vmem:[%s15620_s2] ss:$0 sm:$0xff]  ;;  %s15622_s2 = sld [smem:[#allocation30_spill]] }
 0xe27   : > { %12436 = vmatprep.subr.bf16.mxu0 %v13736_v13 }
 0xe2a   : > { %12437 = vmatpush3.bf16.msra.mxu0 %v13344_v63 }
 0xe2b   : > { %12438 = vmatprep.subr.bf16.mxu0 %v13736_v13 }
 0xe2e   : > { %12439 = vmatpush3.bf16.msra.mxu0 %v13345_v32  ;;  %v13385_v32 = vld [vmem:[%s15619_s5 + $0x150] sm:$0xff]  }
 0xe2f   : > { %12440 = vmatprep.subr.bf16.mxu0 %v13736_v13 }
 0xe32   : > { %12441 = vmatpush3.bf16.msra.mxu0 %v13346_v39 }
 0xe33   : > { %12442 = vmatprep.subr.bf16.mxu0 %v13736_v13 }
 0xe36   : > { %12443 = vmatpush3.bf16.msra.mxu0 %v13347_v28  ;;  %v13387_v28 = vld [vmem:[%s15619_s5 + $0x110] sm:$0xff]  }
 0xe37   : > { %12444 = vmatprep.subr.bf16.mxu0 %v13736_v13 }
 0xe3a   : > { %12445 = vmatpush3.bf16.msra.mxu0 %v13348_v34  ;;  %v13389_v34 = vld [vmem:[%s15619_s5 + $0x158] sm:$0xff]  }
 0xe3b   : > { %11709 = vmatprep.subr.bf16.mxu0 %v13349_v2  ;;  %v13374_v2 = vld [vmem:[%s15619_s5 + $0xa8] sm:$0xff]  }
 0xe3e   : > { %v11612_v4 = vpop.f32.mrb[104].mxu0  ;;  %v11634_v6 = vpop.f32.mrb[80].mxu1 }
 0xe3f   : > { %v11613_v0 = vpop.f32.mrb[105].mxu0  ;;  %v11635_v5 = vpop.f32.mrb[81].mxu1 }
 0xe40   : > { %v11614_v8 = vadd.f32 %v11613_v0, %v11612_v4  ;;  %v11615_v15 = vpop.f32.mrb[106].mxu0  ;;  %v11636_v3 = vadd.f32 %v11635_v5, %v11634_v6  ;;  %v11637_v19 = vpop.f32.mrb[82].mxu1  ;;  %v13382_v6 = vld [vmem:[%s15619_s5 + $0x100] sm:$0xff]  }
 0xe41   : > { %v11616_v46 = vpop.f32.mrb[107].mxu0  ;;  %v11638_v50 = vpop.f32.mrb[83].mxu1 }
 0xe42   : > { %v7063_v24 = vadd.f32 %v11614_v8, %v10776_v7  ;;  %v13383_v7 = vld [vmem:[%s15619_s5 + $0x148] sm:$0xff]  }
 0xe44   : > { %v7103_v21 = vadd.f32 %v11636_v3, %v7063_v24  ;;  %v13384_v24 = vld [vmem:[%s15619_s5 + $0x108] sm:$0xff]  }
 0xef0   : > { %v11656_v48 = vpop.f32.mrb[108].mxu0 }
 0xef1   : > { %v11657_v20 = vpop.f32.mrb[109].mxu0 }
 0xef2   : > { %v11658_v23 = vadd.f32 %v11657_v20, %v11656_v48  ;;  %v11659_v10 = vpop.f32.mrb[110].mxu0  ;;  %v13352_v48 = vld [vmem:[%s15619_s5 + $0xc0] sm:$0xff]   ;;  %v13391_v20 = vld [vmem:[%s15619_s5 + $0x118] sm:$0xff]  }
 0xef3   : > { %v11660_v43 = vpop.f32.mrb[111].mxu0  ;;  %v13354_v10 = vld [vmem:[%s15619_s5 + $0x80] sm:$0xff]  }
 0xef4   : > { %v7143_v51 = vadd.f32 %v11658_v23, %v7103_v21  ;;  %v11678_v11 = vpop.f32.mrb[84].mxu1  ;;  %v13393_v23 = vld [vmem:[%s15619_s5 + $0x160] sm:$0xff]  }
 0xef5   : > { %v11679_v31 = vpop.f32.mrb[85].mxu1 }
 0xef6   : > { %v11680_v58 = vadd.f32 %v11679_v31, %v11678_v11  ;;  %v11681_v59 = vpop.f32.mrb[86].mxu1  ;;  %v13395_v11 = vld [vmem:[%s15619_s5 + $0x120] sm:$0xff]   ;;  %v13397_v31 = vld [vmem:[%s15619_s5 + $0x168] sm:$0xff]  }
 0xef7   : > { %v11682_v33 = vpop.f32.mrb[87].mxu1  ;;  %v13360_v59 = vld [vmem:[%s15619_s5 + $0xd0] sm:$0xff]  }
 0xef8   : > { %v7183_v38 = vadd.f32 %v11680_v58, %v7143_v51  ;;  %v13356_v51 = vld [vmem:[%s15619_s5 + $0xc8] sm:$0xff]  }
 0xef9   : > { %v13358_v58 = vld [vmem:[%s15619_s5 + $0x88] sm:$0xff]  }
 0xefa   : > { %12451 = vmatpush3.msk.msra.mxu1 %vm7321_vm12, %v7183_v38  ;;  %v7195_v14 = vmul.f32 %v10841_v47, %v7183_v38  ;;  %v13399_v33 = vld [vmem:[%s15619_s5 + $0x128] sm:$0xff]   ;;  %v13401_v47 = vld [vmem:[%s15619_s5 + $0x170] sm:$0xff]  }
 0xefb   : > { %12453 = vmatmul.mubr.msk.f32.vlgmr.msra.gmra.mrb[88].mxu1 %vm7318_vm13, %v14511_v40  ;;  %12455 = vmatprep.subr.mxu1 %v13736_v13 }
 0xefc   : > { %12456 = vmatpush3.msk.msra.mxu1 %vm7321_vm12, %v7183_v38  ;;  %12457 = vmatprep.mubr.msk.f32.mxu1 %vm13741_vm9, %v13736_v13  ;;  %v7203_v22 = vadd.f32 %v10842_v18, %v7195_v14  ;;  %v13364_v18 = vld [vmem:[%s15619_s5 + $0xd8] sm:$0xff]  }
 0xefd   : > { %12460 = vmatprep.subr.mxu1 %v13736_v13  ;;  %v13366_v14 = vld [vmem:[%s15619_s5 + $0x98] sm:$0xff]  }
 0xefe   : > { %v7204_v25 = vmax.f32 %v7203_v22, 0.0  ;;  %v13368_v22 = vld [vmem:[%s15619_s5 + $0xe0] sm:$0xff]  }
 0xeff   : > { %12458 = vmatmul.mubr.msk.f32.vlgmr.msra.gmra.mrb[90].mxu1 %vm7318_vm13, %v14436_v17 }
 0xf00   : > { %12461 = vmatpush3.msk.msra.mxu1 %vm7321_vm12, %v7183_v38  ;;  %v7205_v26 = vpack.c.bf16 %v7204_v25, %v7204_v25  ;;  %12462 = vmatprep.mubr.msk.f32.mxu1 %vm13741_vm9, %v13736_v13  ;;  %v13370_v25 = vld [vmem:[%s15619_s5 + $0xa0] sm:$0xff]  }
 0xf01   : > { %12465 = vmatprep.subr.mxu1 %v13736_v13 }
 0xf02   : > { %12447 = vmatmul.mubr.bf16.vlgmr.msra.gmra.mrb[112].mxu0 %v7205_v26  ;;  %v13372_v26 = vld [vmem:[%s15619_s5 + $0xe8] sm:$0xff]  }
 0xf03   : > { %12463 = vmatmul.mubr.msk.f32.vlgmr.msra.gmra.mrb[92].mxu1 %vm7318_vm13, %v14569_v29  ;;  %11710 = vmatpush3.bf16.msra.mxu0 %v13350_v49  ;;  %v13376_v49 = vld [vmem:[%s15619_s5 + $0xf0] sm:$0xff]  }
 0xf04   : > { %12466 = vmatpush3.msk.msra.mxu1 %vm7321_vm12, %v7183_v38  ;;  %12467 = vmatprep.mubr.msk.f32.mxu1 %vm13741_vm9, %v13736_v13  ;;  %v13362_v38 = vld [vmem:[%s15619_s5 + $0x90] sm:$0xff]  }
 0xf05   : > { %12470 = vmatprep.subr.mxu1 %v13736_v13  ;;  %11711 = vmatprep.subr.bf16.mxu0 %v13351_v30  ;;  %v13378_v30 = vld [vmem:[%s15619_s5 + $0xb0] sm:$0xff]  }
 0xf07   : > { %12468 = vmatmul.mubr.msk.f32.vlgmr.msra.gmra.mrb[94].mxu1 %vm7318_vm13, %v14529_v9  ;;  %11712 = vmatpush3.bf16.msra.mxu0 %v13353_v41  ;;  %v13379_v41 = vld [vmem:[%s15619_s5 + $0xf8] sm:$0xff]  }
 0xf08   : > { %12472 = vmatprep.mubr.msk.f32.mxu1 %vm13741_vm9, %v13736_v13  ;;  %11713 = vmatprep.subr.bf16.mxu0 %v13355_v35  ;;  %v13380_v35 = vld [vmem:[%s15619_s5 + $0xb8] sm:$0xff]  }
 0xf0b   : > { %11714 = vmatpush3.bf16.msra.mxu0 %v13357_v36  ;;  %v13386_v36 = vld [vmem:[%s15619_s5 + $0x1c0] sm:$0xff]  }
 0xf0c   : > { %11715 = vmatprep.subr.bf16.mxu0 %v13359_v27 }
 0xf0f   : > { %11716 = vmatpush3.bf16.msra.mxu0 %v13361_v42  ;;  %v13388_v42 = vld [vmem:[%s15619_s5 + $0x180] sm:$0xff]  }
 0xf10   : > { %11717 = vmatprep.subr.bf16.mxu0 %v13363_v37  ;;  %v13390_v37 = vld [vmem:[%s15619_s5 + $0x1c8] sm:$0xff]  }
 0xf13   : > { %11718 = vmatpush3.bf16.msra.mxu0 %v13365_v44  ;;  %v13392_v44 = vld [vmem:[%s15619_s5 + $0x188] sm:$0xff]  }
 0xf14   : > { %11719 = vmatprep.subr.bf16.mxu0 %v13367_v45  ;;  %v13394_v45 = vld [vmem:[%s15619_s5 + $0x1d0] sm:$0xff]  }
 0xf17   : > { %11720 = vmatpush3.bf16.msra.mxu0 %v13369_v53  ;;  %v13396_v53 = vld [vmem:[%s15619_s5 + $0x190] sm:$0xff]  }
 0xf18   : > { %11721 = vmatprep.subr.bf16.mxu0 %v13371_v54  ;;  %v13398_v54 = vld [vmem:[%s15619_s5 + $0x1d8] sm:$0xff]  }
 0xf1b   : > { %11722 = vmatpush3.bf16.msra.mxu0 %v13373_v55  ;;  %v13400_v55 = vld [vmem:[%s15619_s5 + $0x198] sm:$0xff]  }
 0xf1c   : > { %11723 = vmatprep.subr.bf16.mxu0 %v13375_v52  ;;  %v13402_v52 = vld [vmem:[%s15619_s5 + $0x1e0] sm:$0xff]  }
 0xf1f   : > { %11724 = vmatpush3.bf16.msra.mxu0 %v13377_v56  ;;  %v13403_v56 = vld [vmem:[%s15619_s5 + $0x130] sm:$0xff]  }
 0xf20   : > { %11753 = vmatprep.subr.bf16.mxu0 %v13381_v57  ;;  %v13404_v57 = vld [vmem:[%s15619_s5 + $0x1a0] sm:$0xff]  }
 0xfce   : > { %v7391_v60 = vpop.f32.mrb[88].mxu1 }
 0xfcf   : > { %v12454_v61 = vpop.f32.mrb[89].mxu1  ;;  %v7894_v16 = vpack.c.bf16 %v7391_v60, %v7391_v60  ;;  %v13405_v60 = vld [vmem:[%s15619_s5 + $0x178] sm:$0xff]  }
 0xfd0   : > { %v13406_v61 = vld [vmem:[%s15619_s5 + $0x1e8] sm:$0xff]  }
 0xfd2   : > { %v7463_v62 = vpop.f32.mrb[90].mxu1 }
 0xfd3   : > { %v7895_v63 = vpack.c.bf16 %v7463_v62, %v7463_v62  ;;  %v12459_v4 = vpop.f32.mrb[91].mxu1  ;;  %v13408_v62 = vld [vmem:[%s15619_s5 + $0x1a8] sm:$0xff]  }
 0xfd4   : > { %v13411_v4 = vld [vmem:[%s15619_s5 + $0x1f8] sm:$0xff]  }
 0xfd5   : > { %v7311_v0 = vpop.f32.mrb[112].mxu0  ;;  %8453 = vmatprep.mubr.bf16.mxu0 %v7895_v63  ;;  %v13410_v63 = vld [vmem:[%s15619_s5 + $0x1b0] sm:$0xff]  }
 0xfd6   : > { %v7312_v5 = vadd.f32 %v10843_v12, %v7311_v0  ;;  %v12448_v8 = vpop.f32.mrb[113].mxu0  ;;  %v15179_v15 = vpop.f32.mrb[92].mxu1  ;;  %8454 = vmatmul.mubr.bf16.vlgmr.msra.gmra.mrb[116].mxu0 %v7894_v16  ;;  %v13407_v16 = vld [vmem:[%s15619_s5 + $0x138] sm:$0xff]   ;;  %v13409_v12 = vld [vmem:[%s15619_s5 + $0x1f0] sm:$0xff]  }
 0xfd7   : > { %v7314_v3 = vpop.f32.mrb[114].mxu0  ;;  %v12464_v19 = vpop.f32.mrb[93].mxu1  ;;  %11754 = vmatpush3.bf16.msra.mxu0 %v13382_v6  ;;  %v7896_v27 = vpack.c.bf16 %v15179_v15, %v15179_v15  ;;  %v13412_v6 = vld [vmem:[%s15619_s5 + $0x1b8] sm:$0xff]   ;;  %s15624_s5 = sld [smem:[#allocation32_spill]] }
 0xfd8   : > { %v7317_v46 = vmax.f32 %v7312_v5, 0.0  ;;  %v12449_v50 = vpop.f32.mrb[115].mxu0  ;;  %11755 = vmatprep.subr.bf16.mxu0 %v13383_v7 }
 0xfda   : > { %12471 = vmatpush3.msk.msra.mxu1 %vm7321_vm12, %v7317_v46  ;;  %v7607_v21 = vpop.f32.mrb[94].mxu1 }
 0xfdb   : > { %12473 = vmatmul.mubr.msk.f32.vlgmr.msra.gmra.mrb[96].mxu1 %vm7318_vm13, %v14511_v40  ;;  %12475 = vmatprep.subr.mxu1 %v13736_v13  ;;  %v12469_v39 = vpop.f32.mrb[95].mxu1  ;;  %v7897_v43 = vpack.c.bf16 %v7607_v21, %v7607_v21  ;;  %v13413_v21 = vld [vmem:[%s15621_s3] sm:$0xff]  }
 0xfdc   : > { %12476 = vmatpush3.msk.msra.mxu1 %vm7321_vm12, %v7317_v46  ;;  %12477 = vmatprep.mubr.msk.f32.mxu1 %vm13741_vm9, %v13736_v13 }
 0xfdd   : > { %12480 = vmatprep.subr.mxu1 %v13736_v13  ;;  %11756 = vmatpush3.bf16.msra.mxu0 %v13384_v24 }
 0xfde   : > { %11757 = vmatprep.subr.bf16.mxu0 %v13385_v32 }
 0xfdf   : > { %12478 = vmatmul.mubr.msk.f32.vlgmr.msra.gmra.mrb[98].mxu1 %vm7318_vm13, %v14436_v17 }
 0xfe0   : > { %12481 = vmatpush3.msk.msra.mxu1 %vm7321_vm12, %v7317_v46  ;;  %12482 = vmatprep.mubr.msk.f32.mxu1 %vm13741_vm9, %v13736_v13 }
 0xfe1   : > { %12485 = vmatprep.subr.mxu1 %v13736_v13  ;;  %11758 = vmatpush3.bf16.msra.mxu0 %v13387_v28 }
 0xfe2   : > { %11759 = vmatprep.subr.bf16.mxu0 %v13389_v34  ;;  %v13414_v34 = vld [vmem:[%s15621_s3 + $0x8] sm:$0xff]  }
 0xfe3   : > { %12483 = vmatmul.mubr.msk.f32.vlgmr.msra.gmra.mrb[100].mxu1 %vm7318_vm13, %v14569_v29 }
 0xfe4   : > { %12486 = vmatpush3.msk.msra.mxu1 %vm7321_vm12, %v7317_v46  ;;  %12487 = vmatprep.mubr.msk.f32.mxu1 %vm13741_vm9, %v13736_v13 }
 0xfe5   : > { %11731 = vmatprep.subr.bf16.mxu1 %v13352_v48  ;;  %11760 = vmatpush3.bf16.msra.mxu0 %v13391_v20 }
 0xfe6   : > { %11761 = vmatprep.subr.bf16.mxu0 %v13393_v23 }
 0xfe7   : > { %12488 = vmatmul.mubr.msk.f32.vlgmr.msra.gmra.mrb[102].mxu1 %vm7318_vm13, %v14529_v9 }
 0xfe8   : > { %11732 = vmatpush3.bf16.msra.mxu1 %v13354_v10  ;;  %8493 = vmatprep.mubr.bf16.mxu1 %v7897_v43  ;;  %v13415_v10 = vld [vmem:[%s15621_s3 + $0x10] sm:$0xff]  }
 0xfe9   : > { %11733 = vmatprep.subr.bf16.mxu1 %v13356_v51  ;;  %11762 = vmatpush3.bf16.msra.mxu0 %v13395_v11  ;;  %v10868_v51 = vld [vmem:[%s15622_s2] ss:$0 sm:$0xff]  ;;  %s15623_s2 = sld [smem:[#allocation31_spill]] }
 0xfea   : > { %11763 = vmatprep.subr.bf16.mxu0 %v13397_v31 }
 0xfec   : > { %11734 = vmatpush3.bf16.msra.mxu1 %v13358_v58 }
 0xfed   : > { %11735 = vmatprep.subr.bf16.mxu1 %v13360_v59  ;;  %11764 = vmatpush3.bf16.msra.mxu0 %v13399_v33 }
 0xfee   : > { %11765 = vmatprep.subr.bf16.mxu0 %v13401_v47 }
 0xff0   : > { %11736 = vmatpush3.bf16.msra.mxu1 %v13362_v38 }
 0xff1   : > { %11737 = vmatprep.subr.bf16.mxu1 %v13364_v18  ;;  %11766 = vmatpush3.bf16.msra.mxu0 %v13403_v56  ;;  %v13416_v18 = vld [vmem:[%s15621_s3 + $0x18] sm:$0xff]  }
 0xff2   : > { %11767 = vmatprep.subr.bf16.mxu0 %v13405_v60 }
 0xff4   : > { %11738 = vmatpush3.bf16.msra.mxu1 %v13366_v14  ;;  %v13417_v14 = vld [vmem:[%s15621_s3 + $0x20] sm:$0xff]  }
 0xff5   : > { %11739 = vmatprep.subr.bf16.mxu1 %v13368_v22  ;;  %11768 = vmatpush3.bf16.msra.mxu0 %v13407_v16  ;;  %v13418_v22 = vld [vmem:[%s15621_s3 + $0x28] sm:$0xff]  }
 0xff6   : > { %12490 = vmatprep.subr.bf16.mxu0 %v13736_v13 }
 0xff8   : > { %11740 = vmatpush3.bf16.msra.mxu1 %v13370_v25  ;;  %v13419_v25 = vld [vmem:[%s15621_s3 + $0x30] sm:$0xff]  }
 0xff9   : > { %11741 = vmatprep.subr.bf16.mxu1 %v13372_v26  ;;  %v13420_v26 = vld [vmem:[%s15621_s3 + $0x38] sm:$0xff]  }
 0xffc   : > { %11742 = vmatpush3.bf16.msra.mxu1 %v13374_v2 }
 0xffd   : > { %11743 = vmatprep.subr.bf16.mxu1 %v13376_v49 }
0x1000   : > { %11744 = vmatpush3.bf16.msra.mxu1 %v13378_v30 }
0x1001   : > { %11745 = vmatprep.subr.bf16.mxu1 %v13379_v41 }
0x1004   : > { %11746 = vmatpush3.bf16.msra.mxu1 %v13380_v35 }
0x1005   : > { %11775 = vmatprep.subr.bf16.mxu1 %v13386_v36 }
0x1007   : > { %8494 = vmatmul.mubr.bf16.vlgmr.msra.gmra.mrb[104].mxu1 %v7896_v27 }
0x1008   : > { %11776 = vmatpush3.bf16.msra.mxu1 %v13388_v42 }
0x1009   : > { %11777 = vmatprep.subr.bf16.mxu1 %v13390_v37 }
0x100c   : > { %11778 = vmatpush3.bf16.msra.mxu1 %v13392_v44 }
0x100d   : > { %11779 = vmatprep.subr.bf16.mxu1 %v13394_v45 }
0x1010   : > { %11780 = vmatpush3.bf16.msra.mxu1 %v13396_v53  ;;  %v10933_v53 = vld [vmem:[%s15623_s2] ss:$0 sm:$0xff]  ;;  %s15626_s2 = sld [smem:[#allocation35_spill]] }
0x1011   : > { %11781 = vmatprep.subr.bf16.mxu1 %v13398_v54 }
0x1014   : > { %11782 = vmatpush3.bf16.msra.mxu1 %v13400_v55  ;;  %v10934_v55 = vld [vmem:[%s15624_s5] ss:$0 sm:$0xff]  ;;  %s15625_s5 = sld [smem:[#allocation34_spill]] }
0x1015   : > { %11783 = vmatprep.subr.bf16.mxu1 %v13402_v52 }
0x1018   : > { %11784 = vmatpush3.bf16.msra.mxu1 %v13404_v57 }
0x1019   : > { %11785 = vmatprep.subr.bf16.mxu1 %v13406_v61 }
0x101c   : > { %11786 = vmatpush3.bf16.msra.mxu1 %v13408_v62 }
0x101d   : > { %11787 = vmatprep.subr.bf16.mxu1 %v13409_v12  ;;  %v10935_v12 = vld [vmem:[%s15625_s5] ss:$0 sm:$0xff]  ;;  %s1229_s5 = sand.u32 1, %s13681_s10  }
0x101e   : > { %s1230_s3 = scalar_lea.vmem [#allocation2], %s1229_s5  ;;  %s10373_s9 = scalar_lea.sflag [#allocation3], %s1229_s5 }
0x101f   : > { %s10385_s6 = sshll.u32 %s1230_s3, 4  ;;  %s15489_s6 = int_to_ptr.vmem [resolvable:$true] %s10385_s6 }
0x1020   : > { %11788 = vmatpush3.bf16.msra.mxu1 %v13410_v63  ;;  %p13634_p0 = scmp.lt.s32.totalorder %s15489_s6, %s13632_s14 }
0x1021   : > { %11789 = vmatprep.subr.bf16.mxu1 %v13411_v4 }
0x1024   : > { %11790 = vmatpush3.bf16.msra.mxu1 %v13412_v6 }
0x1025   : > { %12510 = vmatprep.subr.mxu1 %v13736_v13 }
0x10a9   : > { %v11725_v7 = vpop.f32.mrb[116].mxu0 }
0x10aa   : > { %v11726_v0 = vpop.f32.mrb[117].mxu0 }
0x10ab   : > { %v11727_v5 = vadd.f32 %v11726_v0, %v11725_v7  ;;  %v11728_v8 = vpop.f32.mrb[118].mxu0 }
0x10ac   : > { %v11729_v15 = vpop.f32.mrb[119].mxu0 }
0x10ad   : > { %v8456_v11 = vadd.f32 %v11727_v5, %v10868_v51  ;;  %v13450_v51 = vld [vmem:[%s15626_s2 + $0x134] ss:$8 sps:$4 sm:$0xff]  }
0x10ae   : > { %v7680_v3 = vpop.f32.mrb[96].mxu1 }
0x10af   : > { %v12474_v19 = vpop.f32.mrb[97].mxu1  ;;  %v7898_v32 = vpack.c.bf16 %v7680_v3, %v7680_v3 }
0x10b0   : > { %v13423_v19 = vld [vmem:[%s15626_s2 + $0x4] ss:$8 sps:$4 sm:$0xff]  }
0x10b2   : > { %v7750_v46 = vpop.f32.mrb[98].mxu1 }
0x10b3   : > { %v7899_v50 = vpack.c.bf16 %v7750_v46, %v7750_v46  ;;  %v12479_v24 = vpop.f32.mrb[99].mxu1 }
0x10b4   : > { %v13421_v24 = vld [vmem:[%s15626_s2] ss:$8 sps:$4 sm:$0xff]  }
0x10b5   : > { %8533 = vmatprep.mubr.bf16.mxu0 %v7899_v50 }
0x10b6   : > { %8534 = vmatmul.mubr.bf16.vlgmr.msra.gmra.mrb[120].mxu0 %v7898_v32  ;;  %v7820_v39 = vpop.f32.mrb[100].mxu1  ;;  %v13426_v32 = vld [vmem:[%s15626_s2 + $0x14] ss:$8 sps:$4 sm:$0xff]  }
0x10b7   : > { %v12484_v28 = vpop.f32.mrb[101].mxu1  ;;  %12491 = vmatpush3.bf16.msra.mxu0 %v13413_v21  ;;  %12506 = vmatprep.mubr.msk.bf16.mxu0 %vm13741_vm9, %v13736_v13  ;;  %v7900_v43 = vpack.c.bf16 %v7820_v39, %v7820_v39  ;;  %v13432_v39 = vld [vmem:[%s15626_s2 + $0x104] ss:$8 sps:$4 sm:$0xff]  }
0x10b8   : > { %12492 = vmatprep.subr.bf16.mxu0 %v13736_v13  ;;  %v13429_v28 = vld [vmem:[%s15626_s2 + $0x24] ss:$8 sps:$4 sm:$0xff]  }
0x10ba   : > { %v7890_v48 = vpop.f32.mrb[102].mxu1 }
0x10bb   : > { %v7901_v20 = vpack.c.bf16 %v7890_v48, %v7890_v48  ;;  %v12489_v23 = vpop.f32.mrb[103].mxu1  ;;  %12493 = vmatpush3.bf16.msra.mxu0 %v13414_v34  ;;  %v13438_v34 = vld [vmem:[%s15626_s2 + $0x114] ss:$8 sps:$4 sm:$0xff]  }
0x10bc   : > { %12494 = vmatprep.subr.bf16.mxu0 %v13736_v13  ;;  %v13444_v23 = vld [vmem:[%s15626_s2 + $0x124] ss:$8 sps:$4 sm:$0xff]  }
0x10bd   : > { %8573 = vmatprep.mubr.bf16.mxu1 %v7901_v20  ;;  %v13435_v20 = vld [vmem:[%s15626_s2 + $0x34] ss:$8 sps:$4 sm:$0xff]  }
0x10be   : > { %8574 = vmatmul.mubr.bf16.vlgmr.msra.gmra.mrb[108].mxu1 %v7900_v43  ;;  %v13442_v43 = vld [vmem:[%s15626_s2 + $0x120] ss:$8 sps:$4 sm:$0xff]  }
0x10bf   : > { %12495 = vmatpush3.bf16.msra.mxu0 %v13415_v10  ;;  %12512 = vmatprep.mubr.msk.f32.mxu1 %vm13741_vm9, %v13736_v13  ;;  %v13433_v10 = vld [vmem:[%s15626_s2 + $0x30] ss:$8 sps:$4 sm:$0xff]  }
0x10c0   : > { %12496 = vmatprep.subr.bf16.mxu0 %v13736_v13 }
0x10c3   : > { %12497 = vmatpush3.bf16.msra.mxu0 %v13416_v18  ;;  %v13462_v18 = vld [vmem:[%s15626_s2 + $0x154] ss:$8 sps:$4 sm:$0xff]  }
0x10c4   : > { %12498 = vmatprep.subr.bf16.mxu0 %v13736_v13 }
0x10c7   : > { %12499 = vmatpush3.bf16.msra.mxu0 %v13417_v14  ;;  %v13451_v14 = vld [vmem:[%s15626_s2 + $0x60] ss:$8 sps:$4 sm:$0xff]  }
0x10c8   : > { %12500 = vmatprep.subr.bf16.mxu0 %v13736_v13 }
0x10cb   : > { %12501 = vmatpush3.bf16.msra.mxu0 %v13418_v22  ;;  %v13459_v22 = vld [vmem:[%s15626_s2 + $0x74] ss:$8 sps:$4 sm:$0xff]  }
0x10cc   : > { %12502 = vmatprep.subr.bf16.mxu0 %v13736_v13 }
0x10cf   : > { %12503 = vmatpush3.bf16.msra.mxu0 %v13419_v25  ;;  %v13460_v25 = vld [vmem:[%s15626_s2 + $0x150] ss:$8 sps:$4 sm:$0xff]  }
0x10d0   : > { %12504 = vmatprep.subr.bf16.mxu0 %v13736_v13 }
0x10d3   : > { %12505 = vmatpush3.bf16.msra.mxu0 %v13420_v26  ;;  %v13468_v26 = vld [vmem:[%s15626_s2 + $0x164] ss:$8 sps:$4 sm:$0xff]  }
0x10d4   : > { %12545 = vmatprep.subr.mxu0 %v13736_v13 }
0x10da   : > { %v11747_v31 = vpop.f32.mrb[104].mxu1 }
0x10db   : > { %v11748_v58 = vpop.f32.mrb[105].mxu1 }
0x10dc   : > { %v11749_v59 = vadd.f32 %v11748_v58, %v11747_v31  ;;  %v11750_v33 = vpop.f32.mrb[106].mxu1  ;;  %v13447_v31 = vld [vmem:[%s15626_s2 + $0x54] ss:$8 sps:$4 sm:$0xff]   ;;  %v13448_v58 = vld [vmem:[%s15626_s2 + $0x130] ss:$8 sps:$4 sm:$0xff]  }
0x10dd   : > { %v11751_v47 = vpop.f32.mrb[107].mxu1  ;;  %v13445_v33 = vld [vmem:[%s15626_s2 + $0x50] ss:$8 sps:$4 sm:$0xff]  }
0x10de   : > { %v8496_v38 = vadd.f32 %v11749_v59, %v8456_v11  ;;  %v13439_v11 = vld [vmem:[%s15626_s2 + $0x40] ss:$8 sps:$4 sm:$0xff]   ;;  %v13456_v59 = vld [vmem:[%s15626_s2 + $0x144] ss:$8 sps:$4 sm:$0xff]  }
0x10df   : > { %v13453_v47 = vld [vmem:[%s15626_s2 + $0x64] ss:$8 sps:$4 sm:$0xff]  }
0x1189   : > { %v11769_v2 = vpop.f32.mrb[120].mxu0 }
0x118a   : > { %v11770_v49 = vpop.f32.mrb[121].mxu0 }
0x118b   : > { %v11771_v30 = vadd.f32 %v11770_v49, %v11769_v2  ;;  %v11772_v41 = vpop.f32.mrb[122].mxu0  ;;  %v13457_v2 = vld [vmem:[%s15626_s2 + $0x70] ss:$8 sps:$4 sm:$0xff]   ;;  %v13465_v49 = vld [vmem:[%s15626_s2 + $0x84] ss:$8 sps:$4 sm:$0xff]  }
0x118c   : > { %v11773_v35 = vpop.f32.mrb[123].mxu0  ;;  %v13474_v41 = vld [vmem:[%s15626_s2 + $0x174] ss:$8 sps:$4 sm:$0xff]  }
0x118d   : > { %v8536_v36 = vadd.f32 %v11771_v30, %v8496_v38  ;;  %v13454_v38 = vld [vmem:[%s15626_s2 + $0x140] ss:$8 sps:$4 sm:$0xff]  }
0x118e   : > { %v13466_v30 = vld [vmem:[%s15626_s2 + $0x160] ss:$8 sps:$4 sm:$0xff]  }
0x118f   : > { %v13463_v35 = vld [vmem:[%s15626_s2 + $0x80] ss:$8 sps:$4 sm:$0xff]  }
0x1191   : > { %v11791_v27 = vpop.f32.mrb[108].mxu1 }
0x1192   : > { %v11792_v42 = vpop.f32.mrb[109].mxu1 }
0x1193   : > { %v11793_v37 = vadd.f32 %v11792_v42, %v11791_v27  ;;  %v11794_v44 = vpop.f32.mrb[110].mxu1  ;;  %v13472_v27 = vld [vmem:[%s15626_s2 + $0x170] ss:$8 sps:$4 sm:$0xff]   ;;  %v13480_v42 = vld [vmem:[%s15626_s2 + $0x184] ss:$8 sps:$4 sm:$0xff]  }
0x1194   : > { %v11795_v45 = vpop.f32.mrb[111].mxu1  ;;  %v13477_v44 = vld [vmem:[%s15626_s2 + $0xa4] ss:$8 sps:$4 sm:$0xff]  }
0x1195   : > { %v8576_v54 = vadd.f32 %v11793_v37, %v8536_v36  ;;  %v13471_v36 = vld [vmem:[%s15626_s2 + $0x94] ss:$8 sps:$4 sm:$0xff]   ;;  %v13469_v37 = vld [vmem:[%s15626_s2 + $0x90] ss:$8 sps:$4 sm:$0xff]   ;;  %v13478_v45 = vld [vmem:[%s15626_s2 + $0x180] ss:$8 sps:$4 sm:$0xff]  }
0x1197   : > { %12511 = vmatpush3.msk.msra.mxu1 %vm8714_vm14, %v8576_v54  ;;  %v8588_v52 = vmul.f32 %v10933_v53, %v8576_v54  ;;  %v13486_v53 = vld [vmem:[%s15626_s2 + $0x194] ss:$8 sps:$4 sm:$0xff]  }
0x1198   : > { %12513 = vmatmul.mubr.msk.f32.vlgmr.msra.gmra.mrb[112].mxu1 %vm8711_vm10, %v14511_v40  ;;  %12515 = vmatprep.subr.mxu1 %v13736_v13 }
0x1199   : > { %12516 = vmatpush3.msk.msra.mxu1 %vm8714_vm14, %v8576_v54  ;;  %12517 = vmatprep.mubr.msk.f32.mxu1 %vm13741_vm9, %v13736_v13  ;;  %v8596_v56 = vadd.f32 %v10934_v55, %v8588_v52  ;;  %v13483_v55 = vld [vmem:[%s15626_s2 + $0xb4] ss:$8 sps:$4 sm:$0xff]   ;;  %v13484_v52 = vld [vmem:[%s15626_s2 + $0x190] ss:$8 sps:$4 sm:$0xff]  }
0x119a   : > { %12520 = vmatprep.subr.mxu1 %v13736_v13 }
0x119b   : > { %v8597_v57 = vmax.f32 %v8596_v56, 0.0  ;;  %v13492_v56 = vld [vmem:[%s15626_s2 + $0x1a4] ss:$8 sps:$4 sm:$0xff]  }
0x119c   : > { %12518 = vmatmul.mubr.msk.f32.vlgmr.msra.gmra.mrb[114].mxu1 %vm8711_vm10, %v14436_v17 }
0x119d   : > { %12521 = vmatpush3.msk.msra.mxu1 %vm8714_vm14, %v8576_v54  ;;  %v8598_v60 = vpack.c.bf16 %v8597_v57, %v8597_v57  ;;  %12522 = vmatprep.mubr.msk.f32.mxu1 %vm13741_vm9, %v13736_v13  ;;  %v13481_v57 = vld [vmem:[%s15626_s2 + $0xb0] ss:$8 sps:$4 sm:$0xff]  }
0x119e   : > { %12525 = vmatprep.subr.mxu1 %v13736_v13 }
0x119f   : > { %12507 = vmatmul.mubr.bf16.vlgmr.msra.gmra.mrb[124].mxu0 %v8598_v60  ;;  %v13489_v60 = vld [vmem:[%s15626_s2 + $0xc4] ss:$8 sps:$4 sm:$0xff]  }
0x11a0   : > { %12523 = vmatmul.mubr.msk.f32.vlgmr.msra.gmra.mrb[116].mxu1 %vm8711_vm10, %v14569_v29  ;;  %12547 = vmatprep.mubr.msk.f32.mxu0 %vm13741_vm9, %v13736_v13 }
0x11a1   : > { %12526 = vmatpush3.msk.msra.mxu1 %vm8714_vm14, %v8576_v54  ;;  %12527 = vmatprep.mubr.msk.f32.mxu1 %vm13741_vm9, %v13736_v13  ;;  %v13475_v54 = vld [vmem:[%s15626_s2 + $0xa0] ss:$8 sps:$4 sm:$0xff]  }
0x11a2   : > { %12530 = vmatprep.subr.mxu1 %v13736_v13 }
0x11a4   : > { %12528 = vmatmul.mubr.msk.f32.vlgmr.msra.gmra.mrb[118].mxu1 %vm8711_vm10, %v14529_v9 }
0x11a5   : > { %12532 = vmatprep.mubr.msk.f32.mxu1 %vm13741_vm9, %v13736_v13 }
0x126b   : > { %v15300_v61 = vpop.f32.mrb[112].mxu1 }
0x126c   : > { %v12514_v16 = vpop.f32.mrb[113].mxu1 }
0x126d   : > { %v13490_v16 = vld [vmem:[%s15626_s2 + $0x1a0] ss:$8 sps:$4 sm:$0xff]  }
0x126f   : > { %v8856_v62 = vpop.f32.mrb[114].mxu1 }
0x1270   : > { %v12519_v63 = vpop.f32.mrb[115].mxu1  ;;  %v9288_v46 = vpack.c.bf16 %v8856_v62, %v8856_v62  ;;  %v13498_v62 = vld [vmem:[%s15626_s2 + $0x1b4] ss:$8 sps:$4 sm:$0xff]  }
0x1271   : > { %v13495_v63 = vld [vmem:[%s15626_s2 + $0xd4] ss:$8 sps:$4 sm:$0xff]  }
0x1272   : > { %v8704_v4 = vpop.f32.mrb[124].mxu0 }
0x1273   : > { %v8705_v6 = vadd.f32 %v10935_v12, %v8704_v4  ;;  %v12508_v7 = vpop.f32.mrb[125].mxu0  ;;  %v15303_v0 = vpop.f32.mrb[116].mxu1  ;;  %v13487_v12 = vld [vmem:[%s15626_s2 + $0xc0] ss:$8 sps:$4 sm:$0xff]   ;;  %v13496_v4 = vld [vmem:[%s15626_s2 + $0x1b0] ss:$8 sps:$4 sm:$0xff]  }
0x1274   : > { %v8707_v5 = vpop.f32.mrb[126].mxu0  ;;  %v12524_v8 = vpop.f32.mrb[117].mxu1  ;;  %v13493_v7 = vld [vmem:[%s15626_s2 + $0xd0] ss:$8 sps:$4 sm:$0xff]  }
0x1275   : > { %v8710_v15 = vmax.f32 %v8705_v6, 0.0  ;;  %v12509_v3 = vpop.f32.mrb[127].mxu0  ;;  %v13504_v6 = vld [vmem:[%s15626_s2 + $0x1c4] ss:$8 sps:$4 sm:$0xff]   ;;  %v13502_v8 = vld [vmem:[%s15626_s2 + $0x1c0] ss:$8 sps:$4 sm:$0xff]  }
0x1276   : > { %v13501_v5 = vld [vmem:[%s15626_s2 + $0xe4] ss:$8 sps:$4 sm:$0xff]   ;;  %v13499_v3 = vld [vmem:[%s15626_s2 + $0xe0] ss:$8 sps:$4 sm:$0xff]  }
0x1277   : > { %12531 = vmatpush3.msk.msra.mxu1 %vm8714_vm14, %v8710_v15  ;;  %12546 = vmatpush3.msk.msra.mxu0 %vm8714_vm14, %v8710_v15  ;;  %v9000_v50 = vpop.f32.mrb[118].mxu1 }
0x1278   : > { %12533 = vmatmul.mubr.msk.f32.vlgmr.msra.gmra.mrb[120].mxu1 %vm8711_vm10, %v14511_v40  ;;  %12535 = vmatprep.subr.mxu1 %v13736_v13  ;;  %v12529_v21 = vpop.f32.mrb[119].mxu1  ;;  %v13424_v40 = vld [vmem:[%s15626_s2 + $0x10] ss:$8 sps:$4 sm:$0xff]   ;;  %v9290_v48 = vpack.c.bf16 %v9000_v50, %v9000_v50  ;;  %v13513_v50 = vld [vmem:[%s15626_s2 + $0x1e4] ss:$8 sps:$4 sm:$0xff]  }
0x1279   : > { %12536 = vmatpush3.msk.msra.mxu1 %vm8714_vm14, %v8710_v15  ;;  %12537 = vmatprep.mubr.msk.f32.mxu1 %vm13741_vm9, %v13736_v13  ;;  %v13511_v21 = vld [vmem:[%s15626_s2 + $0x1e0] ss:$8 sps:$4 sm:$0xff]  }
0x127a   : > { %12540 = vmatprep.subr.mxu1 %v13736_v13  ;;  %12548 = vmatmul.mubr.msk.f32.vlgmr.msra.gmra.mrb[128].mxu0 %vm8711_vm10, %v14529_v9  ;;  %v13430_v9 = vld [vmem:[%s15626_s2 + $0x100] ss:$8 sps:$4 sm:$0xff]  }
0x127b   : > { %10075 = vmatprep.subr.bf16.mxu0 %v13423_v19  ;;  %10107 = vmatprep.mubr.bf16.mxu0 %v9288_v46  ;;  %v13507_v19 = vld [vmem:[%s15626_s2 + $0xf4] ss:$8 sps:$4 sm:$0xff]   ;;  %v13508_v46 = vld [vmem:[%s15626_s2 + $0x1d0] ss:$8 sps:$4 sm:$0xff]  }
0x127c   : > { %12538 = vmatmul.mubr.msk.f32.vlgmr.msra.gmra.mrb[122].mxu1 %vm8711_vm10, %v14436_v17  ;;  %10076 = vmatpush1.bf16.msra.mxu0 %v13421_v24  ;;  %v13427_v17 = vld [vmem:[%s15626_s2 + $0x20] ss:$8 sps:$4 sm:$0xff]   ;;  %v13505_v24 = vld [vmem:[%s15626_s2 + $0xf0] ss:$8 sps:$4 sm:$0xff]  }
0x127d   : > { %12541 = vmatpush3.msk.msra.mxu1 %vm8714_vm14, %v8710_v15  ;;  %12542 = vmatprep.mubr.msk.f32.mxu1 %vm13741_vm9, %v13736_v13  ;;  %v13436_v13 = vld [vmem:[%s15626_s2 + $0x110] ss:$8 sps:$4 sm:$0xff]   ;;  %v13510_v15 = vld [vmem:[%s15626_s2 + $0x1d4] ss:$8 sps:$4 sm:$0xff]  }
0x127e   : > { %10077 = vmatprep.subr.bf16.mxu0 %v13426_v32  ;;  %10116 = vmatprep.subr.bf16.mxu1 %v13432_v39  ;;  %v13516_v32 = vld [vmem:[%s15626_s2 + $0x1f4] ss:$8 sps:$4 sm:$0xff]   ;;  %v9287_v39 = vpack.c.bf16 %v15300_v61, %v15300_v61  ;;  %v13520_v61 = vld [vmem:[%s15626_s2 + $0x210] ss:$8 sps:$4 sm:$0xff]  }
0x1280   : > { %12543 = vmatmul.mubr.msk.f32.vlgmr.msra.gmra.mrb[124].mxu1 %vm8711_vm10, %v14569_v29  ;;  %10078 = vmatpush1.bf16.msra.mxu0 %v13424_v40  ;;  %v13441_v29 = vld [vmem:[%s15626_s2 + $0x44] ss:$8 sps:$4 sm:$0xff]   ;;  %v13514_v40 = vld [vmem:[%s15626_s2 + $0x1f0] ss:$8 sps:$4 sm:$0xff]  }
0x1281   : > { %10079 = vmatprep.subr.bf16.mxu0 %v13429_v28  ;;  %10117 = vmatpush1.bf16.msra.mxu1 %v13430_v9  ;;  %v13519_v28 = vld [vmem:[%s15626_s2 + $0x204] ss:$8 sps:$4 sm:$0xff]   ;;  %v9289_v9 = vpack.c.bf16 %v15303_v0, %v15303_v0  ;;  %v13526_v0 = vld [vmem:[%s15626_s2 + $0x230] ss:$8 sps:$4 sm:$0xff]  }
0x1282   : > { %10118 = vmatprep.subr.bf16.mxu1 %v13438_v34  ;;  %10148 = vmatprep.mubr.bf16.mxu1 %v9290_v48  ;;  %v13517_v34 = vld [vmem:[%s15626_s2 + $0x200] ss:$8 sps:$4 sm:$0xff]   ;;  %v13522_v48 = vld [vmem:[%s15626_s2 + $0x214] ss:$8 sps:$4 sm:$0xff]  }
0x1284   : > { %10080 = vmatpush1.bf16.msra.mxu0 %v13427_v17  ;;  %v13525_v17 = vld [vmem:[%s15626_s2 + $0x224] ss:$8 sps:$4 sm:$0xff]  }
0x1285   : > { %10081 = vmatprep.subr.bf16.mxu0 %v13435_v20  ;;  %10119 = vmatpush1.bf16.msra.mxu1 %v13436_v13  ;;  %v13523_v20 = vld [vmem:[%s15626_s2 + $0x220] ss:$8 sps:$4 sm:$0xff]   ;;  %v13528_v13 = vld [vmem:[%s15626_s2 + $0x234] ss:$8 sps:$4 sm:$0xff]  }
0x1286   : > { %10120 = vmatprep.subr.bf16.mxu1 %v13444_v23  ;;  %v13531_v23 = vld [vmem:[%s15626_s2 + $0x244] ss:$8 sps:$4 sm:$0xff]  }
0x1288   : > { %10082 = vmatpush1.bf16.msra.mxu0 %v13433_v10  ;;  %v13529_v10 = vld [vmem:[%s15626_s2 + $0x240] ss:$8 sps:$4 sm:$0xff]  }
0x1289   : > { %10083 = vmatprep.subr.bf16.mxu0 %v13441_v29  ;;  %10121 = vmatpush1.bf16.msra.mxu1 %v13442_v43  ;;  %v13534_v29 = vld [vmem:[%s15626_s2 + $0x254] ss:$8 sps:$4 sm:$0xff]   ;;  %v13532_v43 = vld [vmem:[%s15626_s2 + $0x250] ss:$8 sps:$4 sm:$0xff]  }
0x128a   : > { %10122 = vmatprep.subr.bf16.mxu1 %v13450_v51  ;;  %v13537_v51 = vld [vmem:[%s15626_s2 + $0x264] ss:$8 sps:$4 sm:$0xff]  }
0x128c   : > { %10084 = vmatpush1.bf16.msra.mxu0 %v13439_v11  ;;  %v13535_v11 = vld [vmem:[%s15626_s2 + $0x260] ss:$8 sps:$4 sm:$0xff]  }
0x128d   : > { %10085 = vmatprep.subr.bf16.mxu0 %v13447_v31  ;;  %10123 = vmatpush1.bf16.msra.mxu1 %v13448_v58  ;;  %v13540_v31 = vld [vmem:[%s15626_s2 + $0x274] ss:$8 sps:$4 sm:$0xff]   ;;  %v13538_v58 = vld [vmem:[%s15626_s2 + $0x270] ss:$8 sps:$4 sm:$0xff]  }
0x128e   : > { %10124 = vmatprep.subr.bf16.mxu1 %v13456_v59  ;;  %v13543_v59 = vld [vmem:[%s15626_s2 + $0x284] ss:$8 sps:$4 sm:$0xff]  }
0x1290   : > { %10086 = vmatpush1.bf16.msra.mxu0 %v13445_v33  ;;  %v13541_v33 = vld [vmem:[%s15626_s2 + $0x280] ss:$8 sps:$4 sm:$0xff]  }
0x1291   : > { %10087 = vmatprep.subr.bf16.mxu0 %v13453_v47  ;;  %10125 = vmatpush1.bf16.msra.mxu1 %v13454_v38  ;;  %v13546_v47 = vld [vmem:[%s15626_s2 + $0x294] ss:$8 sps:$4 sm:$0xff]   ;;  %v13544_v38 = vld [vmem:[%s15626_s2 + $0x290] ss:$8 sps:$4 sm:$0xff]  }
0x1292   : > { %10126 = vmatprep.subr.bf16.mxu1 %v13462_v18  ;;  %v13549_v18 = vld [vmem:[%s15626_s2 + $0x2a4] ss:$8 sps:$4 sm:$0xff]  }
0x1294   : > { %10088 = vmatpush1.bf16.msra.mxu0 %v13451_v14  ;;  %v13547_v14 = vld [vmem:[%s15626_s2 + $0x2a0] ss:$8 sps:$4 sm:$0xff]  }
0x1295   : > { %10089 = vmatprep.subr.bf16.mxu0 %v13459_v22  ;;  %10127 = vmatpush1.bf16.msra.mxu1 %v13460_v25  ;;  %v13552_v22 = vld [vmem:[%s15626_s2 + $0x2b4] ss:$8 sps:$4 sm:$0xff]   ;;  %v13550_v25 = vld [vmem:[%s15626_s2 + $0x2b0] ss:$8 sps:$4 sm:$0xff]  }
0x1296   : > { %10128 = vmatprep.subr.bf16.mxu1 %v13468_v26  ;;  %v13555_v26 = vld [vmem:[%s15626_s2 + $0x2c4] ss:$8 sps:$4 sm:$0xff]  }
0x1298   : > { %10090 = vmatpush1.bf16.msra.mxu0 %v13457_v2  ;;  %v13553_v2 = vld [vmem:[%s15626_s2 + $0x2c0] ss:$8 sps:$4 sm:$0xff]  }
0x1299   : > { %10091 = vmatprep.subr.bf16.mxu0 %v13465_v49  ;;  %10129 = vmatpush1.bf16.msra.mxu1 %v13466_v30  ;;  %v13558_v49 = vld [vmem:[%s15626_s2 + $0x2d4] ss:$8 sps:$4 sm:$0xff]   ;;  %v13556_v30 = vld [vmem:[%s15626_s2 + $0x2d0] ss:$8 sps:$4 sm:$0xff]  }
0x129a   : > { %10130 = vmatprep.subr.bf16.mxu1 %v13474_v41  ;;  %v13561_v41 = vld [vmem:[%s15626_s2 + $0x2e4] ss:$8 sps:$4 sm:$0xff]  }
0x129c   : > { %10092 = vmatpush1.bf16.msra.mxu0 %v13463_v35  ;;  %v13559_v35 = vld [vmem:[%s15626_s2 + $0x2e0] ss:$8 sps:$4 sm:$0xff]  }
0x129d   : > { %10093 = vmatprep.subr.bf16.mxu0 %v13471_v36  ;;  %10131 = vmatpush1.bf16.msra.mxu1 %v13472_v27  ;;  %v13564_v36 = vld [vmem:[%s15626_s2 + $0x2f4] ss:$8 sps:$4 sm:$0xff]   ;;  %v13562_v27 = vld [vmem:[%s15626_s2 + $0x2f0] ss:$8 sps:$4 sm:$0xff]  }
0x129e   : > { %10132 = vmatprep.subr.bf16.mxu1 %v13480_v42  ;;  %v13567_v42 = vld [vmem:[%s15626_s2 + $0x304] ss:$8 sps:$4 sm:$0xff]  }
0x12a0   : > { %10094 = vmatpush1.bf16.msra.mxu0 %v13469_v37  ;;  %v13613_v37 = vld [vmem:[%s13947_s20] sm:$0xff]  }
0x12a1   : > { %10095 = vmatprep.subr.bf16.mxu0 %v13477_v44  ;;  %10133 = vmatpush1.bf16.msra.mxu1 %v13478_v45  ;;  %v13742_v44 = vmov 0   ;;  %v13614_v45 = vld [vmem:[%s13947_s20 + $0x8] sm:$0xff]  }
0x12a2   : > { %10134 = vmatprep.subr.bf16.mxu1 %v13486_v53  ;;  %v13615_v53 = vld [vmem:[%s13947_s20 + $0x10] sm:$0xff]  }
0x12a4   : > { %10096 = vmatpush1.bf16.msra.mxu0 %v13475_v54  ;;  %v13616_v54 = vld [vmem:[%s13947_s20 + $0x18] sm:$0xff]  }
0x12a5   : > { %10097 = vmatprep.subr.bf16.mxu0 %v13483_v55  ;;  %10135 = vmatpush1.bf16.msra.mxu1 %v13484_v52  ;;  %v13617_v55 = vld [vmem:[%s13947_s20 + $0x20] sm:$0xff]   ;;  %v13618_v52 = vld [vmem:[%s13947_s20 + $0x28] sm:$0xff]  }
0x12a6   : > { %10136 = vmatprep.subr.bf16.mxu1 %v13492_v56  ;;  %v13619_v56 = vld [vmem:[%s13947_s20 + $0x30] sm:$0xff]  }
0x12a8   : > { %10098 = vmatpush1.bf16.msra.mxu0 %v13481_v57  ;;  %v13620_v57 = vld [vmem:[%s13947_s20 + $0x38] sm:$0xff]  }
0x12a9   : > { %10099 = vmatprep.subr.bf16.mxu0 %v13489_v60  ;;  %10137 = vmatpush1.bf16.msra.mxu1 %v13490_v16 }
0x12aa   : > { %10138 = vmatprep.subr.bf16.mxu1 %v13498_v62 }
0x12ac   : > { %10100 = vmatpush1.bf16.msra.mxu0 %v13487_v12 }
0x12ad   : > { %10101 = vmatprep.subr.bf16.mxu0 %v13495_v63  ;;  %10139 = vmatpush1.bf16.msra.mxu1 %v13496_v4 }
0x12ae   : > { %10140 = vmatprep.subr.bf16.mxu1 %v13504_v6  ;;  %v13565_v6 = vld [vmem:[%s15626_s2 + $0x300] ss:$8 sps:$4 sm:$0xff]  }
0x12b0   : > { %10102 = vmatpush1.bf16.msra.mxu0 %v13493_v7 }
0x12b1   : > { %10103 = vmatprep.subr.bf16.mxu0 %v13501_v5  ;;  %10141 = vmatpush1.bf16.msra.mxu1 %v13502_v8 }
0x12b2   : > { %10142 = vmatprep.subr.bf16.mxu1 %v13510_v15  ;;  %v13570_v15 = vld [vmem:[%s15626_s2 + $0x314] ss:$8 sps:$4 sm:$0xff]  }
0x12b4   : > { %10104 = vmatpush1.bf16.msra.mxu0 %v13499_v3 }
0x12b5   : > { %10105 = vmatprep.subr.bf16.mxu0 %v13507_v19  ;;  %10143 = vmatpush1.bf16.msra.mxu1 %v13508_v46  ;;  %v13568_v19 = vld [vmem:[%s15626_s2 + $0x310] ss:$8 sps:$4 sm:$0xff]  }
0x12b6   : > { %10144 = vmatprep.subr.bf16.mxu1 %v13513_v50  ;;  %v13573_v50 = vld [vmem:[%s15626_s2 + $0x324] ss:$8 sps:$4 sm:$0xff]  }
0x12b8   : > { %10106 = vmatpush1.bf16.msra.mxu0 %v13505_v24  ;;  %v13571_v24 = vld [vmem:[%s15626_s2 + $0x320] ss:$8 sps:$4 sm:$0xff]  }
0x12b9   : > { %10145 = vmatpush1.bf16.msra.mxu1 %v13511_v21  ;;  %10325 = vmatprep.subr.bf16.mxu0 %v13742_v44  ;;  %v13576_v21 = vld [vmem:[%s15626_s2 + $0x334] ss:$8 sps:$4 sm:$0xff]  }
0x12ba   : > { %10146 = vmatprep.subr.bf16.mxu1 %v13516_v32  ;;  %v13574_v32 = vld [vmem:[%s15626_s2 + $0x330] ss:$8 sps:$4 sm:$0xff]  }
0x12bb   : > { %10108 = vmatmul.mubr.bf16.vlgmr.msra.gmra.mrb[132].mxu0 %v9287_v39  ;;  %v13579_v39 = vld [vmem:[%s15626_s2 + $0x344] ss:$8 sps:$4 sm:$0xff]  }
0x12bc   : > { %10326 = vmatpush1.bf16.msra.mxu0 %v13613_v37 }
0x12bd   : > { %10147 = vmatpush1.bf16.msra.mxu1 %v13514_v40  ;;  %10327 = vmatprep.subr.bf16.mxu0 %v13742_v44  ;;  %v13577_v40 = vld [vmem:[%s15626_s2 + $0x340] ss:$8 sps:$4 sm:$0xff]  }
0x12be   : > { %10157 = vmatprep.subr.bf16.mxu1 %v13519_v28  ;;  %v13582_v28 = vld [vmem:[%s15626_s2 + $0x354] ss:$8 sps:$4 sm:$0xff]  }
0x12c0   : > { %10149 = vmatmul.mubr.bf16.vlgmr.msra.gmra.mrb[128].mxu1 %v9289_v9  ;;  %10328 = vmatpush1.bf16.msra.mxu0 %v13614_v45  ;;  %v13580_v9 = vld [vmem:[%s15626_s2 + $0x350] ss:$8 sps:$4 sm:$0xff]  }
0x12c1   : > { %10158 = vmatpush1.bf16.msra.mxu1 %v13517_v34  ;;  %10329 = vmatprep.subr.bf16.mxu0 %v13742_v44  ;;  %v13585_v34 = vld [vmem:[%s15626_s2 + $0x364] ss:$8 sps:$4 sm:$0xff]  }
0x12c2   : > { %10159 = vmatprep.subr.bf16.mxu1 %v13522_v48  ;;  %v13583_v48 = vld [vmem:[%s15626_s2 + $0x360] ss:$8 sps:$4 sm:$0xff]  }
0x12c4   : > { %10330 = vmatpush1.bf16.msra.mxu0 %v13615_v53 }
0x12c5   : > { %10160 = vmatpush1.bf16.msra.mxu1 %v13520_v61  ;;  %10331 = vmatprep.subr.bf16.mxu0 %v13742_v44  ;;  %v13588_v61 = vld [vmem:[%s15626_s2 + $0x374] ss:$8 sps:$4 sm:$0xff]  }
0x12c6   : > { %10161 = vmatprep.subr.bf16.mxu1 %v13525_v17  ;;  %v13586_v17 = vld [vmem:[%s15626_s2 + $0x370] ss:$8 sps:$4 sm:$0xff]  }
0x12c8   : > { %10332 = vmatpush1.bf16.msra.mxu0 %v13616_v54 }
0x12c9   : > { %10162 = vmatpush1.bf16.msra.mxu1 %v13523_v20  ;;  %10333 = vmatprep.subr.bf16.mxu0 %v13742_v44  ;;  %v13591_v20 = vld [vmem:[%s15626_s2 + $0x384] ss:$8 sps:$4 sm:$0xff]  }
0x12ca   : > { %10163 = vmatprep.subr.bf16.mxu1 %v13528_v13  ;;  %v13589_v13 = vld [vmem:[%s15626_s2 + $0x380] ss:$8 sps:$4 sm:$0xff]  }
0x12cc   : > { %10334 = vmatpush1.bf16.msra.mxu0 %v13617_v55 }
0x12cd   : > { %10164 = vmatpush1.bf16.msra.mxu1 %v13526_v0  ;;  %10335 = vmatprep.subr.bf16.mxu0 %v13742_v44  ;;  %v13594_v0 = vld [vmem:[%s15626_s2 + $0x394] ss:$8 sps:$4 sm:$0xff]  }
0x12ce   : > { %10165 = vmatprep.subr.bf16.mxu1 %v13531_v23  ;;  %v13592_v23 = vld [vmem:[%s15626_s2 + $0x390] ss:$8 sps:$4 sm:$0xff]  }
0x12d0   : > { %10336 = vmatpush1.bf16.msra.mxu0 %v13618_v52 }
0x12d1   : > { %10166 = vmatpush1.bf16.msra.mxu1 %v13529_v10  ;;  %10337 = vmatprep.subr.bf16.mxu0 %v13742_v44  ;;  %v13597_v10 = vld [vmem:[%s15626_s2 + $0x3a4] ss:$8 sps:$4 sm:$0xff]  }
0x12d2   : > { %10167 = vmatprep.subr.bf16.mxu1 %v13534_v29  ;;  %v13595_v29 = vld [vmem:[%s15626_s2 + $0x3a0] ss:$8 sps:$4 sm:$0xff]  }
0x12d4   : > { %10338 = vmatpush1.bf16.msra.mxu0 %v13619_v56 }
0x12d5   : > { %10168 = vmatpush1.bf16.msra.mxu1 %v13532_v43  ;;  %10339 = vmatprep.subr.bf16.mxu0 %v13742_v44  ;;  %v13600_v43 = vld [vmem:[%s15626_s2 + $0x3b4] ss:$8 sps:$4 sm:$0xff]  }
0x12d6   : > { %10169 = vmatprep.subr.bf16.mxu1 %v13537_v51  ;;  %v13598_v51 = vld [vmem:[%s15626_s2 + $0x3b0] ss:$8 sps:$4 sm:$0xff]  }
0x12d8   : > { %10340 = vmatpush1.bf16.msra.mxu0 %v13620_v57 }
0x12d9   : > { %10170 = vmatpush1.bf16.msra.mxu1 %v13535_v11  ;;  %10341 = vmatprep.subr.bf16.mxu0 %v13742_v44  ;;  %v13603_v11 = vld [vmem:[%s15626_s2 + $0x3c4] ss:$8 sps:$4 sm:$0xff]  }
0x12da   : > { %10171 = vmatprep.subr.bf16.mxu1 %v13540_v31  ;;  %v13601_v31 = vld [vmem:[%s15626_s2 + $0x3c0] ss:$8 sps:$4 sm:$0xff]  }
0x12dd   : > { %10172 = vmatpush1.bf16.msra.mxu1 %v13538_v58  ;;  %v13606_v58 = vld [vmem:[%s15626_s2 + $0x3d4] ss:$8 sps:$4 sm:$0xff]  }
0x12de   : > { %10173 = vmatprep.subr.bf16.mxu1 %v13543_v59  ;;  %v13604_v59 = vld [vmem:[%s15626_s2 + $0x3d0] ss:$8 sps:$4 sm:$0xff]  }
0x12e1   : > { %10174 = vmatpush1.bf16.msra.mxu1 %v13541_v33  ;;  %v13609_v33 = vld [vmem:[%s15626_s2 + $0x3e4] ss:$8 sps:$4 sm:$0xff]  }
0x12e2   : > { %10175 = vmatprep.subr.bf16.mxu1 %v13546_v47  ;;  %v13607_v47 = vld [vmem:[%s15626_s2 + $0x3e0] ss:$8 sps:$4 sm:$0xff]  }
0x12e5   : > { %10176 = vmatpush1.bf16.msra.mxu1 %v13544_v38  ;;  %v13612_v38 = vld [vmem:[%s15626_s2 + $0x3f4] ss:$8 sps:$4 sm:$0xff]  }
0x12e6   : > { %10177 = vmatprep.subr.bf16.mxu1 %v13549_v18  ;;  %v13610_v18 = vld [vmem:[%s15626_s2 + $0x3f0] ss:$8 sps:$4 sm:$0xff]   ;;  %s11100_s2 = sshll.u32 %s13980_s0, 4  ;;  %s13633_s0 = scalar_lea.vmem %s13632_s14, 32 }
0x12e7   : > { %s15487_s8 = scalar_lea.hbm %s13957_s4, %s11100_s2 }
0x12e9   : > { %10178 = vmatpush1.bf16.msra.mxu1 %v13547_v14 }
0x12ea   : > { %10179 = vmatprep.subr.bf16.mxu1 %v13552_v22 }
0x12ed   : > { %10180 = vmatpush1.bf16.msra.mxu1 %v13550_v25 }
0x12ee   : > { %10181 = vmatprep.subr.bf16.mxu1 %v13555_v26 }
0x12f1   : > { %10182 = vmatpush1.bf16.msra.mxu1 %v13553_v2 }
0x12f2   : > { %10183 = vmatprep.subr.bf16.mxu1 %v13558_v49  ;;  %v13621_v49 = vld [vmem:[%s13947_s20 + $0x40] sm:$0xff]  }
0x12f3   : > { %10342 = vmatpush1.bf16.msra.mxu0 %v13621_v49 }
0x12f4   : > { %10343 = vmatprep.subr.bf16.mxu0 %v13742_v44 }
0x12f5   : > { %10184 = vmatpush1.bf16.msra.mxu1 %v13556_v30  ;;  %v13622_v30 = vld [vmem:[%s13947_s20 + $0x48] sm:$0xff]  }
0x12f6   : > { %10185 = vmatprep.subr.bf16.mxu1 %v13561_v41  ;;  %v10067_v41 = vsub.s32 0, %v14009_v1 }
0x12f7   : > { %10344 = vmatpush1.bf16.msra.mxu0 %v13622_v30 }
0x12f9   : > { %10186 = vmatpush1.bf16.msra.mxu1 %v13559_v35  ;;  %v9423_v35 = vld [vmem:[%s15627_s12] sm:$0x3]  ;;  %s13627_s12 = scalar_lea.vmem %s15489_s6, 16 }
0x12fa   : > { %10187 = vmatprep.subr.bf16.mxu1 %v13564_v36  ;;  %v10071_v36 = vsub.s32 1, %v14009_v1  ;;  %p13628_p11 = scmp.ne.s32.totalorder %s15489_s6, %s13627_s12  ;;  %p13635_p1 = scmp.lt.s32.totalorder %s13633_s0, %s13627_s12 }
0x12fc   : > { %p13629_p12 = pnand %p13628_p11, %p13997_p5  ;;  %p13636_p2 = por %p13635_p1, %p13634_p0 }
0x12fd   : > { %10188 = vmatpush1.bf16.msra.mxu1 %v13562_v27  ;;  %v10068_v27 = vrot.slane %v9423_v35, %v10067_v41 }
0x12fe   : > { %10198 = vmatprep.subr.bf16.mxu1 %v13567_v42  ;;  %v10072_v42 = vrot.slane %v9423_v35, %v10071_v36  ;;  %p13630_p13 = pneg %p13629_p12 }
0x1300   : > { %p13637_p3 = pnand %p13636_p2, %p13630_p13 }
0x134b   : > { %v9073_v60 = vpop.f32.mrb[120].mxu1 }
0x134c   : > { %v12534_v16 = vpop.f32.mrb[121].mxu1  ;;  %v9291_v8 = vpack.c.bf16 %v9073_v60, %v9073_v60 }
0x134d   : > { %v9283_v62 = vpop.f32.mrb[128].mxu0  ;;  %v10261_v16 = vld [vmem:[%s13952_s27] sm:$0x1] }
0x134e   : > { %v12549_v12 = vpop.f32.mrb[129].mxu0  ;;  %v9294_v5 = vpack.c.bf16 %v9283_v62, %v9283_v62 }
0x134f   : > { %v9143_v63 = vpop.f32.mrb[122].mxu1 }
0x1350   : > { %v9292_v4 = vpack.c.bf16 %v9143_v63, %v9143_v63  ;;  %v12539_v7 = vpop.f32.mrb[123].mxu1 }
0x1352   : > { %10189 = vmatprep.mubr.bf16.mxu1 %v9292_v4 }
0x1353   : > { %10190 = vmatmul.mubr.bf16.vlgmr.msra.gmra.mrb[128].mxu1 %v9291_v8  ;;  %v15443_v3 = vpop.f32.mrb[124].mxu1 }
0x1354   : > { %10199 = vmatpush1.bf16.msra.mxu1 %v13565_v6  ;;  %10230 = vmatprep.mubr.bf16.mxu1 %v9294_v5  ;;  %v12544_v46 = vpop.f32.mrb[125].mxu1  ;;  %v9293_v22 = vpack.c.bf16 %v15443_v3, %v15443_v3 }
0x1355   : > { %10200 = vmatprep.subr.bf16.mxu1 %v13570_v15 }
0x1358   : > { %10201 = vmatpush1.bf16.msra.mxu1 %v13568_v19 }
0x1359   : > { %10202 = vmatprep.subr.bf16.mxu1 %v13573_v50 }
0x135c   : > { %10203 = vmatpush1.bf16.msra.mxu1 %v13571_v24 }
0x135d   : > { %10204 = vmatprep.subr.bf16.mxu1 %v13576_v21 }
0x1360   : > { %10205 = vmatpush1.bf16.msra.mxu1 %v13574_v32 }
0x1361   : > { %10206 = vmatprep.subr.bf16.mxu1 %v13579_v39 }
0x1364   : > { %10207 = vmatpush1.bf16.msra.mxu1 %v13577_v40 }
0x1365   : > { %10208 = vmatprep.subr.bf16.mxu1 %v13582_v28 }
0x1368   : > { %10209 = vmatpush1.bf16.msra.mxu1 %v13580_v9 }
0x1369   : > { %10210 = vmatprep.subr.bf16.mxu1 %v13585_v34 }
0x136c   : > { %10211 = vmatpush1.bf16.msra.mxu1 %v13583_v48 }
0x136d   : > { %10212 = vmatprep.subr.bf16.mxu1 %v13588_v61 }
0x1370   : > { %10213 = vmatpush1.bf16.msra.mxu1 %v13586_v17 }
0x1371   : > { %10214 = vmatprep.subr.bf16.mxu1 %v13591_v20 }
0x1374   : > { %10215 = vmatpush1.bf16.msra.mxu1 %v13589_v13 }
0x1375   : > { %10216 = vmatprep.subr.bf16.mxu1 %v13594_v0 }
0x1378   : > { %10217 = vmatpush1.bf16.msra.mxu1 %v13592_v23 }
0x1379   : > { %10218 = vmatprep.subr.bf16.mxu1 %v13597_v10 }
0x137c   : > { %10219 = vmatpush1.bf16.msra.mxu1 %v13595_v29 }
0x137d   : > { %10220 = vmatprep.subr.bf16.mxu1 %v13600_v43 }
0x1380   : > { %10221 = vmatpush1.bf16.msra.mxu1 %v13598_v51 }
0x1381   : > { %10222 = vmatprep.subr.bf16.mxu1 %v13603_v11 }
0x1384   : > { %10223 = vmatpush1.bf16.msra.mxu1 %v13601_v31 }
0x1385   : > { %10224 = vmatprep.subr.bf16.mxu1 %v13606_v58 }
0x1388   : > { %10225 = vmatpush1.bf16.msra.mxu1 %v13604_v59 }
0x1389   : > { %10226 = vmatprep.subr.bf16.mxu1 %v13609_v33 }
0x138c   : > { %10227 = vmatpush1.bf16.msra.mxu1 %v13607_v47 }
0x138d   : > { %10228 = vmatprep.subr.bf16.mxu1 %v13612_v38 }
0x138e   : > { %v10109_v14 = vpop.f32.mrb[132].mxu0 }
0x138f   : > { %v10111_v25 = vpop.f32.mrb[133].mxu0  ;;  %v10110_v37 = vadd.f32 %v10109_v14, %v10068_v27 }
0x1390   : > { %10229 = vmatpush1.bf16.msra.mxu1 %v13610_v18  ;;  %v10113_v26 = vpop.f32.mrb[134].mxu0  ;;  %v10112_v45 = vadd.f32 %v10111_v25, %v10072_v42 }
0x1391   : > { %v10114_v2 = vpop.f32.mrb[135].mxu0 }
0x1393   : > { %10231 = vmatmul.mubr.bf16.vlgmr.msra.gmra.mrb[128].mxu1 %v9293_v22 }
0x1466   : > { %v10232_v53 = vpop.f32.mrb[128].mxu1 }
0x1467   : > { %v12895_v54 = vadd.f32 %v10232_v53, %v10110_v37  ;;  %v10234_v55 = vpop.f32.mrb[129].mxu1 }
0x1468   : > { %v12897_v52 = vadd.f32 %v10234_v55, %v10112_v45  ;;  %v10236_v56 = vpop.f32.mrb[130].mxu1 }
0x1469   : > { %v10237_v57 = vpop.f32.mrb[131].mxu1  ;;  %v10239_v60 = vpack.c.bf16 %v12895_v54, %v12895_v54 }
0x146a   : > { %v10240_v44 = vpack.c.bf16 %v12897_v52, %v12897_v52 }
0x146c   : > { %11098 = vmatprep.mubr.msk.bf16.mxu0 %vm2309_vm0, %v10240_v44 }
0x146d   : > { %10358 = vmatmul.mubr.bf16.vlgmr.msra.gmra.mrb[136].mxu0 %v10239_v60 }
0x1540   : > { %v10359_v1 = vpop.f32.mrb[136].mxu0 }
0x1541   : > { %v10360_v62 = vadd.f32 %v10359_v1, %v10261_v16  ;;  %v10361_v12 = vpop.f32.mrb[137].mxu0 }
0x1542   : > { %v10362_v63 = vpop.f32.mrb[138].mxu0 }
0x1543   : > { %v11099_v4 = vmul.f32 -1.442695, %v10360_v62  ;;  %v10363_v6 = vpop.f32.mrb[139].mxu0 }
0x1545   : > { %13623 = vpow2.f32 %v11099_v4 }
0x154f   : > { %v13624_v7 = vpop.eup %13623 }
0x1550   : > { %v10368_v5 = vadd.f32 1.0, %v13624_v7 }
0x1552   : > { %13625 = vrcp.f32 %v10368_v5 }
0x155c   : > { %v13626_v8 = vpop.eup %13625 }
0x155d   : > { %10371 = vst [vmem:[%s1230_s3] sm:$0x1] %v13626_v8 }
0x155e   : > { %13640 = shalt.err (!%p13637_p3)
}
0x155f   : > { %s13641_s3 = scalar_lea.hbm %s15487_s8, 16  ;;  %s13645_s13 = scalar_lea.hbm %s13957_s4, 32 }
0x1560   : > { %p13642_p4 = scmp.ne.s32.totalorder %s15487_s8, %s13641_s3  ;;  %p13646_p9 = scmp.lt.u32.totalorder %s15487_s8, %s13957_s4 }
0x1561   : > { %p13647_p10 = scmp.lt.u32.totalorder %s13645_s13, %s13641_s3  ;;  %p13649_p12 = scmp.lt.u32.totalorder %s13641_s3, %s15487_s8 }
0x1562   : > { %p13643_p7 = pnand %p13642_p4, %p13997_p5 }
0x1563   : > { %p13648_p11 = por %p13647_p10, %p13646_p9 }
0x1564   : > { %p13644_p8 = pneg %p13643_p7 }
0x1565   : > { %p13650_p0 = por %p13649_p12, %p13648_p11 }
0x1567   : > { %p13651_p13 = pnand %p13650_p0, %p13644_p8 }
0x1569   : > { %13654 = shalt.err (!%p13651_p13)
}
0x156a   : > { %12907 = dma.vmem_to_hbm [thread:$0]  (%p13997_p5), %s15489_s6, 16, %s15487_s8, %s10373_s9  }
0x156b PF: > { %p12913_p1 = scmp.ge.s32.totalorder %s13689_s15, 2  ;;  %s10397_s14 = sand.u32 1, %s13677_s7  }
0x156c   : > { %s10398_s12 = scalar_lea.sflag [#allocation3], %s10397_s14 }
0x156d   : > { %p12910_p2 = pnand %p12913_p1, %p14001_p6 }
0x156f   : > { %13672 = dma.done.wait (!%p12910_p2), %s10398_s12, 16  }
0x1570   : > { %13674 = vsyncadd (!%p12910_p2), %s10398_s12, 4294967280  ;;  %p93_p3 = scmp.ge.s32.totalorder %s13984_s18, 4   ;;  %s15628_s7 = smov %s13681_s10 }
0x1571   : > { %s15629_s10 = smov %s13685_s11  ;;  %s15630_s11 = smov %s13995_s26 }
0x1572   : > { %s15631_s15 = smov %s13984_s18  ;;  %95 = sbr.rel (!%p93_p3) target bundleno = 91 (0x5b), region = 260 }
0x1579   :  { %10402 = vsyncpa [#allocation3], 1 }
0x157a   :  { %10404 = vsyncpa [#allocation3 + $0x1], 1 }

</bundles_post_ra>
